<compile_context>
chip_gen: v7x
topology: tpu7x:2x2x1
jax: 0.10.0
libtpu: 0.0.40
codegen_flags: <defaults>
</compile_context>

<pallas_src>
import functools

import jax
import jax.numpy as jnp
from jax.experimental import pallas as pl
from jax.experimental.pallas import tpu as pltpu

# Boundary fill for min/max pooling.  Safe because erode/dilate inputs are
# probabilities / one-hot maps in [0, 1]; the fill is always absorbed by the
# min/max with the (finite) center value and never propagates.
_BIG = 1e30
_CLDICE_ITERS = 3
_CLDICE_SMOOTH = 1.0


# ---------------------------------------------------------------------------
# plain-JAX soft-skeletonization helpers (used only by the reference below).
# ---------------------------------------------------------------------------
def _shift(x, sh, axis, fill):
    """out[i] = x[i - sh] along `axis`; out-of-range positions get `fill`."""
    h, w = x.shape
    if axis == 0:
        pad = jnp.full((1, w), fill, x.dtype)
        if sh == 1:
            return jnp.concatenate([pad, x[:-1, :]], axis=0)
        return jnp.concatenate([x[1:, :], pad], axis=0)
    pad = jnp.full((h, 1), fill, x.dtype)
    if sh == 1:
        return jnp.concatenate([pad, x[:, :-1]], axis=1)
    return jnp.concatenate([x[:, 1:], pad], axis=1)


def _soft_erode(x):
    p1 = jnp.minimum(x, jnp.minimum(_shift(x, 1, 0, _BIG), _shift(x, -1, 0, _BIG)))
    p2 = jnp.minimum(x, jnp.minimum(_shift(x, 1, 1, _BIG), _shift(x, -1, 1, _BIG)))
    return jnp.minimum(p1, p2)


def _soft_dilate(x):
    r = jnp.maximum(x, jnp.maximum(_shift(x, 1, 0, -_BIG), _shift(x, -1, 0, -_BIG)))
    return jnp.maximum(r, jnp.maximum(_shift(r, 1, 1, -_BIG), _shift(r, -1, 1, -_BIG)))


def _soft_open(x):
    return _soft_dilate(_soft_erode(x))


def _soft_skel(x, n_iter):
    x1 = _soft_open(x)
    skel = jnp.maximum(x - x1, 0.0)
    for _ in range(n_iter):
        x = _soft_erode(x)
        x1 = _soft_open(x)
        delta = jnp.maximum(x - x1, 0.0)
        skel = skel + jnp.maximum(delta - skel * delta, 0.0)
    return skel


# ---------------------------------------------------------------------------
# in-kernel soft-skeletonization on a stack of independent (H, W) maps that
# have been concatenated along rows.  `top_mask` / `bot_mask` mark the first /
# last row of every stacked map so vertical shifts never leak across map (or
# image) boundaries.
# ---------------------------------------------------------------------------
def _stacked_soft_skel(x, n_iter, top_mask, bot_mask):
    R, W = x.shape

    def vshift(a, sh, fill):
        pad = jnp.full((1, W), fill, a.dtype)
        if sh == 1:                                   # out[r] = a[r-1]
            shifted = jnp.concatenate([pad, a[:-1, :]], axis=0)
            return jnp.where(top_mask, fill, shifted)
        shifted = jnp.concatenate([a[1:, :], pad], axis=0)
        return jnp.where(bot_mask, fill, shifted)

    def hshift(a, sh, fill):
        pad = jnp.full((R, 1), fill, a.dtype)
        if sh == 1:
            return jnp.concatenate([pad, a[:, :-1]], axis=1)
        return jnp.concatenate([a[:, 1:], pad], axis=1)

    def erode(a):
        p1 = jnp.minimum(a, jnp.minimum(vshift(a, 1, _BIG), vshift(a, -1, _BIG)))
        p2 = jnp.minimum(a, jnp.minimum(hshift(a, 1, _BIG), hshift(a, -1, _BIG)))
        return jnp.minimum(p1, p2)

    def dilate(a):
        r = jnp.maximum(a, jnp.maximum(vshift(a, 1, -_BIG), vshift(a, -1, -_BIG)))
        return jnp.maximum(r, jnp.maximum(hshift(r, 1, -_BIG), hshift(r, -1, -_BIG)))

    # soft_open(x) = dilate(erode(x)); the erode result is exactly next
    # iteration's `x = soft_erode(x)`, so reuse it (4 erodes instead of 7).
    e = erode(x)
    skel = jnp.maximum(x - dilate(e), 0.0)
    for _ in range(n_iter):
        x = e
        e = erode(x)
        delta = jnp.maximum(x - dilate(e), 0.0)
        skel = skel + jnp.maximum(delta - skel * delta, 0.0)
    return skel


# ---------------------------------------------------------------------------
# Pallas kernel: one grid step per batch element.
# ---------------------------------------------------------------------------
def _combined_kernel(logits_ref, labels_ref, out_ref, *, wce_smooth):
    _, C, H, W = logits_ref.shape
    labels = labels_ref[0]                                    # (H, W) int32

    def chan(c):
        # per-channel load + upcast (keeps all math in f32, also on bf16 inputs)
        return logits_ref[0, c].astype(jnp.float32)           # (H, W)

    # --- channel max / log-sum-exp; only (H, W) stats are kept live ---
    m = chan(0)
    for c in range(1, C):
        m = jnp.maximum(m, chan(c))
    s = jnp.zeros((H, W), jnp.float32)
    for c in range(C):
        s = s + jnp.exp(chan(c) - m)
    logden = jnp.log(s)

    # --- instance-weighted cross entropy (+ collect foreground maps) ---
    total = jnp.float32(H * W)
    nll = jnp.zeros((1, 1), jnp.float32)
    wsum = jnp.zeros((1, 1), jnp.float32)
    fg_pred = []
    fg_true = []
    for c in range(C):
        logsm_c = chan(c) - m - logden                        # log softmax[c]
        mf = (labels == c).astype(jnp.float32)                # one-hot[c]
        cnt = jnp.sum(mf, axis=(0, 1), keepdims=True)         # (1, 1)
        w = 1.0 / (cnt / total + wce_smooth)                  # (1, 1)
        nll = nll + w * jnp.sum(mf * (-logsm_c), axis=(0, 1), keepdims=True)
        wsum = wsum + w * cnt
        if c >= 1:
            fg_pred.append(jnp.exp(logsm_c))                  # softmax prob[c]
            fg_true.append(mf)                                # reuse CE mask

    # --- soft-clDice partial sums over foreground classes (single skel pass) ---
    if C > 1:
        n_maps = 2 * (C - 1)
        stacked = jnp.concatenate(fg_pred + fg_true, axis=0)  # (n_maps*H, W)

        # per-map top/bottom row masks (image edges repeated every H rows)
        sub_row = jax.lax.broadcasted_iota(jnp.int32, (H, W), 0)
        top_small = (sub_row == 0).astype(jnp.float32)
        bot_small = (sub_row == H - 1).astype(jnp.float32)
        top_mask = jnp.concatenate([top_small] * n_maps, axis=0) > 0.5
        bot_mask = jnp.concatenate([bot_small] * n_maps, axis=0) > 0.5

        skel = _stacked_soft_skel(stacked, _CLDICE_ITERS, top_mask, bot_mask)

        K = (C - 1) * H
        y_pred, y_true = stacked[:K], stacked[K:]
        skel_pred, skel_true = skel[:K], skel[K:]
        tp = jnp.sum(skel_pred * y_true, axis=(0, 1), keepdims=True)
        sp = jnp.sum(skel_pred, axis=(0, 1), keepdims=True)
        ts = jnp.sum(skel_true * y_pred, axis=(0, 1), keepdims=True)
        st = jnp.sum(skel_true, axis=(0, 1), keepdims=True)
    else:
        tp = sp = ts = st = jnp.zeros((1, 1), jnp.float32)

    # --- pack the six scalar partial sums into one (1, 8) store ---
    lane = jax.lax.broadcasted_iota(jnp.int32, (1, 8), 1)
    packed = jnp.zeros((1, 8), jnp.float32)
    for k, v in enumerate((nll, wsum, tp, sp, ts, st)):
        packed = jnp.where(lane == k, v, packed)
    out_ref[0] = packed


def combined_seg_loss(outputs, targets, *, alpha=0.5, wce_smooth=0.6):
    """Pallas implementation of CombinedSegLoss.forward(outputs, targets)."""
    B, C, H, W = outputs.shape
    kernel = functools.partial(_combined_kernel, wce_smooth=wce_smooth)

    out = pl.pallas_call(
        kernel,
        grid=(B,),
        in_specs=[
            pl.BlockSpec((1, C, H, W), lambda b: (b, 0, 0, 0)),
            pl.BlockSpec((1, H, W), lambda b: (b, 0, 0)),
        ],
        out_specs=pl.BlockSpec((1, 1, 8), lambda b: (b, 0, 0)),
        out_shape=jax.ShapeDtypeStruct((B, 1, 8), jnp.float32),
        compiler_params=pltpu.CompilerParams(
            # batch elements are independent -> shard grid steps across TCs (v7x)
            dimension_semantics=("parallel",),
            # stop-gap headroom while keeping one image per grid step
            vmem_limit_bytes=48 * 1024 * 1024,
        ),
    )(outputs, targets.astype(jnp.int32))     # inputs DMA in native dtype (e.g. bf16)

    sums = jnp.sum(out[:, 0, :], axis=0)      # batch-reduce the packed partials
    nll, wsum = sums[0], sums[1]
    tp, sp, ts, st = sums[2], sums[3], sums[4], sums[5]

    wce = nll / wsum
    sm = _CLDICE_SMOOTH
    tprec = (tp + sm) / (sp + sm)
    tsens = (ts + sm) / (st + sm)
    cldice = 1.0 - 2.0 * tprec * tsens / (tprec + tsens)
    return (1.0 - alpha) * wce + alpha * cldice


# ---------------------------------------------------------------------------
# plain-JAX reference (for verification of the Pallas lowering)
# ---------------------------------------------------------------------------
def _reference(outputs, targets, *, alpha, wce_smooth):
    B, C, H, W = outputs.shape
    logits = outputs.astype(jnp.float32)
    m = logits.max(axis=1, keepdims=True)
    ex = jnp.exp(logits - m)
    den = ex.sum(axis=1, keepdims=True)
    probs = ex / den
    logsm = (logits - m) - jnp.log(den)
    onehot = jax.nn.one_hot(targets, C, axis=1, dtype=jnp.float32)

    freq = onehot.mean(axis=(2, 3))                           # (B, C)
    w = 1.0 / (freq + wce_smooth)
    wpix = jnp.einsum("bc,bchw->bhw", w, onehot)
    nllpix = -jnp.sum(logsm * onehot, axis=1)
    wce = jnp.sum(wpix * nllpix) / jnp.sum(wpix)

    skel = jax.vmap(jax.vmap(lambda p: _soft_skel(p, _CLDICE_ITERS)))
    skel_pred = skel(probs)
    skel_true = skel(onehot)
    sm = _CLDICE_SMOOTH
    tprec = (jnp.sum(skel_pred[:, 1:] * onehot[:, 1:]) + sm) / (jnp.sum(skel_pred[:, 1:]) + sm)
    tsens = (jnp.sum(skel_true[:, 1:] * probs[:, 1:]) + sm) / (jnp.sum(skel_true[:, 1:]) + sm)
    cldice = 1.0 - 2.0 * tprec * tsens / (tprec + tsens)
    return (1.0 - alpha) * wce + alpha * cldice


if __name__ == "__main__":
    B, C, H, W = 2, 4, 16, 16          # num_classes = 4
    alpha, wce_smooth = 0.5, 0.6

    key = jax.random.PRNGKey(0)
    k1, k2 = jax.random.split(key)
    outputs = jax.random.normal(k1, (B, C, H, W), dtype=jnp.float32)
    targets = jax.random.randint(k2, (B, H, W), 0, C, dtype=jnp.int32)

    loss_fn = jax.jit(functools.partial(combined_seg_loss, alpha=alpha, wce_smooth=wce_smooth))
    loss = jax.block_until_ready(loss_fn(outputs, targets))

    ref = _reference(outputs, targets, alpha=alpha, wce_smooth=wce_smooth)
    assert jnp.allclose(loss, ref, rtol=1e-3, atol=1e-4), (loss, ref)

    print("KERNEL_OK")
</pallas_src>

<mosaic_0001>
module attributes {stable_mosaic.version = 11 : i64} {
  func.func @_combined_kernel(%arg0: i32, %arg1: memref<1x4x16x16xf32, #tpu.memory_space<vmem>>, %arg2: memref<1x16x16xi32, #tpu.memory_space<vmem>>, %arg3: memref<1x1x8xf32, #tpu.memory_space<vmem>>) attributes {dimension_semantics = [#tpu.dimension_semantics<parallel>], iteration_bounds = array<i64: 2>, scalar_prefetch = 0 : i64, scratch_operands = 0 : i64, tpu.core_type = #tpu.core_type<tc>, window_params = [{transform_indices = @transform_0, window_bounds = array<i64: 1, 4, 16, 16>}, {transform_indices = @transform_1, window_bounds = array<i64: 1, 16, 16>}, {transform_indices = @transform_2, window_bounds = array<i64: 1, 1, 8>}]} {
    %c0 = arith.constant 0 : index
    %c0_0 = arith.constant 0 : index
    %c0_1 = arith.constant 0 : index
    %0 = vector.load %arg2[%c0, %c0_0, %c0_1] : memref<1x16x16xi32, #tpu.memory_space<vmem>>, vector<1x16x16xi32>
    %1 = vector.shape_cast %0 : vector<1x16x16xi32> to vector<16x16xi32>
    %c0_2 = arith.constant 0 : index
    %c0_3 = arith.constant 0 : index
    %c0_4 = arith.constant 0 : index
    %c0_5 = arith.constant 0 : index
    %2 = vector.load %arg1[%c0_2, %c0_3, %c0_4, %c0_5] : memref<1x4x16x16xf32, #tpu.memory_space<vmem>>, vector<1x1x16x16xf32>
    %3 = vector.shape_cast %2 : vector<1x1x16x16xf32> to vector<16x16xf32>
    %c0_6 = arith.constant 0 : index
    %c1 = arith.constant 1 : index
    %c0_7 = arith.constant 0 : index
    %c0_8 = arith.constant 0 : index
    %4 = vector.load %arg1[%c0_6, %c1, %c0_7, %c0_8] : memref<1x4x16x16xf32, #tpu.memory_space<vmem>>, vector<1x1x16x16xf32>
    %5 = vector.shape_cast %4 : vector<1x1x16x16xf32> to vector<16x16xf32>
    %6 = arith.maximumf %3, %5 : vector<16x16xf32>
    %c0_9 = arith.constant 0 : index
    %c2 = arith.constant 2 : index
    %c0_10 = arith.constant 0 : index
    %c0_11 = arith.constant 0 : index
    %7 = vector.load %arg1[%c0_9, %c2, %c0_10, %c0_11] : memref<1x4x16x16xf32, #tpu.memory_space<vmem>>, vector<1x1x16x16xf32>
    %8 = vector.shape_cast %7 : vector<1x1x16x16xf32> to vector<16x16xf32>
    %9 = arith.maximumf %6, %8 : vector<16x16xf32>
    %c0_12 = arith.constant 0 : index
    %c3 = arith.constant 3 : index
    %c0_13 = arith.constant 0 : index
    %c0_14 = arith.constant 0 : index
    %10 = vector.load %arg1[%c0_12, %c3, %c0_13, %c0_14] : memref<1x4x16x16xf32, #tpu.memory_space<vmem>>, vector<1x1x16x16xf32>
    %11 = vector.shape_cast %10 : vector<1x1x16x16xf32> to vector<16x16xf32>
    %12 = arith.maximumf %9, %11 : vector<16x16xf32>
    %cst = arith.constant 0.000000e+00 : f32
    %13 = vector.broadcast %cst : f32 to vector<16x16xf32>
    %c0_15 = arith.constant 0 : index
    %c0_16 = arith.constant 0 : index
    %c0_17 = arith.constant 0 : index
    %c0_18 = arith.constant 0 : index
    %14 = vector.load %arg1[%c0_15, %c0_16, %c0_17, %c0_18] : memref<1x4x16x16xf32, #tpu.memory_space<vmem>>, vector<1x1x16x16xf32>
    %15 = vector.shape_cast %14 : vector<1x1x16x16xf32> to vector<16x16xf32>
    %16 = arith.subf %15, %12 : vector<16x16xf32>
    %17 = math.exp %16 : vector<16x16xf32>
    %18 = arith.addf %13, %17 : vector<16x16xf32>
    %c0_19 = arith.constant 0 : index
    %c1_20 = arith.constant 1 : index
    %c0_21 = arith.constant 0 : index
    %c0_22 = arith.constant 0 : index
    %19 = vector.load %arg1[%c0_19, %c1_20, %c0_21, %c0_22] : memref<1x4x16x16xf32, #tpu.memory_space<vmem>>, vector<1x1x16x16xf32>
    %20 = vector.shape_cast %19 : vector<1x1x16x16xf32> to vector<16x16xf32>
    %21 = arith.subf %20, %12 : vector<16x16xf32>
    %22 = math.exp %21 : vector<16x16xf32>
    %23 = arith.addf %18, %22 : vector<16x16xf32>
    %c0_23 = arith.constant 0 : index
    %c2_24 = arith.constant 2 : index
    %c0_25 = arith.constant 0 : index
    %c0_26 = arith.constant 0 : index
    %24 = vector.load %arg1[%c0_23, %c2_24, %c0_25, %c0_26] : memref<1x4x16x16xf32, #tpu.memory_space<vmem>>, vector<1x1x16x16xf32>
    %25 = vector.shape_cast %24 : vector<1x1x16x16xf32> to vector<16x16xf32>
    %26 = arith.subf %25, %12 : vector<16x16xf32>
    %27 = math.exp %26 : vector<16x16xf32>
    %28 = arith.addf %23, %27 : vector<16x16xf32>
    %c0_27 = arith.constant 0 : index
    %c3_28 = arith.constant 3 : index
    %c0_29 = arith.constant 0 : index
    %c0_30 = arith.constant 0 : index
    %29 = vector.load %arg1[%c0_27, %c3_28, %c0_29, %c0_30] : memref<1x4x16x16xf32, #tpu.memory_space<vmem>>, vector<1x1x16x16xf32>
    %30 = vector.shape_cast %29 : vector<1x1x16x16xf32> to vector<16x16xf32>
    %31 = arith.subf %30, %12 : vector<16x16xf32>
    %32 = math.exp %31 : vector<16x16xf32>
    %33 = arith.addf %28, %32 : vector<16x16xf32>
    %34 = math.log %33 : vector<16x16xf32>
    %cst_31 = arith.constant 0.000000e+00 : f32
    %35 = vector.broadcast %cst_31 : f32 to vector<1x1xf32>
    %cst_32 = arith.constant 0.000000e+00 : f32
    %36 = vector.broadcast %cst_32 : f32 to vector<1x1xf32>
    %c0_33 = arith.constant 0 : index
    %c0_34 = arith.constant 0 : index
    %c0_35 = arith.constant 0 : index
    %c0_36 = arith.constant 0 : index
    %37 = vector.load %arg1[%c0_33, %c0_34, %c0_35, %c0_36] : memref<1x4x16x16xf32, #tpu.memory_space<vmem>>, vector<1x1x16x16xf32>
    %38 = vector.shape_cast %37 : vector<1x1x16x16xf32> to vector<16x16xf32>
    %39 = arith.subf %38, %12 : vector<16x16xf32>
    %40 = arith.subf %39, %34 : vector<16x16xf32>
    %c0_i32 = arith.constant 0 : i32
    %41 = vector.broadcast %c0_i32 : i32 to vector<16x16xi32>
    %42 = arith.cmpi eq, %1, %41 : vector<16x16xi32>
    %43 = arith.extui %42 : vector<16x16xi1> to vector<16x16xi32>
    %44 = arith.sitofp %43 : vector<16x16xi32> to vector<16x16xf32>
    %45 = vector.shape_cast %44 : vector<16x16xf32> to vector<1x16x16xf32>
    %cst_37 = arith.constant dense<0.000000e+00> : vector<1xf32>
    %46 = vector.multi_reduction <add>, %45, %cst_37 [1, 2] : vector<1x16x16xf32> to vector<1xf32>
    %47 = vector.shape_cast %46 : vector<1xf32> to vector<1x1x1xf32>
    %48 = vector.extract %47[0, 0, 0] : f32 from vector<1x1x1xf32>
    %49 = vector.broadcast %48 : f32 to vector<1x1xf32>
    %cst_38 = arith.constant 2.560000e+02 : f32
    %50 = vector.broadcast %cst_38 : f32 to vector<1x1xf32>
    %51 = arith.divf %49, %50 : vector<1x1xf32>
    %cst_39 = arith.constant 6.000000e-01 : f32
    %52 = vector.broadcast %cst_39 : f32 to vector<1x1xf32>
    %53 = arith.addf %51, %52 : vector<1x1xf32>
    %cst_40 = arith.constant 1.000000e+00 : f32
    %54 = vector.broadcast %cst_40 : f32 to vector<1x1xf32>
    %55 = arith.divf %54, %53 : vector<1x1xf32>
    %cst_41 = arith.constant 0.000000e+00 : f32
    %56 = vector.broadcast %cst_41 : f32 to vector<16x16xf32>
    %57 = arith.subf %56, %40 : vector<16x16xf32>
    %58 = arith.mulf %44, %57 : vector<16x16xf32>
    %59 = vector.shape_cast %58 : vector<16x16xf32> to vector<1x16x16xf32>
    %cst_42 = arith.constant dense<0.000000e+00> : vector<1xf32>
    %60 = vector.multi_reduction <add>, %59, %cst_42 [1, 2] : vector<1x16x16xf32> to vector<1xf32>
    %61 = vector.shape_cast %60 : vector<1xf32> to vector<1x1x1xf32>
    %62 = vector.extract %61[0, 0, 0] : f32 from vector<1x1x1xf32>
    %63 = vector.broadcast %62 : f32 to vector<1x1xf32>
    %64 = arith.mulf %55, %63 : vector<1x1xf32>
    %65 = arith.addf %35, %64 : vector<1x1xf32>
    %66 = arith.mulf %55, %49 : vector<1x1xf32>
    %67 = arith.addf %36, %66 : vector<1x1xf32>
    %c0_43 = arith.constant 0 : index
    %c1_44 = arith.constant 1 : index
    %c0_45 = arith.constant 0 : index
    %c0_46 = arith.constant 0 : index
    %68 = vector.load %arg1[%c0_43, %c1_44, %c0_45, %c0_46] : memref<1x4x16x16xf32, #tpu.memory_space<vmem>>, vector<1x1x16x16xf32>
    %69 = vector.shape_cast %68 : vector<1x1x16x16xf32> to vector<16x16xf32>
    %70 = arith.subf %69, %12 : vector<16x16xf32>
    %71 = arith.subf %70, %34 : vector<16x16xf32>
    %c1_i32 = arith.constant 1 : i32
    %72 = vector.broadcast %c1_i32 : i32 to vector<16x16xi32>
    %73 = arith.cmpi eq, %1, %72 : vector<16x16xi32>
    %74 = arith.extui %73 : vector<16x16xi1> to vector<16x16xi32>
    %75 = arith.sitofp %74 : vector<16x16xi32> to vector<16x16xf32>
    %76 = vector.shape_cast %75 : vector<16x16xf32> to vector<1x16x16xf32>
    %cst_47 = arith.constant dense<0.000000e+00> : vector<1xf32>
    %77 = vector.multi_reduction <add>, %76, %cst_47 [1, 2] : vector<1x16x16xf32> to vector<1xf32>
    %78 = vector.shape_cast %77 : vector<1xf32> to vector<1x1x1xf32>
    %79 = vector.extract %78[0, 0, 0] : f32 from vector<1x1x1xf32>
    %80 = vector.broadcast %79 : f32 to vector<1x1xf32>
    %cst_48 = arith.constant 2.560000e+02 : f32
    %81 = vector.broadcast %cst_48 : f32 to vector<1x1xf32>
    %82 = arith.divf %80, %81 : vector<1x1xf32>
    %cst_49 = arith.constant 6.000000e-01 : f32
    %83 = vector.broadcast %cst_49 : f32 to vector<1x1xf32>
    %84 = arith.addf %82, %83 : vector<1x1xf32>
    %cst_50 = arith.constant 1.000000e+00 : f32
    %85 = vector.broadcast %cst_50 : f32 to vector<1x1xf32>
    %86 = arith.divf %85, %84 : vector<1x1xf32>
    %cst_51 = arith.constant 0.000000e+00 : f32
    %87 = vector.broadcast %cst_51 : f32 to vector<16x16xf32>
    %88 = arith.subf %87, %71 : vector<16x16xf32>
    %89 = arith.mulf %75, %88 : vector<16x16xf32>
    %90 = vector.shape_cast %89 : vector<16x16xf32> to vector<1x16x16xf32>
    %cst_52 = arith.constant dense<0.000000e+00> : vector<1xf32>
    %91 = vector.multi_reduction <add>, %90, %cst_52 [1, 2] : vector<1x16x16xf32> to vector<1xf32>
    %92 = vector.shape_cast %91 : vector<1xf32> to vector<1x1x1xf32>
    %93 = vector.extract %92[0, 0, 0] : f32 from vector<1x1x1xf32>
    %94 = vector.broadcast %93 : f32 to vector<1x1xf32>
    %95 = arith.mulf %86, %94 : vector<1x1xf32>
    %96 = arith.addf %65, %95 : vector<1x1xf32>
    %97 = arith.mulf %86, %80 : vector<1x1xf32>
    %98 = arith.addf %67, %97 : vector<1x1xf32>
    %99 = math.exp %71 : vector<16x16xf32>
    %c0_53 = arith.constant 0 : index
    %c2_54 = arith.constant 2 : index
    %c0_55 = arith.constant 0 : index
    %c0_56 = arith.constant 0 : index
    %100 = vector.load %arg1[%c0_53, %c2_54, %c0_55, %c0_56] : memref<1x4x16x16xf32, #tpu.memory_space<vmem>>, vector<1x1x16x16xf32>
    %101 = vector.shape_cast %100 : vector<1x1x16x16xf32> to vector<16x16xf32>
    %102 = arith.subf %101, %12 : vector<16x16xf32>
    %103 = arith.subf %102, %34 : vector<16x16xf32>
    %c2_i32 = arith.constant 2 : i32
    %104 = vector.broadcast %c2_i32 : i32 to vector<16x16xi32>
    %105 = arith.cmpi eq, %1, %104 : vector<16x16xi32>
    %106 = arith.extui %105 : vector<16x16xi1> to vector<16x16xi32>
    %107 = arith.sitofp %106 : vector<16x16xi32> to vector<16x16xf32>
    %108 = vector.shape_cast %107 : vector<16x16xf32> to vector<1x16x16xf32>
    %cst_57 = arith.constant dense<0.000000e+00> : vector<1xf32>
    %109 = vector.multi_reduction <add>, %108, %cst_57 [1, 2] : vector<1x16x16xf32> to vector<1xf32>
    %110 = vector.shape_cast %109 : vector<1xf32> to vector<1x1x1xf32>
    %111 = vector.extract %110[0, 0, 0] : f32 from vector<1x1x1xf32>
    %112 = vector.broadcast %111 : f32 to vector<1x1xf32>
    %cst_58 = arith.constant 2.560000e+02 : f32
    %113 = vector.broadcast %cst_58 : f32 to vector<1x1xf32>
    %114 = arith.divf %112, %113 : vector<1x1xf32>
    %cst_59 = arith.constant 6.000000e-01 : f32
    %115 = vector.broadcast %cst_59 : f32 to vector<1x1xf32>
    %116 = arith.addf %114, %115 : vector<1x1xf32>
    %cst_60 = arith.constant 1.000000e+00 : f32
    %117 = vector.broadcast %cst_60 : f32 to vector<1x1xf32>
    %118 = arith.divf %117, %116 : vector<1x1xf32>
    %cst_61 = arith.constant 0.000000e+00 : f32
    %119 = vector.broadcast %cst_61 : f32 to vector<16x16xf32>
    %120 = arith.subf %119, %103 : vector<16x16xf32>
    %121 = arith.mulf %107, %120 : vector<16x16xf32>
    %122 = vector.shape_cast %121 : vector<16x16xf32> to vector<1x16x16xf32>
    %cst_62 = arith.constant dense<0.000000e+00> : vector<1xf32>
    %123 = vector.multi_reduction <add>, %122, %cst_62 [1, 2] : vector<1x16x16xf32> to vector<1xf32>
    %124 = vector.shape_cast %123 : vector<1xf32> to vector<1x1x1xf32>
    %125 = vector.extract %124[0, 0, 0] : f32 from vector<1x1x1xf32>
    %126 = vector.broadcast %125 : f32 to vector<1x1xf32>
    %127 = arith.mulf %118, %126 : vector<1x1xf32>
    %128 = arith.addf %96, %127 : vector<1x1xf32>
    %129 = arith.mulf %118, %112 : vector<1x1xf32>
    %130 = arith.addf %98, %129 : vector<1x1xf32>
    %131 = math.exp %103 : vector<16x16xf32>
    %c0_63 = arith.constant 0 : index
    %c3_64 = arith.constant 3 : index
    %c0_65 = arith.constant 0 : index
    %c0_66 = arith.constant 0 : index
    %132 = vector.load %arg1[%c0_63, %c3_64, %c0_65, %c0_66] : memref<1x4x16x16xf32, #tpu.memory_space<vmem>>, vector<1x1x16x16xf32>
    %133 = vector.shape_cast %132 : vector<1x1x16x16xf32> to vector<16x16xf32>
    %134 = arith.subf %133, %12 : vector<16x16xf32>
    %135 = arith.subf %134, %34 : vector<16x16xf32>
    %c3_i32 = arith.constant 3 : i32
    %136 = vector.broadcast %c3_i32 : i32 to vector<16x16xi32>
    %137 = arith.cmpi eq, %1, %136 : vector<16x16xi32>
    %138 = arith.extui %137 : vector<16x16xi1> to vector<16x16xi32>
    %139 = arith.sitofp %138 : vector<16x16xi32> to vector<16x16xf32>
    %140 = vector.shape_cast %139 : vector<16x16xf32> to vector<1x16x16xf32>
    %cst_67 = arith.constant dense<0.000000e+00> : vector<1xf32>
    %141 = vector.multi_reduction <add>, %140, %cst_67 [1, 2] : vector<1x16x16xf32> to vector<1xf32>
    %142 = vector.shape_cast %141 : vector<1xf32> to vector<1x1x1xf32>
    %143 = vector.extract %142[0, 0, 0] : f32 from vector<1x1x1xf32>
    %144 = vector.broadcast %143 : f32 to vector<1x1xf32>
    %cst_68 = arith.constant 2.560000e+02 : f32
    %145 = vector.broadcast %cst_68 : f32 to vector<1x1xf32>
    %146 = arith.divf %144, %145 : vector<1x1xf32>
    %cst_69 = arith.constant 6.000000e-01 : f32
    %147 = vector.broadcast %cst_69 : f32 to vector<1x1xf32>
    %148 = arith.addf %146, %147 : vector<1x1xf32>
    %cst_70 = arith.constant 1.000000e+00 : f32
    %149 = vector.broadcast %cst_70 : f32 to vector<1x1xf32>
    %150 = arith.divf %149, %148 : vector<1x1xf32>
    %cst_71 = arith.constant 0.000000e+00 : f32
    %151 = vector.broadcast %cst_71 : f32 to vector<16x16xf32>
    %152 = arith.subf %151, %135 : vector<16x16xf32>
    %153 = arith.mulf %139, %152 : vector<16x16xf32>
    %154 = vector.shape_cast %153 : vector<16x16xf32> to vector<1x16x16xf32>
    %cst_72 = arith.constant dense<0.000000e+00> : vector<1xf32>
    %155 = vector.multi_reduction <add>, %154, %cst_72 [1, 2] : vector<1x16x16xf32> to vector<1xf32>
    %156 = vector.shape_cast %155 : vector<1xf32> to vector<1x1x1xf32>
    %157 = vector.extract %156[0, 0, 0] : f32 from vector<1x1x1xf32>
    %158 = vector.broadcast %157 : f32 to vector<1x1xf32>
    %159 = arith.mulf %150, %158 : vector<1x1xf32>
    %160 = arith.addf %128, %159 : vector<1x1xf32>
    %161 = arith.mulf %150, %144 : vector<1x1xf32>
    %162 = arith.addf %130, %161 : vector<1x1xf32>
    %163 = math.exp %135 : vector<16x16xf32>
    %164 = tpu.concatenate %99, %131, %163, %75, %107, %139 in 0 : vector<16x16xf32>, vector<16x16xf32>, vector<16x16xf32>, vector<16x16xf32>, vector<16x16xf32>, vector<16x16xf32> -> vector<96x16xf32>
    %165 = tpu.iota {dimensions = array<i32: 0>} : vector<16x16xi32>
    %c0_i32_73 = arith.constant 0 : i32
    %166 = vector.broadcast %c0_i32_73 : i32 to vector<16x16xi32>
    %167 = arith.cmpi eq, %165, %166 : vector<16x16xi32>
    %168 = arith.extui %167 : vector<16x16xi1> to vector<16x16xi32>
    %169 = arith.sitofp %168 : vector<16x16xi32> to vector<16x16xf32>
    %c15_i32 = arith.constant 15 : i32
    %170 = vector.broadcast %c15_i32 : i32 to vector<16x16xi32>
    %171 = arith.cmpi eq, %165, %170 : vector<16x16xi32>
    %172 = arith.extui %171 : vector<16x16xi1> to vector<16x16xi32>
    %173 = arith.sitofp %172 : vector<16x16xi32> to vector<16x16xf32>
    %174 = tpu.concatenate %169, %169, %169, %169, %169, %169 in 0 : vector<16x16xf32>, vector<16x16xf32>, vector<16x16xf32>, vector<16x16xf32>, vector<16x16xf32>, vector<16x16xf32> -> vector<96x16xf32>
    %cst_74 = arith.constant 5.000000e-01 : f32
    %175 = vector.broadcast %cst_74 : f32 to vector<96x16xf32>
    %176 = arith.cmpf ogt, %174, %175 : vector<96x16xf32>
    %177 = tpu.concatenate %173, %173, %173, %173, %173, %173 in 0 : vector<16x16xf32>, vector<16x16xf32>, vector<16x16xf32>, vector<16x16xf32>, vector<16x16xf32>, vector<16x16xf32> -> vector<96x16xf32>
    %cst_75 = arith.constant 5.000000e-01 : f32
    %178 = vector.broadcast %cst_75 : f32 to vector<96x16xf32>
    %179 = arith.cmpf ogt, %177, %178 : vector<96x16xf32>
    %cst_76 = arith.constant 1.000000e+30 : f32
    %180 = vector.broadcast %cst_76 : f32 to vector<1x16xf32>
    %181 = vector.extract_strided_slice %164 {offsets = [0, 0], sizes = [95, 16], strides = [1, 1]} : vector<96x16xf32> to vector<95x16xf32>
    %182 = tpu.concatenate %180, %181 in 0 : vector<1x16xf32>, vector<95x16xf32> -> vector<96x16xf32>
    %cst_77 = arith.constant 1.000000e+30 : f32
    %183 = vector.broadcast %cst_77 : f32 to vector<96x16xf32>
    %184 = arith.select %176, %183, %182 : vector<96x16xi1>, vector<96x16xf32>
    %cst_78 = arith.constant 1.000000e+30 : f32
    %185 = vector.broadcast %cst_78 : f32 to vector<1x16xf32>
    %186 = vector.extract_strided_slice %164 {offsets = [1, 0], sizes = [95, 16], strides = [1, 1]} : vector<96x16xf32> to vector<95x16xf32>
    %187 = tpu.concatenate %186, %185 in 0 : vector<95x16xf32>, vector<1x16xf32> -> vector<96x16xf32>
    %cst_79 = arith.constant 1.000000e+30 : f32
    %188 = vector.broadcast %cst_79 : f32 to vector<96x16xf32>
    %189 = arith.select %179, %188, %187 : vector<96x16xi1>, vector<96x16xf32>
    %190 = arith.minimumf %184, %189 : vector<96x16xf32>
    %191 = arith.minimumf %164, %190 : vector<96x16xf32>
    %cst_80 = arith.constant 1.000000e+30 : f32
    %192 = vector.broadcast %cst_80 : f32 to vector<96x1xf32>
    %193 = vector.extract_strided_slice %164 {offsets = [0, 0], sizes = [96, 15], strides = [1, 1]} : vector<96x16xf32> to vector<96x15xf32>
    %194 = tpu.concatenate %192, %193 in 1 : vector<96x1xf32>, vector<96x15xf32> -> vector<96x16xf32>
    %cst_81 = arith.constant 1.000000e+30 : f32
    %195 = vector.broadcast %cst_81 : f32 to vector<96x1xf32>
    %196 = vector.extract_strided_slice %164 {offsets = [0, 1], sizes = [96, 15], strides = [1, 1]} : vector<96x16xf32> to vector<96x15xf32>
    %197 = tpu.concatenate %196, %195 in 1 : vector<96x15xf32>, vector<96x1xf32> -> vector<96x16xf32>
    %198 = arith.minimumf %194, %197 : vector<96x16xf32>
    %199 = arith.minimumf %164, %198 : vector<96x16xf32>
    %200 = arith.minimumf %191, %199 : vector<96x16xf32>
    %cst_82 = arith.constant -1.000000e+30 : f32
    %201 = vector.broadcast %cst_82 : f32 to vector<1x16xf32>
    %202 = vector.extract_strided_slice %200 {offsets = [0, 0], sizes = [95, 16], strides = [1, 1]} : vector<96x16xf32> to vector<95x16xf32>
    %203 = tpu.concatenate %201, %202 in 0 : vector<1x16xf32>, vector<95x16xf32> -> vector<96x16xf32>
    %cst_83 = arith.constant -1.000000e+30 : f32
    %204 = vector.broadcast %cst_83 : f32 to vector<96x16xf32>
    %205 = arith.select %176, %204, %203 : vector<96x16xi1>, vector<96x16xf32>
    %cst_84 = arith.constant -1.000000e+30 : f32
    %206 = vector.broadcast %cst_84 : f32 to vector<1x16xf32>
    %207 = vector.extract_strided_slice %200 {offsets = [1, 0], sizes = [95, 16], strides = [1, 1]} : vector<96x16xf32> to vector<95x16xf32>
    %208 = tpu.concatenate %207, %206 in 0 : vector<95x16xf32>, vector<1x16xf32> -> vector<96x16xf32>
    %cst_85 = arith.constant -1.000000e+30 : f32
    %209 = vector.broadcast %cst_85 : f32 to vector<96x16xf32>
    %210 = arith.select %179, %209, %208 : vector<96x16xi1>, vector<96x16xf32>
    %211 = arith.maximumf %205, %210 : vector<96x16xf32>
    %212 = arith.maximumf %200, %211 : vector<96x16xf32>
    %cst_86 = arith.constant -1.000000e+30 : f32
    %213 = vector.broadcast %cst_86 : f32 to vector<96x1xf32>
    %214 = vector.extract_strided_slice %212 {offsets = [0, 0], sizes = [96, 15], strides = [1, 1]} : vector<96x16xf32> to vector<96x15xf32>
    %215 = tpu.concatenate %213, %214 in 1 : vector<96x1xf32>, vector<96x15xf32> -> vector<96x16xf32>
    %cst_87 = arith.constant -1.000000e+30 : f32
    %216 = vector.broadcast %cst_87 : f32 to vector<96x1xf32>
    %217 = vector.extract_strided_slice %212 {offsets = [0, 1], sizes = [96, 15], strides = [1, 1]} : vector<96x16xf32> to vector<96x15xf32>
    %218 = tpu.concatenate %217, %216 in 1 : vector<96x15xf32>, vector<96x1xf32> -> vector<96x16xf32>
    %219 = arith.maximumf %215, %218 : vector<96x16xf32>
    %220 = arith.maximumf %212, %219 : vector<96x16xf32>
    %221 = arith.subf %164, %220 : vector<96x16xf32>
    %cst_88 = arith.constant 0.000000e+00 : f32
    %222 = vector.broadcast %cst_88 : f32 to vector<96x16xf32>
    %223 = arith.maximumf %221, %222 : vector<96x16xf32>
    %cst_89 = arith.constant 1.000000e+30 : f32
    %224 = vector.broadcast %cst_89 : f32 to vector<1x16xf32>
    %225 = vector.extract_strided_slice %200 {offsets = [0, 0], sizes = [95, 16], strides = [1, 1]} : vector<96x16xf32> to vector<95x16xf32>
    %226 = tpu.concatenate %224, %225 in 0 : vector<1x16xf32>, vector<95x16xf32> -> vector<96x16xf32>
    %cst_90 = arith.constant 1.000000e+30 : f32
    %227 = vector.broadcast %cst_90 : f32 to vector<96x16xf32>
    %228 = arith.select %176, %227, %226 : vector<96x16xi1>, vector<96x16xf32>
    %cst_91 = arith.constant 1.000000e+30 : f32
    %229 = vector.broadcast %cst_91 : f32 to vector<1x16xf32>
    %230 = vector.extract_strided_slice %200 {offsets = [1, 0], sizes = [95, 16], strides = [1, 1]} : vector<96x16xf32> to vector<95x16xf32>
    %231 = tpu.concatenate %230, %229 in 0 : vector<95x16xf32>, vector<1x16xf32> -> vector<96x16xf32>
    %cst_92 = arith.constant 1.000000e+30 : f32
    %232 = vector.broadcast %cst_92 : f32 to vector<96x16xf32>
    %233 = arith.select %179, %232, %231 : vector<96x16xi1>, vector<96x16xf32>
    %234 = arith.minimumf %228, %233 : vector<96x16xf32>
    %235 = arith.minimumf %200, %234 : vector<96x16xf32>
    %cst_93 = arith.constant 1.000000e+30 : f32
    %236 = vector.broadcast %cst_93 : f32 to vector<96x1xf32>
    %237 = vector.extract_strided_slice %200 {offsets = [0, 0], sizes = [96, 15], strides = [1, 1]} : vector<96x16xf32> to vector<96x15xf32>
    %238 = tpu.concatenate %236, %237 in 1 : vector<96x1xf32>, vector<96x15xf32> -> vector<96x16xf32>
    %cst_94 = arith.constant 1.000000e+30 : f32
    %239 = vector.broadcast %cst_94 : f32 to vector<96x1xf32>
    %240 = vector.extract_strided_slice %200 {offsets = [0, 1], sizes = [96, 15], strides = [1, 1]} : vector<96x16xf32> to vector<96x15xf32>
    %241 = tpu.concatenate %240, %239 in 1 : vector<96x15xf32>, vector<96x1xf32> -> vector<96x16xf32>
    %242 = arith.minimumf %238, %241 : vector<96x16xf32>
    %243 = arith.minimumf %200, %242 : vector<96x16xf32>
    %244 = arith.minimumf %235, %243 : vector<96x16xf32>
    %cst_95 = arith.constant -1.000000e+30 : f32
    %245 = vector.broadcast %cst_95 : f32 to vector<1x16xf32>
    %246 = vector.extract_strided_slice %244 {offsets = [0, 0], sizes = [95, 16], strides = [1, 1]} : vector<96x16xf32> to vector<95x16xf32>
    %247 = tpu.concatenate %245, %246 in 0 : vector<1x16xf32>, vector<95x16xf32> -> vector<96x16xf32>
    %cst_96 = arith.constant -1.000000e+30 : f32
    %248 = vector.broadcast %cst_96 : f32 to vector<96x16xf32>
    %249 = arith.select %176, %248, %247 : vector<96x16xi1>, vector<96x16xf32>
    %cst_97 = arith.constant -1.000000e+30 : f32
    %250 = vector.broadcast %cst_97 : f32 to vector<1x16xf32>
    %251 = vector.extract_strided_slice %244 {offsets = [1, 0], sizes = [95, 16], strides = [1, 1]} : vector<96x16xf32> to vector<95x16xf32>
    %252 = tpu.concatenate %251, %250 in 0 : vector<95x16xf32>, vector<1x16xf32> -> vector<96x16xf32>
    %cst_98 = arith.constant -1.000000e+30 : f32
    %253 = vector.broadcast %cst_98 : f32 to vector<96x16xf32>
    %254 = arith.select %179, %253, %252 : vector<96x16xi1>, vector<96x16xf32>
    %255 = arith.maximumf %249, %254 : vector<96x16xf32>
    %256 = arith.maximumf %244, %255 : vector<96x16xf32>
    %cst_99 = arith.constant -1.000000e+30 : f32
    %257 = vector.broadcast %cst_99 : f32 to vector<96x1xf32>
    %258 = vector.extract_strided_slice %256 {offsets = [0, 0], sizes = [96, 15], strides = [1, 1]} : vector<96x16xf32> to vector<96x15xf32>
    %259 = tpu.concatenate %257, %258 in 1 : vector<96x1xf32>, vector<96x15xf32> -> vector<96x16xf32>
    %cst_100 = arith.constant -1.000000e+30 : f32
    %260 = vector.broadcast %cst_100 : f32 to vector<96x1xf32>
    %261 = vector.extract_strided_slice %256 {offsets = [0, 1], sizes = [96, 15], strides = [1, 1]} : vector<96x16xf32> to vector<96x15xf32>
    %262 = tpu.concatenate %261, %260 in 1 : vector<96x15xf32>, vector<96x1xf32> -> vector<96x16xf32>
    %263 = arith.maximumf %259, %262 : vector<96x16xf32>
    %264 = arith.maximumf %256, %263 : vector<96x16xf32>
    %265 = arith.subf %200, %264 : vector<96x16xf32>
    %cst_101 = arith.constant 0.000000e+00 : f32
    %266 = vector.broadcast %cst_101 : f32 to vector<96x16xf32>
    %267 = arith.maximumf %265, %266 : vector<96x16xf32>
    %268 = arith.mulf %223, %267 : vector<96x16xf32>
    %269 = arith.subf %267, %268 : vector<96x16xf32>
    %cst_102 = arith.constant 0.000000e+00 : f32
    %270 = vector.broadcast %cst_102 : f32 to vector<96x16xf32>
    %271 = arith.maximumf %269, %270 : vector<96x16xf32>
    %272 = arith.addf %223, %271 : vector<96x16xf32>
    %cst_103 = arith.constant 1.000000e+30 : f32
    %273 = vector.broadcast %cst_103 : f32 to vector<1x16xf32>
    %274 = vector.extract_strided_slice %244 {offsets = [0, 0], sizes = [95, 16], strides = [1, 1]} : vector<96x16xf32> to vector<95x16xf32>
    %275 = tpu.concatenate %273, %274 in 0 : vector<1x16xf32>, vector<95x16xf32> -> vector<96x16xf32>
    %cst_104 = arith.constant 1.000000e+30 : f32
    %276 = vector.broadcast %cst_104 : f32 to vector<96x16xf32>
    %277 = arith.select %176, %276, %275 : vector<96x16xi1>, vector<96x16xf32>
    %cst_105 = arith.constant 1.000000e+30 : f32
    %278 = vector.broadcast %cst_105 : f32 to vector<1x16xf32>
    %279 = vector.extract_strided_slice %244 {offsets = [1, 0], sizes = [95, 16], strides = [1, 1]} : vector<96x16xf32> to vector<95x16xf32>
    %280 = tpu.concatenate %279, %278 in 0 : vector<95x16xf32>, vector<1x16xf32> -> vector<96x16xf32>
    %cst_106 = arith.constant 1.000000e+30 : f32
    %281 = vector.broadcast %cst_106 : f32 to vector<96x16xf32>
    %282 = arith.select %179, %281, %280 : vector<96x16xi1>, vector<96x16xf32>
    %283 = arith.minimumf %277, %282 : vector<96x16xf32>
    %284 = arith.minimumf %244, %283 : vector<96x16xf32>
    %cst_107 = arith.constant 1.000000e+30 : f32
    %285 = vector.broadcast %cst_107 : f32 to vector<96x1xf32>
    %286 = vector.extract_strided_slice %244 {offsets = [0, 0], sizes = [96, 15], strides = [1, 1]} : vector<96x16xf32> to vector<96x15xf32>
    %287 = tpu.concatenate %285, %286 in 1 : vector<96x1xf32>, vector<96x15xf32> -> vector<96x16xf32>
    %cst_108 = arith.constant 1.000000e+30 : f32
    %288 = vector.broadcast %cst_108 : f32 to vector<96x1xf32>
    %289 = vector.extract_strided_slice %244 {offsets = [0, 1], sizes = [96, 15], strides = [1, 1]} : vector<96x16xf32> to vector<96x15xf32>
    %290 = tpu.concatenate %289, %288 in 1 : vector<96x15xf32>, vector<96x1xf32> -> vector<96x16xf32>
    %291 = arith.minimumf %287, %290 : vector<96x16xf32>
    %292 = arith.minimumf %244, %291 : vector<96x16xf32>
    %293 = arith.minimumf %284, %292 : vector<96x16xf32>
    %cst_109 = arith.constant -1.000000e+30 : f32
    %294 = vector.broadcast %cst_109 : f32 to vector<1x16xf32>
    %295 = vector.extract_strided_slice %293 {offsets = [0, 0], sizes = [95, 16], strides = [1, 1]} : vector<96x16xf32> to vector<95x16xf32>
    %296 = tpu.concatenate %294, %295 in 0 : vector<1x16xf32>, vector<95x16xf32> -> vector<96x16xf32>
    %cst_110 = arith.constant -1.000000e+30 : f32
    %297 = vector.broadcast %cst_110 : f32 to vector<96x16xf32>
    %298 = arith.select %176, %297, %296 : vector<96x16xi1>, vector<96x16xf32>
    %cst_111 = arith.constant -1.000000e+30 : f32
    %299 = vector.broadcast %cst_111 : f32 to vector<1x16xf32>
    %300 = vector.extract_strided_slice %293 {offsets = [1, 0], sizes = [95, 16], strides = [1, 1]} : vector<96x16xf32> to vector<95x16xf32>
    %301 = tpu.concatenate %300, %299 in 0 : vector<95x16xf32>, vector<1x16xf32> -> vector<96x16xf32>
    %cst_112 = arith.constant -1.000000e+30 : f32
    %302 = vector.broadcast %cst_112 : f32 to vector<96x16xf32>
    %303 = arith.select %179, %302, %301 : vector<96x16xi1>, vector<96x16xf32>
    %304 = arith.maximumf %298, %303 : vector<96x16xf32>
    %305 = arith.maximumf %293, %304 : vector<96x16xf32>
    %cst_113 = arith.constant -1.000000e+30 : f32
    %306 = vector.broadcast %cst_113 : f32 to vector<96x1xf32>
    %307 = vector.extract_strided_slice %305 {offsets = [0, 0], sizes = [96, 15], strides = [1, 1]} : vector<96x16xf32> to vector<96x15xf32>
    %308 = tpu.concatenate %306, %307 in 1 : vector<96x1xf32>, vector<96x15xf32> -> vector<96x16xf32>
    %cst_114 = arith.constant -1.000000e+30 : f32
    %309 = vector.broadcast %cst_114 : f32 to vector<96x1xf32>
    %310 = vector.extract_strided_slice %305 {offsets = [0, 1], sizes = [96, 15], strides = [1, 1]} : vector<96x16xf32> to vector<96x15xf32>
    %311 = tpu.concatenate %310, %309 in 1 : vector<96x15xf32>, vector<96x1xf32> -> vector<96x16xf32>
    %312 = arith.maximumf %308, %311 : vector<96x16xf32>
    %313 = arith.maximumf %305, %312 : vector<96x16xf32>
    %314 = arith.subf %244, %313 : vector<96x16xf32>
    %cst_115 = arith.constant 0.000000e+00 : f32
    %315 = vector.broadcast %cst_115 : f32 to vector<96x16xf32>
    %316 = arith.maximumf %314, %315 : vector<96x16xf32>
    %317 = arith.mulf %272, %316 : vector<96x16xf32>
    %318 = arith.subf %316, %317 : vector<96x16xf32>
    %cst_116 = arith.constant 0.000000e+00 : f32
    %319 = vector.broadcast %cst_116 : f32 to vector<96x16xf32>
    %320 = arith.maximumf %318, %319 : vector<96x16xf32>
    %321 = arith.addf %272, %320 : vector<96x16xf32>
    %cst_117 = arith.constant 1.000000e+30 : f32
    %322 = vector.broadcast %cst_117 : f32 to vector<1x16xf32>
    %323 = vector.extract_strided_slice %293 {offsets = [0, 0], sizes = [95, 16], strides = [1, 1]} : vector<96x16xf32> to vector<95x16xf32>
    %324 = tpu.concatenate %322, %323 in 0 : vector<1x16xf32>, vector<95x16xf32> -> vector<96x16xf32>
    %cst_118 = arith.constant 1.000000e+30 : f32
    %325 = vector.broadcast %cst_118 : f32 to vector<96x16xf32>
    %326 = arith.select %176, %325, %324 : vector<96x16xi1>, vector<96x16xf32>
    %cst_119 = arith.constant 1.000000e+30 : f32
    %327 = vector.broadcast %cst_119 : f32 to vector<1x16xf32>
    %328 = vector.extract_strided_slice %293 {offsets = [1, 0], sizes = [95, 16], strides = [1, 1]} : vector<96x16xf32> to vector<95x16xf32>
    %329 = tpu.concatenate %328, %327 in 0 : vector<95x16xf32>, vector<1x16xf32> -> vector<96x16xf32>
    %cst_120 = arith.constant 1.000000e+30 : f32
    %330 = vector.broadcast %cst_120 : f32 to vector<96x16xf32>
    %331 = arith.select %179, %330, %329 : vector<96x16xi1>, vector<96x16xf32>
    %332 = arith.minimumf %326, %331 : vector<96x16xf32>
    %333 = arith.minimumf %293, %332 : vector<96x16xf32>
    %cst_121 = arith.constant 1.000000e+30 : f32
    %334 = vector.broadcast %cst_121 : f32 to vector<96x1xf32>
    %335 = vector.extract_strided_slice %293 {offsets = [0, 0], sizes = [96, 15], strides = [1, 1]} : vector<96x16xf32> to vector<96x15xf32>
    %336 = tpu.concatenate %334, %335 in 1 : vector<96x1xf32>, vector<96x15xf32> -> vector<96x16xf32>
    %cst_122 = arith.constant 1.000000e+30 : f32
    %337 = vector.broadcast %cst_122 : f32 to vector<96x1xf32>
    %338 = vector.extract_strided_slice %293 {offsets = [0, 1], sizes = [96, 15], strides = [1, 1]} : vector<96x16xf32> to vector<96x15xf32>
    %339 = tpu.concatenate %338, %337 in 1 : vector<96x15xf32>, vector<96x1xf32> -> vector<96x16xf32>
    %340 = arith.minimumf %336, %339 : vector<96x16xf32>
    %341 = arith.minimumf %293, %340 : vector<96x16xf32>
    %342 = arith.minimumf %333, %341 : vector<96x16xf32>
    %cst_123 = arith.constant -1.000000e+30 : f32
    %343 = vector.broadcast %cst_123 : f32 to vector<1x16xf32>
    %344 = vector.extract_strided_slice %342 {offsets = [0, 0], sizes = [95, 16], strides = [1, 1]} : vector<96x16xf32> to vector<95x16xf32>
    %345 = tpu.concatenate %343, %344 in 0 : vector<1x16xf32>, vector<95x16xf32> -> vector<96x16xf32>
    %cst_124 = arith.constant -1.000000e+30 : f32
    %346 = vector.broadcast %cst_124 : f32 to vector<96x16xf32>
    %347 = arith.select %176, %346, %345 : vector<96x16xi1>, vector<96x16xf32>
    %cst_125 = arith.constant -1.000000e+30 : f32
    %348 = vector.broadcast %cst_125 : f32 to vector<1x16xf32>
    %349 = vector.extract_strided_slice %342 {offsets = [1, 0], sizes = [95, 16], strides = [1, 1]} : vector<96x16xf32> to vector<95x16xf32>
    %350 = tpu.concatenate %349, %348 in 0 : vector<95x16xf32>, vector<1x16xf32> -> vector<96x16xf32>
    %cst_126 = arith.constant -1.000000e+30 : f32
    %351 = vector.broadcast %cst_126 : f32 to vector<96x16xf32>
    %352 = arith.select %179, %351, %350 : vector<96x16xi1>, vector<96x16xf32>
    %353 = arith.maximumf %347, %352 : vector<96x16xf32>
    %354 = arith.maximumf %342, %353 : vector<96x16xf32>
    %cst_127 = arith.constant -1.000000e+30 : f32
    %355 = vector.broadcast %cst_127 : f32 to vector<96x1xf32>
    %356 = vector.extract_strided_slice %354 {offsets = [0, 0], sizes = [96, 15], strides = [1, 1]} : vector<96x16xf32> to vector<96x15xf32>
    %357 = tpu.concatenate %355, %356 in 1 : vector<96x1xf32>, vector<96x15xf32> -> vector<96x16xf32>
    %cst_128 = arith.constant -1.000000e+30 : f32
    %358 = vector.broadcast %cst_128 : f32 to vector<96x1xf32>
    %359 = vector.extract_strided_slice %354 {offsets = [0, 1], sizes = [96, 15], strides = [1, 1]} : vector<96x16xf32> to vector<96x15xf32>
    %360 = tpu.concatenate %359, %358 in 1 : vector<96x15xf32>, vector<96x1xf32> -> vector<96x16xf32>
    %361 = arith.maximumf %357, %360 : vector<96x16xf32>
    %362 = arith.maximumf %354, %361 : vector<96x16xf32>
    %363 = arith.subf %293, %362 : vector<96x16xf32>
    %cst_129 = arith.constant 0.000000e+00 : f32
    %364 = vector.broadcast %cst_129 : f32 to vector<96x16xf32>
    %365 = arith.maximumf %363, %364 : vector<96x16xf32>
    %366 = arith.mulf %321, %365 : vector<96x16xf32>
    %367 = arith.subf %365, %366 : vector<96x16xf32>
    %cst_130 = arith.constant 0.000000e+00 : f32
    %368 = vector.broadcast %cst_130 : f32 to vector<96x16xf32>
    %369 = arith.maximumf %367, %368 : vector<96x16xf32>
    %370 = arith.addf %321, %369 : vector<96x16xf32>
    %371 = vector.extract_strided_slice %164 {offsets = [0, 0], sizes = [48, 16], strides = [1, 1]} : vector<96x16xf32> to vector<48x16xf32>
    %372 = vector.extract_strided_slice %164 {offsets = [48, 0], sizes = [48, 16], strides = [1, 1]} : vector<96x16xf32> to vector<48x16xf32>
    %373 = vector.extract_strided_slice %370 {offsets = [0, 0], sizes = [48, 16], strides = [1, 1]} : vector<96x16xf32> to vector<48x16xf32>
    %374 = vector.extract_strided_slice %370 {offsets = [48, 0], sizes = [48, 16], strides = [1, 1]} : vector<96x16xf32> to vector<48x16xf32>
    %375 = arith.mulf %373, %372 : vector<48x16xf32>
    %376 = vector.shape_cast %375 : vector<48x16xf32> to vector<1x48x16xf32>
    %cst_131 = arith.constant dense<0.000000e+00> : vector<1xf32>
    %377 = vector.multi_reduction <add>, %376, %cst_131 [1, 2] : vector<1x48x16xf32> to vector<1xf32>
    %378 = vector.shape_cast %377 : vector<1xf32> to vector<1x1x1xf32>
    %379 = vector.extract %378[0, 0, 0] : f32 from vector<1x1x1xf32>
    %380 = vector.broadcast %379 : f32 to vector<1x1xf32>
    %381 = vector.shape_cast %373 : vector<48x16xf32> to vector<1x48x16xf32>
    %cst_132 = arith.constant dense<0.000000e+00> : vector<1xf32>
    %382 = vector.multi_reduction <add>, %381, %cst_132 [1, 2] : vector<1x48x16xf32> to vector<1xf32>
    %383 = vector.shape_cast %382 : vector<1xf32> to vector<1x1x1xf32>
    %384 = vector.extract %383[0, 0, 0] : f32 from vector<1x1x1xf32>
    %385 = vector.broadcast %384 : f32 to vector<1x1xf32>
    %386 = arith.mulf %374, %371 : vector<48x16xf32>
    %387 = vector.shape_cast %386 : vector<48x16xf32> to vector<1x48x16xf32>
    %cst_133 = arith.constant dense<0.000000e+00> : vector<1xf32>
    %388 = vector.multi_reduction <add>, %387, %cst_133 [1, 2] : vector<1x48x16xf32> to vector<1xf32>
    %389 = vector.shape_cast %388 : vector<1xf32> to vector<1x1x1xf32>
    %390 = vector.extract %389[0, 0, 0] : f32 from vector<1x1x1xf32>
    %391 = vector.broadcast %390 : f32 to vector<1x1xf32>
    %392 = vector.shape_cast %374 : vector<48x16xf32> to vector<1x48x16xf32>
    %cst_134 = arith.constant dense<0.000000e+00> : vector<1xf32>
    %393 = vector.multi_reduction <add>, %392, %cst_134 [1, 2] : vector<1x48x16xf32> to vector<1xf32>
    %394 = vector.shape_cast %393 : vector<1xf32> to vector<1x1x1xf32>
    %395 = vector.extract %394[0, 0, 0] : f32 from vector<1x1x1xf32>
    %396 = vector.broadcast %395 : f32 to vector<1x1xf32>
    %397 = tpu.iota {dimensions = array<i32: 1>} : vector<1x8xi32>
    %cst_135 = arith.constant 0.000000e+00 : f32
    %398 = vector.broadcast %cst_135 : f32 to vector<1x8xf32>
    %c0_i32_136 = arith.constant 0 : i32
    %399 = vector.broadcast %c0_i32_136 : i32 to vector<1x8xi32>
    %400 = arith.cmpi eq, %397, %399 : vector<1x8xi32>
    %401 = vector.shape_cast %160 : vector<1x1xf32> to vector<1x1xf32>
    %402 = vector.broadcast %401 : vector<1x1xf32> to vector<1x8xf32>
    %403 = arith.select %400, %402, %398 : vector<1x8xi1>, vector<1x8xf32>
    %c1_i32_137 = arith.constant 1 : i32
    %404 = vector.broadcast %c1_i32_137 : i32 to vector<1x8xi32>
    %405 = arith.cmpi eq, %397, %404 : vector<1x8xi32>
    %406 = vector.shape_cast %162 : vector<1x1xf32> to vector<1x1xf32>
    %407 = vector.broadcast %406 : vector<1x1xf32> to vector<1x8xf32>
    %408 = arith.select %405, %407, %403 : vector<1x8xi1>, vector<1x8xf32>
    %c2_i32_138 = arith.constant 2 : i32
    %409 = vector.broadcast %c2_i32_138 : i32 to vector<1x8xi32>
    %410 = arith.cmpi eq, %397, %409 : vector<1x8xi32>
    %411 = vector.shape_cast %380 : vector<1x1xf32> to vector<1x1xf32>
    %412 = vector.broadcast %411 : vector<1x1xf32> to vector<1x8xf32>
    %413 = arith.select %410, %412, %408 : vector<1x8xi1>, vector<1x8xf32>
    %c3_i32_139 = arith.constant 3 : i32
    %414 = vector.broadcast %c3_i32_139 : i32 to vector<1x8xi32>
    %415 = arith.cmpi eq, %397, %414 : vector<1x8xi32>
    %416 = vector.shape_cast %385 : vector<1x1xf32> to vector<1x1xf32>
    %417 = vector.broadcast %416 : vector<1x1xf32> to vector<1x8xf32>
    %418 = arith.select %415, %417, %413 : vector<1x8xi1>, vector<1x8xf32>
    %c4_i32 = arith.constant 4 : i32
    %419 = vector.broadcast %c4_i32 : i32 to vector<1x8xi32>
    %420 = arith.cmpi eq, %397, %419 : vector<1x8xi32>
    %421 = vector.shape_cast %391 : vector<1x1xf32> to vector<1x1xf32>
    %422 = vector.broadcast %421 : vector<1x1xf32> to vector<1x8xf32>
    %423 = arith.select %420, %422, %418 : vector<1x8xi1>, vector<1x8xf32>
    %c5_i32 = arith.constant 5 : i32
    %424 = vector.broadcast %c5_i32 : i32 to vector<1x8xi32>
    %425 = arith.cmpi eq, %397, %424 : vector<1x8xi32>
    %426 = vector.shape_cast %396 : vector<1x1xf32> to vector<1x1xf32>
    %427 = vector.broadcast %426 : vector<1x1xf32> to vector<1x8xf32>
    %428 = arith.select %425, %427, %423 : vector<1x8xi1>, vector<1x8xf32>
    %c0_140 = arith.constant 0 : index
    %c0_141 = arith.constant 0 : index
    %c0_142 = arith.constant 0 : index
    %429 = vector.load %arg3[%c0_140, %c0_141, %c0_142] : memref<1x1x8xf32, #tpu.memory_space<vmem>>, vector<1x1x8xf32>
    %430 = vector.shape_cast %429 : vector<1x1x8xf32> to vector<1x8xf32>
    %431 = vector.shape_cast %428 : vector<1x8xf32> to vector<1x1x8xf32>
    tpu.vector_store %arg3[%c0_140, %c0_141, %c0_142], %431 {strides = array<i32>} : memref<1x1x8xf32, #tpu.memory_space<vmem>>, vector<1x1x8xf32>,
    return
  }
  func.func @transform_0(%arg0: i32) -> (i32, i32, i32, i32) {
    %c0_i32 = arith.constant 0 : i32
    %c0_i32_0 = arith.constant 0 : i32
    %c0_i32_1 = arith.constant 0 : i32
    %c0_i32_2 = arith.constant 0 : i32
    return %arg0, %c0_i32, %c0_i32_0, %c0_i32_1 : i32, i32, i32, i32
  }
  func.func @transform_1(%arg0: i32) -> (i32, i32, i32) {
    %c0_i32 = arith.constant 0 : i32
    %c0_i32_0 = arith.constant 0 : i32
    %c0_i32_1 = arith.constant 0 : i32
    return %arg0, %c0_i32, %c0_i32_0 : i32, i32, i32
  }
  func.func @transform_2(%arg0: i32) -> (i32, i32, i32) {
    %c0_i32 = arith.constant 0 : i32
    %c0_i32_0 = arith.constant 0 : i32
    %c0_i32_1 = arith.constant 0 : i32
    return %arg0, %c0_i32, %c0_i32_0 : i32, i32, i32
  }
}

</mosaic_0001>

<bundles_post_ra>
// kernel: combined_seg_loss.1
= control target key start
LH: loop header
LB: loop body
LE: loop exit
PB: predicated region body
PF: predicated region fallthrough
CT: control target
= control target key end

     0   :  { %7 = vsyncpa [#allocation3], 0  ;;  %s5648_s0 = inlined_call_operand.hbm [shape: f32[2,4,16,16], index: 0, kind: input, shape index: {}]   ;;  %s5649_s1 = inlined_call_operand.hbm [shape: s32[2,16,16], index: 1, kind: input, shape index: {}]   ;;  %s5650_s2 = inlined_call_operand.vmem [shape: f32[2,1,8], index: 2, kind: output, shape index: {}]  }
   0x1   :  { %9 = vsyncpa [#allocation3 + $0x1], 0 }
   0x2   :  { %10 = vsyncpa [#allocation5], 0 }
   0x3   :  { %12 = vsyncpa [#allocation5 + $0x1], 0  ;;  %s3075_s9 = smov 0   ;;  %s3077_s10 = smov 0  }
   0x4   :  { %s3079_s11 = smov 0   ;;  %s3081_s12 = smov 0  }
   0x5 LB: > { %s3094_s13 = sadd.s32 4294967295, %s3051_s12   ;;  %s3097_s14 = sadd.s32 1, %s3051_s12   ;;  %s3051_s12 = sphi %s3081_s12, %s6172_s12   ;;  %s3047_s11 = sphi %s3079_s11, %s6171_s11   ;;  %s3043_s10 = sphi %s3077_s10, %s6170_s10   ;;  %s3039_s9 = sphi %s3075_s9, %s6169_s9  }
   0x6   : > { %s22_s15 = ssub.s32 %s3051_s12, %s3097_s14  ;;  %s25_s16 = sadd.s32 1, %s3047_s11 }
   0x7   : > { %p23_p0 = scmp.eq.s32.totalorder %s22_s15, 0  ;;  %p32_p1 = scmp.ne.s32.totalorder %s3047_s11, %s3043_s10 }
   0x8   : > { %p33_p2 = scmp.eq.s32.totalorder %s3051_s12, 0  ;;  %p38_p3 = scmp.ne.s32.totalorder %s3043_s10, %s3039_s9 }
   0x9   : > { %s3107_s17 = scalar_select %p23_p0, %s3047_s11, %s25_s16  }
   0xa   : > { %p34_p4 = por %p33_p2, %p32_p1  ;;  %p39_p5 = scmp.eq.s32.totalorder %s3094_s13, 0 }
   0xb   : > { %p2843_p6 = scmp.lt.s32.totalorder %s3051_s12, 2  ;;  %s3116_s19 = sand.u32 1, %s3047_s11  }
   0xc   : > { %p3111_p7 = por %p39_p5, %p38_p3  ;;  %s2779_s20 = sshll.u32 %s3116_s19, 6 }
   0xd   : > { %s2806_s21 = sshll.u32 %s3051_s12, 10  ;;  %s118_s25 = scalar_lea.vmem [#allocation2], %s2779_s20 }
   0xe   : > { %s5793_s18 = scalar_select %p3111_p7, 1, 0 }
   0xf   : > { %s3123_s24 = scalar_lea.hbm %s5648_s0, %s2806_s21  ;;  %s125_s26 = sshll.u32 %s118_s25, 4  ;;  %s3125_s26 = int_to_ptr.vmem [resolvable:$true] %s125_s26 }
  0x10   : > { %p3127_p8 = pnand %p2843_p6, %p34_p4  ;;  %s115_s28 = scalar_lea.sflag [#allocation3], %s3116_s19 }
  0x11   : > { %s2953_s29 = scalar_lea.hbm %s3123_s24, 1024  ;;  %s2958_s4 = scalar_lea.hbm %s5648_s0, 2048 }
  0x12   : > { %p2954_p10 = scmp.ne.s32.totalorder %s3123_s24, %s2953_s29  ;;  %p2955_p11 = pneg %p3127_p8 }
  0x13   : > { %p2959_p0 = scmp.lt.u32.totalorder %s3123_s24, %s5648_s0  ;;  %p2960_p1 = scmp.lt.u32.totalorder %s2958_s4, %s2953_s29 }
  0x14   : > { %p2956_p12 = pnand %p2955_p11, %p2954_p10  ;;  %p2962_p3 = scmp.lt.u32.totalorder %s2953_s29, %s3123_s24 }
  0x15   : > { %p2961_p2 = por %p2960_p1, %p2959_p0 }
  0x16   : > { %p2957_p13 = pneg %p2956_p12 }
  0x17   : > { %p2963_p4 = por %p2962_p3, %p2961_p2 }
  0x19   : > { %p2964_p5 = pnand %p2963_p4, %p2957_p13 }
  0x1b   : > { %2967 = shalt.err (!%p2964_p5)
}
  0x1c   : > { %s2968_s7 = scalar_lea.vmem %s3125_s26, 1024  ;;  %s3053_s8 = smov [#allocation2]  }
  0x1d   : > { %p2969_p6 = scmp.ne.s32.totalorder %s3125_s26, %s2968_s7  ;;  %s2973_s9 = sshll.u32 %s3053_s8, 4  ;;  %s2974_s9 = int_to_ptr.vmem [resolvable:$false] %s2973_s9 }
  0x1e   : > { %s2975_s15 = scalar_lea.vmem %s2974_s9, 2048  ;;  %p2976_p9 = scmp.lt.s32.totalorder %s3125_s26, %s2974_s9 }
  0x1f   : > { %p2971_p10 = pnand %p2969_p6, %p2955_p11  ;;  %p2977_p0 = scmp.lt.s32.totalorder %s2975_s15, %s2968_s7 }
  0x21   : > { %p2972_p12 = pneg %p2971_p10  ;;  %p2978_p1 = por %p2977_p0, %p2976_p9 }
  0x23   : > { %p2979_p2 = pnand %p2978_p1, %p2972_p12 }
  0x25   : > { %2982 = shalt.err (!%p2979_p2)
}
  0x26   : > { %s3054_s16 = smov 128   ;;  %s3055_s20 = smov 8  }
  0x27   : > { %2839 = dma.hbm_to_vmem [thread:$0]  (!%p3127_p8), %s3123_s24, 1024, %s3125_s26, %s115_s28, %s3054_s16, %s3054_s16, %s3055_s20  }
  0x28   : > { %p154_p9 = scmp.lt.s32.totalorder %s3051_s12, 3  ;;  %s2782_s21 = sshll.u32 %s3116_s19, 4 }
  0x29   : > { %s2807_s22 = sshll.u32 %s3051_s12, 8  ;;  %p5795_p13 = scmp.ge.s32.totalorder %s3051_s12, 1 }
  0x2a   : > { %s3175_s30 = scalar_lea.hbm %s5649_s1, %s2807_s22  ;;  %s139_s3 = scalar_lea.vmem [#allocation4], %s2782_s21 }
  0x2b   : > { %p3168_p3 = pnand %p5795_p13, %p154_p9  ;;  %s146_s4 = sshll.u32 %s139_s3, 4  ;;  %s3177_s4 = int_to_ptr.vmem [resolvable:$true] %s146_s4 }
  0x2c   : > { %s136_s24 = scalar_lea.sflag [#allocation5], %s3116_s19  ;;  %s2983_s26 = scalar_lea.hbm %s3175_s30, 256 }
  0x2d   : > { %p2984_p4 = scmp.ne.s32.totalorder %s3175_s30, %s2983_s26  ;;  %s2988_s5 = scalar_lea.hbm %s5649_s1, 512 }
  0x2e   : > { %p2989_p10 = scmp.lt.u32.totalorder %s3175_s30, %s5649_s1  ;;  %p2990_p12 = scmp.lt.u32.totalorder %s2988_s5, %s2983_s26 }
  0x2f   : > { %p2986_p5 = pnand %p2984_p4, %p2955_p11  ;;  %p2992_p1 = scmp.lt.u32.totalorder %s2983_s26, %s3175_s30 }
  0x30   : > { %p2991_p0 = por %p2990_p12, %p2989_p10 }
  0x31   : > { %p2987_p6 = pneg %p2986_p5 }
  0x32   : > { %p2993_p2 = por %p2992_p1, %p2991_p0 }
  0x34   : > { %p2994_p9 = pnand %p2993_p2, %p2987_p6 }
  0x36   : > { %2997 = shalt.err (!%p2994_p9)
}
  0x37   : > { %s2998_s8 = scalar_lea.vmem %s3177_s4, 256  ;;  %s3056_s9 = smov [#allocation4]  }
  0x38   : > { %p2999_p13 = scmp.ne.s32.totalorder %s3177_s4, %s2998_s8  ;;  %s3003_s15 = sshll.u32 %s3056_s9, 4  ;;  %s3004_s15 = int_to_ptr.vmem [resolvable:$false] %s3003_s15 }
  0x39   : > { %s3005_s21 = scalar_lea.vmem %s3004_s15, 512  ;;  %p3006_p7 = scmp.lt.s32.totalorder %s3177_s4, %s3004_s15 }
  0x3a   : > { %p3001_p4 = pnand %p2999_p13, %p2955_p11  ;;  %p3007_p10 = scmp.lt.s32.totalorder %s3005_s21, %s2998_s8 }
  0x3c   : > { %p3002_p5 = pneg %p3001_p4  ;;  %p3008_p12 = por %p3007_p10, %p3006_p7 }
  0x3e   : > { %p3009_p0 = pnand %p3008_p12, %p3002_p5 }
  0x40   : > { %3012 = shalt.err (!%p3009_p0)
}
  0x41   : > { %2842 = dma.hbm_to_vmem [thread:$0]  (!%p3127_p8), %s3175_s30, 256, %s3177_s4, %s136_s24, %s3054_s16, %s3054_s16, %s3055_s20  }
  0x42   : > { %158 = sbr.rel (%p3168_p3) target bundleno = 1055 (0x41f), region = 28 }
  0x49   : > { %s160_s22 = sand.u32 1, %s3043_s10   ;;  %p5797_p7 = scmp.ne.s32.totalorder %s5793_s18, 0 }
  0x4a   : > { %s2786_s25 = sshll.u32 %s160_s22, 6  ;;  %s161_s29 = scalar_lea.sflag [#allocation3], %s160_s22 }
  0x4b   : > { %s3211_s3 = scalar_lea.vmem [#allocation2], %s2786_s25 }
  0x4c   : > { %3030 = dma.done.wait (%p5797_p7), %s161_s29, 1024  }
  0x4d   : > { %3032 = vsyncadd (%p5797_p7), %s161_s29, 4294966272  ;;  %s2787_s19 = sshll.u32 %s160_s22, 4  ;;  %s170_s27 = scalar_lea.sflag [#allocation5], %s160_s22 }
  0x4e   : > { %s3217_s26 = scalar_lea.vmem [#allocation4], %s2787_s19 }
  0x4f   : > { %3034 = dma.done.wait (%p5797_p7), %s170_s27, 256  }
  0x50   : > { %3036 = vsyncadd (%p5797_p7), %s170_s27, 4294967040  ;;  %v200_v0 = vld [vmem:[%s3217_s26] sm:$0xff]  ;;  %v201_v1 = vld [vmem:[%s3217_s26 + $0x8] sm:$0xff]  ;;  %v5653_v3 = vmov 0.0   ;;  %s3058_s18 = smov 1   ;;  %s3059_s16 = smov 127  }
  0x51   : > { %vm355_vm0 = vcmp.eq.s32.totalorder %v200_v0, 2  ;;  %vm356_vm1 = vcmp.eq.s32.totalorder %v201_v1, 2  ;;  %vm305_vm2 = vcmp.eq.s32.totalorder %v200_v0, 1  ;;  %v202_v2 = vld [vmem:[%s3211_s3] sm:$0xff]  ;;  %vm306_vm3 = vcmp.eq.s32.totalorder %v201_v1, 1  ;;  %v2788_v7 = vld [vmem:[%s3211_s3 + $0x10] sm:$0xff] }
  0x52   : > { %v3227_v4 = vsel %vm355_vm0, 1.0, %v5653_v3  ;;  %v3230_v5 = vsel %vm356_vm1, 1.0, %v5653_v3  ;;  %v3233_v6 = vsel %vm305_vm2, 1.0, %v5653_v3  ;;  %v203_v8 = vld [vmem:[%s3211_s3 + $0x8] sm:$0xff]  ;;  %v3240_v10 = vsel %vm306_vm3, 1.0, %v5653_v3  ;;  %v2789_v11 = vld [vmem:[%s3211_s3 + $0x18] sm:$0xff] }
  0x53   : > { %5798 = vst [vmem:[#allocation8_spill] sm:$0xff] %v3227_v4  ;;  %5799 = vst [vmem:[#allocation9_spill] sm:$0xff] %v3230_v5  ;;  %v2886_v9 = vpack.i.bf16 %v3230_v5, %v3227_v4  ;;  %vm405_vm4 = vcmp.eq.s32.totalorder %v200_v0, 3  ;;  %v2881_v12 = vpack.i.bf16 %v3240_v10, %v3233_v6  ;;  %vm406_vm5 = vcmp.eq.s32.totalorder %v201_v1, 3  ;;  %v2790_v13 = vld [vmem:[%s3211_s3 + $0x20] sm:$0xff]  ;;  %v2791_v14 = vld [vmem:[%s3211_s3 + $0x28] sm:$0xff] }
  0x54   : > { %5800 = vst [vmem:[#allocation10_spill] sm:$0xff] %v3233_v6  ;;  %5801 = vst [vmem:[#allocation11_spill] sm:$0xff] %v3240_v10  ;;  %v207_v15 = vmax.f32 %v202_v2, %v2788_v7  ;;  %v208_v16 = vmax.f32 %v203_v8, %v2789_v11  ;;  %v3250_v17 = vsel %vm405_vm4, 1.0, %v5653_v3  ;;  %v3253_v18 = vsel %vm406_vm5, 1.0, %v5653_v3  ;;  %v2792_v19 = vld [vmem:[%s3211_s3 + $0x30] sm:$0xff]  ;;  %v2793_v20 = vld [vmem:[%s3211_s3 + $0x38] sm:$0xff] }
  0x55   : > { %2887 = vrot.lane.b32.xlu0 %v2886_v9, %s3058_s18  ;;  %2882 = vrot.lane.b32.xlu1 %v2881_v12, %s3058_s18  ;;  %5802 = vst [vmem:[#allocation12_spill] sm:$0xff] %v3250_v17  ;;  %5803 = vst [vmem:[#allocation13_spill] sm:$0xff] %v3253_v18  ;;  %v2901_v23 = vpack.i.bf16 %v3253_v18, %v3250_v17  ;;  %vm484_vm7 = vcmask 1040384   ;;  %vm533_vm8 = vcmask 1046528   ;;  %vm642_vm12 = vcmask 7168   ;;  %p197_p8 = scmp.lt.s32.totalorder %s3094_s13, 1 }
  0x56   : > { %v212_v21 = vmax.f32 %v207_v15, %v2790_v13  ;;  %v213_v22 = vmax.f32 %v208_v16, %v2791_v14  ;;  %vm691_vm13 = vcmask 121856   ;;  %vm263_vm0 = vcmask 130048  }
  0x57   : > { %s6174_s13 = smov (!%p197_p8, %s3094_s13), 1 }
  0x58   : > { %v217_v24 = vmax.f32 %v212_v21, %v2792_v19  ;;  %v218_v25 = vmax.f32 %v213_v22, %v2793_v20  ;;  %s199_s21 = scalar_lea.vmem %s5650_s2, %s6174_s13 }
  0x59   : > { %2892 = vrot.lane.b32.xlu0 %v2881_v12, %s3059_s16  ;;  %2897 = vrot.lane.b32.xlu1 %v2886_v9, %s3059_s16 }
  0x5a   : > { %v3261_v26 = vsub.f32 %v202_v2, %v217_v24  ;;  %v227_v27 = vsub.f32 %v2788_v7, %v217_v24  ;;  %v235_v28 = vsub.f32 %v2790_v13, %v217_v24  ;;  %v243_v29 = vsub.f32 %v2792_v19, %v217_v24 }
  0x5b   : > { %v3263_v30 = vsub.f32 %v203_v8, %v218_v25  ;;  %v228_v31 = vsub.f32 %v2789_v11, %v218_v25  ;;  %v236_v35 = vsub.f32 %v2791_v14, %v218_v25  ;;  %v244_v37 = vsub.f32 %v2793_v20, %v218_v25 }
  0x5c   : > { %v221_v32 = vmul.f32 1.442695, %v3261_v26  ;;  %v229_v33 = vmul.f32 1.442695, %v227_v27  ;;  %v237_v34 = vmul.f32 1.442695, %v235_v28  ;;  %v5652_v8 = vlaneseq }
  0x5d   : > { %5804 = vst [vmem:[#allocation14_spill] sm:$0xff] %v3263_v30  ;;  %2902 = vrot.lane.b32.xlu0 %v2901_v23, %s3058_s18  ;;  %2907 = vrot.lane.b32.xlu1 %v2901_v23, %s3059_s16  ;;  %v245_v36 = vmul.f32 1.442695, %v243_v29  ;;  %v223_v38 = vmul.f32 1.442695, %v3263_v30 }
  0x5e   : > { %2911 = vpow2.f32 %v221_v32  ;;  %v231_v39 = vmul.f32 1.442695, %v228_v31  ;;  %v239_v40 = vmul.f32 1.442695, %v236_v35  ;;  %v247_v41 = vmul.f32 1.442695, %v244_v37 }
  0x5f   : > { %2913 = vpow2.f32 %v229_v33  ;;  %v454_v12 = vshrl.u32 %v5652_v8, 7 }
  0x60   : > { %2915 = vpow2.f32 %v237_v34 }
  0x61   : > { %2917 = vpow2.f32 %v245_v36  ;;  %v455_v15 = vadd.s32 8, %v454_v12  ;;  %vm456_vm10 = vcmp.eq.s32.totalorder %v454_v12, 0  ;;  %v549_v36 = vrot.slane %v3227_v4, 1 }
  0x62   : > { %2919 = vpow2.f32 %v223_v38  ;;  %v500_v38 = vrot.slane %v3227_v4, 7 }
  0x63   : > { %2921 = vpow2.f32 %v231_v39  ;;  %vm463_vm6 = vcmp.eq.s32.totalorder %v455_v15, 15  ;;  %v3361_v39 = vsel %vm456_vm10, 1.0, %v5653_v3 }
  0x64   : > { %2923 = vpow2.f32 %v239_v40  ;;  %v3319_v25 = vsel %vm463_vm6, 1.0, %v5653_v3  ;;  %v551_v40 = vrot.slane %v3230_v5, 1  ;;  %vm468_vm11 = vcmp.gt.f32.partialorder %v3361_v39, 0.5 }
  0x65   : > { %2925 = vpow2.f32 %v247_v41  ;;  %vm471_vm9 = vcmp.gt.f32.partialorder %v3319_v25, 0.5  ;;  %v553_v41 = vrot.slane %v3250_v17, 1 }
  0x68   : > { %v2912_v42 = vpop.eup %2911 }
  0x69   : > { %v2914_v43 = vpop.eup %2913 }
  0x6a   : > { %v2916_v44 = vpop.eup %2915  ;;  %v233_v45 = vadd.f32 %v2914_v43, %v2912_v42  ;;  %v504_v42 = vrot.slane %v3250_v17, 7  ;;  %v496_v43 = vrot.slane %v3233_v6, 7 }
  0x6b   : > { %v2918_v46 = vpop.eup %2917 }
  0x6c   : > { %v2920_v47 = vpop.eup %2919  ;;  %v241_v48 = vadd.f32 %v2916_v44, %v233_v45  ;;  %v502_v45 = vrot.slane %v3230_v5, 7 }
  0x6d   : > { %v2922_v49 = vpop.eup %2921 }
  0x6e   : > { %v2924_v50 = vpop.eup %2923  ;;  %v249_v51 = vadd.f32 %v2918_v46, %v241_v48  ;;  %v234_v52 = vadd.f32 %v2922_v49, %v2920_v47  ;;  %v555_v46 = vrot.slane %v3253_v18, 1  ;;  %v554_v48 = vsel %vm533_vm8, %v551_v40, %v553_v41 }
  0x6f   : > { %v2926_v53 = vpop.eup %2925  ;;  %v505_v49 = vsel %vm484_vm7, %v502_v45, %v504_v42 }
  0x70   : > { %2927 = vlog2.f32 %v249_v51  ;;  %v242_v54 = vadd.f32 %v2924_v50, %v234_v52  ;;  %v506_v52 = vrot.slane %v3253_v18, 7 }
  0x72   : > { %v250_v55 = vadd.f32 %v2926_v53, %v242_v54  ;;  %v503_v53 = vsel %vm484_vm7, %v500_v38, %v502_v45  ;;  %v507_v12 = vsel %vm484_vm7, %v504_v42, %v506_v52 }
  0x74   : > { %2929 = vlog2.f32 %v250_v55  ;;  %v552_v55 = vsel %vm533_vm8, %v549_v36, %v551_v40 }
  0x7a   : > { %v2928_v56 = vpop.eup %2927 }
  0x7b   : > { %v3269_v57 = vmul.f32 0.6931472, %v2928_v56  ;;  %v569_v56 = vsel %vm533_vm8, %v555_v46, 1e+30 }
  0x7c   : > { %v581_v15 = vsel %vm471_vm9, 1e+30, %v569_v56 }
  0x7d   : > { %v3272_v58 = vsub.f32 %v227_v27, %v3269_v57  ;;  %v3275_v59 = vsub.f32 %v235_v28, %v3269_v57  ;;  %v3278_v60 = vsub.f32 %v243_v29, %v3269_v57  ;;  %v545_v28 = vrot.slane %v3233_v6, 1 }
  0x7e   : > { %v2930_v61 = vpop.eup %2929 }
  0x7f   : > { %5805 = vst [vmem:[#allocation15_spill] sm:$0xff] %v3272_v58  ;;  %5806 = vst [vmem:[#allocation16_spill] sm:$0xff] %v3275_v59  ;;  %v349_v62 = vmul.f32 1.442695, %v3272_v58  ;;  %v399_v63 = vmul.f32 1.442695, %v3275_v59 }
  0x80   : > { %5807 = vst [vmem:[#allocation17_spill] sm:$0xff] %v3278_v60  ;;  %v3282_v0 = vmul.f32 0.6931472, %v2930_v61  ;;  %v449_v1 = vmul.f32 1.442695, %v3278_v60 }
  0x81   : > { %2931 = vpow2.f32 %v349_v62  ;;  %v579_v62 = vsel %vm471_vm9, 1e+30, %v554_v48 }
  0x82   : > { %v3286_v2 = vsub.f32 %v228_v31, %v3282_v0  ;;  %v3289_v7 = vsub.f32 %v244_v37, %v3282_v0  ;;  %2933 = vpow2.f32 %v399_v63  ;;  %v3295_v13 = vsub.f32 %v236_v35, %v3282_v0 }
  0x83   : > { %2935 = vpow2.f32 %v449_v1  ;;  %v547_v35 = vrot.slane %v3240_v10, 1  ;;  %v498_v37 = vrot.slane %v3240_v10, 7  ;;  %v531_v63 = vsel %vm468_vm11, 1e+30, %v505_v49 }
  0x84   : > { %5808 = vst [vmem:[#allocation18_spill] sm:$0xff] %v3286_v2  ;;  %5809 = vst [vmem:[#allocation19_spill] sm:$0xff] %v3289_v7  ;;  %v351_v9 = vmul.f32 1.442695, %v3286_v2  ;;  %v451_v11 = vmul.f32 1.442695, %v3289_v7  ;;  %v556_v1 = vsel %vm533_vm8, %v553_v41, %v555_v46  ;;  %v593_v41 = vmin.f32 %v507_v12, %v581_v15 }
  0x85   : > { %5810 = vst [vmem:[#allocation20_spill] sm:$0xff] %v3295_v13  ;;  %v401_v16 = vmul.f32 1.442695, %v3295_v13  ;;  %v550_v44 = vsel %vm533_vm8, %v547_v35, %v549_v36  ;;  %v501_v47 = vsel %vm484_vm7, %v498_v37, %v500_v38  ;;  %v499_v51 = vsel %vm484_vm7, %v496_v43, %v498_v37 }
  0x86   : > { %2937 = vpow2.f32 %v351_v9  ;;  %v577_v50 = vsel %vm471_vm9, 1e+30, %v550_v44  ;;  %v529_v54 = vsel %vm468_vm11, 1e+30, %v501_v47  ;;  %v548_v9 = vsel %vm533_vm8, %v545_v28, %v547_v35 }
  0x87   : > { %2939 = vpow2.f32 %v451_v11  ;;  %v589_v11 = vmin.f32 %v499_v51, %v577_v50  ;;  %v591_v36 = vmin.f32 %v503_v53, %v579_v62  ;;  %v592_v37 = vmin.f32 %v531_v63, %v556_v1 }
  0x88   : > { %2941 = vpow2.f32 %v401_v16 }
  0x89   : > { %v601_v45 = vmin.f32 %v3240_v10, %v589_v11  ;;  %v603_v47 = vmin.f32 %v3230_v5, %v591_v36  ;;  %v604_v48 = vmin.f32 %v3250_v17, %v592_v37 }
  0x8b   : > { %v3297_v14 = vpop.eup %2931 }
  0x8c   : > { %5811 = vst [vmem:[#allocation21_spill] sm:$0xff] %v3297_v14  ;;  %v3300_v19 = vpop.eup %2933  ;;  %606 = vrot.lane.b32.xlu0 %v3297_v14, %s3058_s18 }
  0x8d   : > { %5812 = vst [vmem:[#allocation22_spill] sm:$0xff] %v3300_v19  ;;  %610 = vrot.lane.b32.xlu1 %v3300_v19, %s3058_s18  ;;  %v3306_v20 = vpop.eup %2935 }
  0x8e   : > { %5813 = vst [vmem:[#allocation23_spill] sm:$0xff] %v3306_v20  ;;  %v5658_v23 = vrot.slane %v3306_v20, 7  ;;  %v541_v59 = vrot.slane %v3306_v20, 1 }
  0x90   : > { %v3308_v21 = vpop.eup %2937 }
  0x91   : > { %5814 = vst [vmem:[#allocation24_spill] sm:$0xff] %v3308_v21  ;;  %v3310_v22 = vpop.eup %2939  ;;  %608 = vrot.lane.b32.xlu0 %v3308_v21, %s3058_s18  ;;  %655 = vrot.lane.b32.xlu1 %v3297_v14, %s3059_s16  ;;  %v535_v3 = vrot.slane %v3308_v21, 1 }
  0x92   : > { %5815 = vst [vmem:[#allocation25_spill] sm:$0xff] %v3310_v22  ;;  %v5657_v24 = vrot.slane %v3310_v22, 1  ;;  %v494_v27 = vrot.slane %v3310_v22, 7  ;;  %v3344_v34 = vpop.eup %2941 }
  0x93   : > { %5816 = vst [vmem:[#allocation26_spill] sm:$0xff] %v3344_v34 }
  0x94   : > { %v3328_v29 = vsel %vm484_vm7, %v5658_v23, %v494_v27  ;;  %v546_v31 = vsel %vm533_vm8, %v5657_v24, %v545_v28  ;;  %v497_v61 = vsel %vm484_vm7, %v494_v27, %v496_v43 }
  0x95   : > { %657 = vrot.lane.b32.xlu0 %v3308_v21, %s3059_s16  ;;  %659 = vrot.lane.b32.xlu1 %v3300_v19, %s3059_s16  ;;  %v3338_v32 = vsel %vm471_vm9, 1e+30, %v546_v31  ;;  %v527_v27 = vsel %vm468_vm11, 1e+30, %v497_v61  ;;  %v590_v31 = vmin.f32 %v529_v54, %v552_v55  ;;  %v605_v61 = vmin.f32 %v3253_v18, %v593_v41 }
  0x96   : > { %v588_v35 = vmin.f32 %v527_v27, %v548_v9 }
  0x97   : > { %v602_v46 = vmin.f32 %v3227_v4, %v590_v31 }
  0x98   : > { %v600_v1 = vmin.f32 %v3233_v6, %v588_v35 }
  0x99   : > { %616 = vrot.lane.b32.xlu0 %v3310_v22, %s3058_s18  ;;  %665 = vrot.lane.b32.xlu1 %v3310_v22, %s3059_s16 }
  0x9d   : > { %612 = vrot.lane.b32.xlu0 %v3344_v34, %s3058_s18  ;;  %661 = vrot.lane.b32.xlu1 %v3344_v34, %s3059_s16 }
  0xa1   : > { %614 = vrot.lane.b32.xlu0 %v3306_v20, %s3058_s18  ;;  %663 = vrot.lane.b32.xlu1 %v3306_v20, %s3059_s16 }
  0xc7   : > { %v2888_v16 = vpop.permute.xlu0 %2887  ;;  %v2883_v38 = vpop.permute.xlu1 %2882 }
  0xc8   : > { %v2890_v40 = vunpack.i.h.bf16 %v2888_v16  ;;  %v2885_v43 = vunpack.i.h.bf16 %v2883_v38  ;;  %v2884_v44 = vunpack.i.l.bf16 %v2883_v38  ;;  %v2889_v28 = vunpack.i.l.bf16 %v2888_v16 }
  0xca   : > { %v650_v49 = vsel %vm642_vm12, 1e+30, %v2885_v43  ;;  %v649_v50 = vsel %vm642_vm12, 1e+30, %v2884_v44  ;;  %v652_v54 = vsel %vm642_vm12, 1e+30, %v2890_v40 }
  0xcb   : > { %v2893_v42 = vpop.permute.xlu0 %2892  ;;  %v2898_v53 = vpop.permute.xlu1 %2897  ;;  %v651_v62 = vsel %vm642_vm12, 1e+30, %v2889_v28 }
  0xcc   : > { %v2895_v51 = vunpack.i.h.bf16 %v2893_v42  ;;  %v2894_v52 = vunpack.i.l.bf16 %v2893_v42  ;;  %v2900_v55 = vunpack.i.h.bf16 %v2898_v53  ;;  %v2899_v56 = vunpack.i.l.bf16 %v2898_v53 }
  0xce   : > { %v699_v63 = vsel %vm691_vm13, %v2895_v51, 1e+30  ;;  %v698_v9 = vsel %vm691_vm13, %v2894_v52, 1e+30  ;;  %v701_v15 = vsel %vm691_vm13, %v2900_v55, 1e+30 }
  0xcf   : > { %v710_v11 = vmin.f32 %v649_v50, %v698_v9  ;;  %v711_v12 = vmin.f32 %v650_v49, %v699_v63  ;;  %v700_v16 = vsel %vm691_vm13, %v2899_v56, 1e+30  ;;  %v2903_v27 = vpop.permute.xlu0 %2902  ;;  %v713_v31 = vmin.f32 %v652_v54, %v701_v15  ;;  %v2908_v40 = vpop.permute.xlu1 %2907 }
  0xd0   : > { %v712_v36 = vmin.f32 %v651_v62, %v700_v16  ;;  %v2905_v37 = vunpack.i.h.bf16 %v2903_v27  ;;  %v2904_v38 = vunpack.i.l.bf16 %v2903_v27  ;;  %v2910_v41 = vunpack.i.h.bf16 %v2908_v40 }
  0xd1   : > { %v722_v43 = vmin.f32 %v3233_v6, %v710_v11  ;;  %v723_v44 = vmin.f32 %v3240_v10, %v711_v12  ;;  %v2909_v28 = vunpack.i.l.bf16 %v2908_v40  ;;  %v725_v35 = vmin.f32 %v3230_v5, %v713_v31 }
  0xd2   : > { %v724_v42 = vmin.f32 %v3227_v4, %v712_v36  ;;  %v654_v49 = vsel %vm642_vm12, 1e+30, %v2905_v37  ;;  %v653_v50 = vsel %vm642_vm12, 1e+30, %v2904_v38  ;;  %v703_v53 = vsel %vm691_vm13, %v2910_v41, 1e+30 }
  0xd3   : > { %v3415_v51 = vmin.f32 %v600_v1, %v722_v43  ;;  %v3417_v52 = vmin.f32 %v601_v45, %v723_v44  ;;  %v702_v54 = vsel %vm691_vm13, %v2909_v28, 1e+30  ;;  %v3421_v55 = vmin.f32 %v603_v47, %v725_v35 }
  0xd4   : > { %v3423_v56 = vmin.f32 %v602_v46, %v724_v42  ;;  %v715_v62 = vmin.f32 %v654_v49, %v703_v53  ;;  %v714_v63 = vmin.f32 %v653_v50, %v702_v54 }
  0xd5   : > { %5817 = vst [vmem:[#allocation27_spill] sm:$0xff] %v3415_v51  ;;  %5818 = vst [vmem:[#allocation28_spill] sm:$0xff] %v3417_v52  ;;  %1092 = vrot.lane.b32.xlu0 %v3417_v52, %s3058_s18  ;;  %1090 = vrot.lane.b32.xlu1 %v3415_v51, %s3058_s18  ;;  %v5656_v1 = vrot.slane %v3415_v51, 7  ;;  %v765_v45 = vrot.slane %v3417_v52, 7  ;;  %v5655_v9 = vrot.slane %v3417_v52, 1  ;;  %v817_v16 = vrot.slane %v3421_v55, 1 }
  0xd6   : > { %5819 = vst [vmem:[#allocation29_spill] sm:$0xff] %v3421_v55  ;;  %5820 = vst [vmem:[#allocation30_spill] sm:$0xff] %v3423_v56  ;;  %v727_v11 = vmin.f32 %v3253_v18, %v715_v62  ;;  %v726_v47 = vmin.f32 %v3250_v17, %v714_v63  ;;  %v815_v46 = vrot.slane %v3423_v56, 1  ;;  %v767_v12 = vrot.slane %v3423_v56, 7 }
  0xd7   : > { %v3439_v15 = vsel %vm484_vm7, %v5656_v1, %v765_v45  ;;  %v769_v28 = vrot.slane %v3421_v55, 7 }
  0xd8   : > { %v3442_v27 = vmin.f32 %v605_v61, %v727_v11  ;;  %v3444_v31 = vmin.f32 %v604_v48, %v726_v47  ;;  %v816_v36 = vsel %vm533_vm8, %v5655_v9, %v815_v46  ;;  %v768_v37 = vsel %vm484_vm7, %v765_v45, %v767_v12 }
  0xd9   : > { %1140 = vrot.lane.b32.xlu0 %v3417_v52, %s3059_s16  ;;  %1094 = vrot.lane.b32.xlu1 %v3423_v56, %s3058_s18  ;;  %v3456_v38 = vsel %vm471_vm9, 1e+30, %v816_v36  ;;  %v3459_v61 = vsel %vm533_vm8, %v815_v46, %v817_v16  ;;  %v3468_v41 = vsel %vm468_vm11, 1e+30, %v768_v37  ;;  %v3492_v11 = vsel %vm484_vm7, %v767_v12, %v769_v28 }
  0xda   : > { %5821 = vst [vmem:[#allocation31_spill] sm:$0xff] %v3442_v27  ;;  %5822 = vst [vmem:[#allocation32_spill] sm:$0xff] %v3444_v31  ;;  %v771_v40 = vrot.slane %v3444_v31, 7  ;;  %v773_v43 = vrot.slane %v3442_v27, 7  ;;  %v821_v44 = vrot.slane %v3442_v27, 1  ;;  %v819_v49 = vrot.slane %v3444_v31, 1 }
  0xdb   : > { %v843_v46 = vsel %vm471_vm9, -1e+30, %v816_v36  ;;  %v486_v45 = vrot.slane %v3308_v21, 7  ;;  %v539_v9 = vrot.slane %v3344_v34, 1 }
  0xdc   : > { %v3472_v35 = vsel %vm484_vm7, %v771_v40, %v773_v43  ;;  %v1041_v50 = vsel %vm533_vm8, %v821_v44, 1e+30  ;;  %v772_v53 = vsel %vm484_vm7, %v769_v28, %v771_v40  ;;  %v820_v62 = vsel %vm533_vm8, %v817_v16, %v819_v49 }
  0xdd   : > { %1096 = vrot.lane.b32.xlu0 %v3421_v55, %s3058_s18  ;;  %1138 = vrot.lane.b32.xlu1 %v3415_v51, %s3059_s16  ;;  %v3485_v54 = vsel %vm471_vm9, 1e+30, %v1041_v50  ;;  %v835_v63 = vsel %vm533_vm8, %v821_v44, -1e+30  ;;  %v3496_v47 = vsel %vm471_vm9, 1e+30, %v820_v62  ;;  %v3503_v16 = vsel %vm533_vm8, %v819_v49, %v821_v44 }
  0xde   : > { %v3507_v43 = vsel %vm468_vm11, 1e+30, %v772_v53  ;;  %v847_v36 = vsel %vm471_vm9, -1e+30, %v835_v63  ;;  %v855_v28 = vmax.f32 %v3439_v15, %v843_v46  ;;  %v796_v63 = vsel %vm468_vm11, -1e+30, %v768_v37 }
  0xdf   : > { %v859_v44 = vmax.f32 %v3472_v35, %v847_v36  ;;  %v856_v46 = vmax.f32 %v796_v63, %v3459_v61  ;;  %v534_v63 = vrot.slane %v3297_v14, 1  ;;  %v798_v12 = vsel %vm468_vm11, -1e+30, %v772_v53 }
  0xe0   : > { %v3524_v49 = vmax.f32 %v3417_v52, %v855_v28  ;;  %v845_v28 = vsel %vm471_vm9, -1e+30, %v820_v62  ;;  %v537_v62 = vrot.slane %v3300_v19, 1  ;;  %v858_v1 = vmax.f32 %v798_v12, %v3503_v16 }
  0xe1   : > { %1098 = vrot.lane.b32.xlu0 %v3444_v31, %s3058_s18  ;;  %1142 = vrot.lane.b32.xlu1 %v3423_v56, %s3059_s16  ;;  %v3531_v50 = vmax.f32 %v3442_v27, %v859_v44  ;;  %v3543_v36 = vmax.f32 %v3423_v56, %v856_v46  ;;  %v857_v37 = vmax.f32 %v3492_v11, %v845_v28  ;;  %v485_v44 = vrot.slane %v3297_v14, 7 }
  0xe2   : > { %5823 = vst [vmem:[#allocation33_spill] sm:$0xff] %v3524_v49  ;;  %v488_v28 = vrot.slane %v3300_v19, 7  ;;  %v536_v42 = vsel %vm533_vm8, %v534_v63, %v535_v3  ;;  %v538_v48 = vsel %vm533_vm8, %v535_v3, %v537_v62  ;;  %v540_v12 = vsel %vm533_vm8, %v537_v62, %v539_v9 }
  0xe3   : > { %5824 = vst [vmem:[#allocation34_spill] sm:$0xff] %v3531_v50  ;;  %5825 = vst [vmem:[#allocation35_spill] sm:$0xff] %v3543_v36  ;;  %v3555_v8 = vmax.f32 %v3421_v55, %v857_v37  ;;  %v520_v46 = vsel %vm484_vm7, 1e+30, %v485_v44  ;;  %v487_v23 = vsel %vm484_vm7, %v485_v44, %v486_v45  ;;  %v3583_v60 = vmax.f32 %v3444_v31, %v858_v1 }
  0xe4   : > { %v521_v37 = vsel %vm468_vm11, 1e+30, %v520_v46  ;;  %v489_v24 = vsel %vm484_vm7, %v486_v45, %v488_v28  ;;  %v571_v46 = vsel %vm471_vm9, 1e+30, %v538_v48  ;;  %v490_v1 = vrot.slane %v3344_v34, 7 }
  0xe5   : > { %1100 = vrot.lane.b32.xlu0 %v3442_v27, %s3058_s18  ;;  %1144 = vrot.lane.b32.xlu1 %v3421_v55, %s3059_s16  ;;  %5826 = vst [vmem:[#allocation36_spill] sm:$0xff] %v3555_v8  ;;  %v582_v53 = vmin.f32 %v521_v37, %v536_v42  ;;  %v523_v3 = vsel %vm468_vm11, 1e+30, %v489_v24  ;;  %5827 = vst [vmem:[#allocation37_spill] sm:$0xff] %v3583_v60  ;;  %v583_v45 = vmin.f32 %v487_v23, %v571_v46 }
  0xe6   : > { %v584_v24 = vmin.f32 %v523_v3, %v540_v12  ;;  %v542_v23 = vsel %vm533_vm8, %v539_v9, %v541_v59 }
  0xe7   : > { %v595_v46 = vmin.f32 %v3308_v21, %v583_v45  ;;  %v573_v9 = vsel %vm471_vm9, 1e+30, %v542_v23 }
  0xe9   : > { %1146 = vrot.lane.b32.xlu1 %v3444_v31, %s3059_s16  ;;  %898 = vrot.lane.b32.xlu0 %v3524_v49, %s3058_s18 }
  0xed   : > { %1148 = vrot.lane.b32.xlu1 %v3442_v27, %s3059_s16  ;;  %906 = vrot.lane.b32.xlu0 %v3531_v50, %s3058_s18 }
  0xf1   : > { %946 = vrot.lane.b32.xlu1 %v3524_v49, %s3059_s16 }
  0xf5   : > { %900 = vrot.lane.b32.xlu1 %v3543_v36, %s3058_s18 }
  0xf9   : > { %948 = vrot.lane.b32.xlu1 %v3543_v36, %s3059_s16 }
  0xfd   : > { %902 = vrot.lane.b32.xlu1 %v3555_v8, %s3058_s18 }
  0xfe   : > { %v607_v40 = vpop.permute.xlu0 %606 }
  0xff   : > { %v611_v33 = vpop.permute.xlu1 %610  ;;  %v643_v63 = vsel %vm642_vm12, 1e+30, %v607_v40  ;;  %v594_v40 = vmin.f32 %v3297_v14, %v582_v53 }
 0x100   : > { %v645_v62 = vsel %vm642_vm12, 1e+30, %v611_v33  ;;  %v596_v33 = vmin.f32 %v3300_v19, %v584_v24  ;;  %v5831_v24 = vrot.slane %v3310_v22, 1 }
 0x101   : > { %950 = vrot.lane.b32.xlu1 %v3555_v8, %s3059_s16 }
 0x103   : > { %v609_v7 = vpop.permute.xlu0 %608  ;;  %v656_v13 = vpop.permute.xlu1 %655 }
 0x104   : > { %v692_v42 = vsel %vm691_vm13, %v656_v13, 1e+30  ;;  %v644_v48 = vsel %vm642_vm12, 1e+30, %v609_v7 }
 0x105   : > { %904 = vrot.lane.b32.xlu1 %v3583_v60, %s3058_s18  ;;  %v704_v44 = vmin.f32 %v643_v63, %v692_v42  ;;  %v491_v42 = vsel %vm484_vm7, %v488_v28, %v490_v1 }
 0x107   : > { %v658_v37 = vpop.permute.xlu0 %657  ;;  %v716_v2 = vmin.f32 %v3297_v14, %v704_v44  ;;  %v660_v13 = vpop.permute.xlu1 %659 }
 0x108   : > { %v693_v58 = vsel %vm691_vm13, %v658_v37, 1e+30  ;;  %v694_v7 = vsel %vm691_vm13, %v660_v13, 1e+30 }
 0x109   : > { %v705_v6 = vmin.f32 %v644_v48, %v693_v58  ;;  %952 = vrot.lane.b32.xlu1 %v3583_v60, %s3059_s16  ;;  %v3600_v53 = vmin.f32 %v594_v40, %v716_v2  ;;  %v706_v63 = vmin.f32 %v645_v62, %v694_v7  ;;  %v5829_v2 = vrot.slane %v3306_v20, 7 }
 0x10a   : > { %v544_v62 = vsel %vm533_vm8, %v541_v59, %v5831_v24  ;;  %v585_v7 = vmin.f32 %v491_v42, %v573_v9  ;;  %v5833_v9 = vmin.f32 %v3328_v29, %v3338_v32 }
 0x10b   : > { %5828 = vst [vmem:[#allocation38_spill] sm:$0xff] %v3600_v53  ;;  %v717_v3 = vmin.f32 %v3308_v21, %v705_v6  ;;  %v617_v12 = vpop.permute.xlu0 %616  ;;  %v718_v58 = vmin.f32 %v3300_v19, %v706_v63  ;;  %v666_v48 = vpop.permute.xlu1 %665  ;;  %1078 = vrot.lane.b32.xlu0 %v3600_v53, %s3058_s18  ;;  %v493_v40 = vsel %vm484_vm7, %v490_v1, %v5829_v2  ;;  %v752_v6 = vrot.slane %v3600_v53, 7 }
 0x10c   : > { %v648_v45 = vsel %vm642_vm12, 1e+30, %v617_v12  ;;  %v697_v28 = vsel %vm691_vm13, %v666_v48, 1e+30  ;;  %v800_v37 = vrot.slane %v3600_v53, 1 }
 0x10d   : > { %v3615_v44 = vmin.f32 %v595_v46, %v717_v3  ;;  %954 = vrot.lane.b32.xlu1 %v3531_v50, %s3059_s16  ;;  %v3624_v13 = vmin.f32 %v596_v33, %v718_v58  ;;  %v709_v23 = vmin.f32 %v648_v45, %v697_v28  ;;  %v1028_v1 = vsel %vm484_vm7, 1e+30, %v752_v6 }
 0x10e   : > { %v525_v46 = vsel %vm468_vm11, 1e+30, %v493_v40  ;;  %v3632_v12 = vsel %vm468_vm11, 1e+30, %v1028_v1  ;;  %v599_v58 = vmin.f32 %v3310_v22, %v5833_v9  ;;  %v597_v28 = vmin.f32 %v3344_v34, %v585_v7 }
 0x10f   : > { %5830 = vst [vmem:[#allocation39_spill] sm:$0xff] %v3615_v44  ;;  %5832 = vst [vmem:[#allocation40_spill] sm:$0xff] %v3624_v13  ;;  %v613_v63 = vpop.permute.xlu0 %612  ;;  %v801_v3 = vrot.slane %v3615_v44, 1  ;;  %v753_v59 = vrot.slane %v3615_v44, 7  ;;  %v662_v33 = vpop.permute.xlu1 %661  ;;  %1082 = vrot.lane.b32.xlu0 %v3624_v13, %s3058_s18  ;;  %v803_v42 = vrot.slane %v3624_v13, 1  ;;  %v721_v45 = vmin.f32 %v3310_v22, %v709_v23 }
 0x110   : > { %v646_v48 = vsel %vm642_vm12, 1e+30, %v613_v63  ;;  %v695_v2 = vsel %vm691_vm13, %v662_v33, 1e+30  ;;  %v586_v1 = vmin.f32 %v525_v46, %v544_v62  ;;  %v755_v33 = vrot.slane %v3624_v13, 7 }
 0x111   : > { %1080 = vrot.lane.b32.xlu1 %v3615_v44, %s3058_s18  ;;  %v3648_v40 = vsel %vm533_vm8, %v800_v37, %v801_v3  ;;  %v707_v24 = vmin.f32 %v646_v48, %v695_v2  ;;  %v3654_v32 = vsel %vm484_vm7, %v752_v6, %v753_v59  ;;  %v804_v23 = vsel %vm533_vm8, %v801_v3, %v803_v42 }
 0x112   : > { %v3662_v62 = vmin.f32 %v599_v58, %v721_v45  ;;  %v3669_v46 = vsel %vm471_vm9, 1e+30, %v804_v23  ;;  %v598_v48 = vmin.f32 %v3306_v20, %v586_v1  ;;  %v756_v58 = vsel %vm484_vm7, %v753_v59, %v755_v33 }
 0x113   : > { %v615_v29 = vpop.permute.xlu0 %614  ;;  %v719_v9 = vmin.f32 %v3344_v34, %v707_v24  ;;  %v664_v22 = vpop.permute.xlu1 %663  ;;  %1128 = vrot.lane.b32.xlu0 %v3615_v44, %s3059_s16  ;;  %v3691_v59 = vsel %vm468_vm11, 1e+30, %v756_v58 }
 0x114   : > { %v647_v37 = vsel %vm642_vm12, 1e+30, %v615_v29  ;;  %5834 = vst [vmem:[#allocation41_spill] sm:$0xff] %v3662_v62  ;;  %v696_v7 = vsel %vm691_vm13, %v664_v22, 1e+30 }
 0x115   : > { %1126 = vrot.lane.b32.xlu1 %v3600_v53, %s3059_s16  ;;  %v3671_v3 = vmin.f32 %v597_v28, %v719_v9  ;;  %v708_v2 = vmin.f32 %v647_v37, %v696_v7  ;;  %v809_v28 = vrot.slane %v3662_v62, 1  ;;  %v787_v9 = vsel %vm484_vm7, -1e+30, %v752_v6 }
 0x116   : > { %v811_v7 = vrot.slane %v3415_v51, 1  ;;  %v788_v34 = vsel %vm468_vm11, -1e+30, %v787_v9 }
 0x117   : > { %5835 = vst [vmem:[#allocation42_spill] sm:$0xff] %v3671_v3  ;;  %v720_v45 = vmin.f32 %v3306_v20, %v708_v2  ;;  %1088 = vrot.lane.b32.xlu0 %v3662_v62, %s3058_s18  ;;  %v805_v22 = vrot.slane %v3671_v3, 1  ;;  %v757_v2 = vrot.slane %v3671_v3, 7 }
 0x118   : > { %v812_v6 = vsel %vm533_vm8, %v809_v28, %v811_v7 }
 0x119   : > { %1130 = vrot.lane.b32.xlu1 %v3624_v13, %s3059_s16  ;;  %v3684_v29 = vmin.f32 %v598_v48, %v720_v45  ;;  %v3687_v1 = vsel %vm533_vm8, %v803_v42, %v805_v22  ;;  %v837_v42 = vsel %vm471_vm9, -1e+30, %v804_v23  ;;  %v761_v48 = vrot.slane %v3662_v62, 7 }
 0x11a   : > { %v849_v19 = vmax.f32 %v3654_v32, %v837_v42  ;;  %v3720_v21 = vsel %vm484_vm7, %v755_v33, %v757_v2  ;;  %v5837_v33 = vrot.slane %v3415_v51, 7 }
 0x11b   : > { %5836 = vst [vmem:[#allocation43_spill] sm:$0xff] %v3684_v29  ;;  %1136 = vrot.lane.b32.xlu0 %v3662_v62, %s3059_s16  ;;  %v807_v45 = vrot.slane %v3684_v29, 1  ;;  %v759_v63 = vrot.slane %v3684_v29, 7 }
 0x11c   : > { %v764_v9 = vsel %vm484_vm7, %v761_v48, %v5837_v33  ;;  %v5840_v33 = vrot.slane %v3417_v52, 1 }
 0x11d   : > { %1132 = vrot.lane.b32.xlu1 %v3671_v3, %s3059_s16  ;;  %v808_v37 = vsel %vm533_vm8, %v805_v22, %v807_v45  ;;  %v760_v24 = vsel %vm484_vm7, %v757_v2, %v759_v63  ;;  %v3711_v20 = vsel %vm533_vm8, %v807_v45, %v809_v28  ;;  %v3714_v23 = vsel %vm484_vm7, %v759_v63, %v761_v48 }
 0x11e   : > { %v3724_v14 = vsel %vm471_vm9, 1e+30, %v808_v37  ;;  %v3732_v63 = vsel %vm468_vm11, 1e+30, %v760_v24  ;;  %v3736_v28 = vsel %vm471_vm9, 1e+30, %v812_v6  ;;  %v848_v45 = vmax.f32 %v788_v34, %v3648_v40 }
 0x11f   : > { %1084 = vrot.lane.b32.xlu0 %v3671_v3, %s3058_s18  ;;  %v3749_v22 = vmax.f32 %v3615_v44, %v849_v19  ;;  %v794_v18 = vsel %vm468_vm11, -1e+30, %v764_v9  ;;  %v814_v2 = vsel %vm533_vm8, %v811_v7, %v5840_v33  ;;  %v790_v19 = vsel %vm468_vm11, -1e+30, %v756_v58 }
 0x120   : > { %v3758_v48 = vmax.f32 %v3600_v53, %v848_v45  ;;  %v854_v34 = vmax.f32 %v794_v18, %v814_v2  ;;  %v850_v42 = vmax.f32 %v790_v19, %v3687_v1  ;;  %v839_v7 = vsel %vm471_vm9, -1e+30, %v808_v37 }
 0x121   : > { %1134 = vrot.lane.b32.xlu1 %v3684_v29, %s3059_s16  ;;  %5838 = vst [vmem:[#allocation44_spill] sm:$0xff] %v3749_v22  ;;  %v851_v58 = vmax.f32 %v3720_v21, %v839_v7 }
 0x122   : > { %5839 = vst [vmem:[#allocation45_spill] sm:$0xff] %v3758_v48  ;;  %v3771_v17 = vmax.f32 %v3415_v51, %v854_v34  ;;  %v3778_v18 = vmax.f32 %v3624_v13, %v850_v42  ;;  %v792_v42 = vsel %vm468_vm11, -1e+30, %v760_v24  ;;  %v841_v34 = vsel %vm471_vm9, -1e+30, %v812_v6 }
 0x123   : > { %1086 = vrot.lane.b32.xlu0 %v3684_v29, %s3058_s18  ;;  %v3790_v45 = vmax.f32 %v3671_v3, %v851_v58  ;;  %v852_v37 = vmax.f32 %v792_v42, %v3711_v20  ;;  %v853_v19 = vmax.f32 %v3714_v23, %v841_v34 }
 0x124   : > { %5841 = vst [vmem:[#allocation46_spill] sm:$0xff] %v3771_v17  ;;  %5842 = vst [vmem:[#allocation47_spill] sm:$0xff] %v3778_v18 }
 0x125   : > { %886 = vrot.lane.b32.xlu1 %v3749_v22, %s3058_s18  ;;  %5843 = vst [vmem:[#allocation48_spill] sm:$0xff] %v3790_v45  ;;  %v3800_v33 = vmax.f32 %v3684_v29, %v852_v37  ;;  %v3810_v24 = vmax.f32 %v3662_v62, %v853_v19 }
 0x127   : > { %884 = vrot.lane.b32.xlu0 %v3758_v48, %s3058_s18  ;;  %5844 = vst [vmem:[#allocation49_spill] sm:$0xff] %v3800_v33  ;;  %5845 = vst [vmem:[#allocation50_spill] sm:$0xff] %v3810_v24 }
 0x129   : > { %934 = vrot.lane.b32.xlu1 %v3749_v22, %s3059_s16 }
 0x12b   : > { %932 = vrot.lane.b32.xlu0 %v3758_v48, %s3059_s16 }
 0x12d   : > { %896 = vrot.lane.b32.xlu1 %v3771_v17, %s3058_s18 }
 0x12f   : > { %888 = vrot.lane.b32.xlu0 %v3778_v18, %s3058_s18 }
 0x131   : > { %936 = vrot.lane.b32.xlu1 %v3778_v18, %s3059_s16  ;;  %v5846_v18 = vmin.f32 %v3439_v15, %v3456_v38 }
 0x133   : > { %944 = vrot.lane.b32.xlu0 %v3771_v17, %s3059_s16  ;;  %v1073_v17 = vmin.f32 %v3417_v52, %v5846_v18 }
 0x137   : > { %890 = vrot.lane.b32.xlu0 %v3790_v45, %s3058_s18 }
 0x13b   : > { %938 = vrot.lane.b32.xlu0 %v3790_v45, %s3059_s16  ;;  %v1035_v45 = vsel %vm468_vm11, 1e+30, %v764_v9 }
 0x13c   : > { %v1060_v19 = vmin.f32 %v1035_v45, %v814_v2 }
 0x13f   : > { %892 = vrot.lane.b32.xlu0 %v3800_v33, %s3058_s18 }
 0x143   : > { %940 = vrot.lane.b32.xlu0 %v3800_v33, %s3059_s16 }
 0x147   : > { %v1093_v7 = vpop.permute.xlu0 %1092  ;;  %v1091_v58 = vpop.permute.xlu1 %1090  ;;  %894 = vrot.lane.b32.xlu0 %v3810_v24, %s3058_s18 }
 0x148   : > { %v1121_v6 = vsel %vm642_vm12, 1e+30, %v1093_v7  ;;  %v1120_v10 = vsel %vm642_vm12, 1e+30, %v1091_v58 }
 0x14b   : > { %v1141_v42 = vpop.permute.xlu0 %1140  ;;  %v1095_v37 = vpop.permute.xlu1 %1094  ;;  %942 = vrot.lane.b32.xlu0 %v3810_v24, %s3059_s16 }
 0x14c   : > { %v1169_v34 = vsel %vm691_vm13, %v1141_v42, 1e+30  ;;  %v1072_v42 = vmin.f32 %v3415_v51, %v1060_v19  ;;  %v1122_v15 = vsel %vm642_vm12, 1e+30, %v1095_v37 }
 0x14d   : > { %v1181_v33 = vmin.f32 %v1121_v6, %v1169_v34 }
 0x14f   : > { %v1193_v5 = vmin.f32 %v3417_v52, %v1181_v33  ;;  %v1139_v4 = vpop.permute.xlu1 %1138  ;;  %v1097_v24 = vpop.permute.xlu0 %1096 }
 0x150   : > { %v1168_v9 = vsel %vm691_vm13, %v1139_v4, 1e+30  ;;  %v1123_v37 = vsel %vm642_vm12, 1e+30, %v1097_v24 }
 0x151   : > { %v3827_v22 = vmin.f32 %v1073_v17, %v1193_v5  ;;  %v1180_v7 = vmin.f32 %v1120_v10, %v1168_v9  ;;  %v5849_v5 = vmin.f32 %v3468_v41, %v3459_v61  ;;  %v5851_v41 = vmin.f32 %v3492_v11, %v3496_v47 }
 0x153   : > { %5847 = vst [vmem:[#allocation51_spill] sm:$0xff] %v3827_v22  ;;  %v1192_v2 = vmin.f32 %v3415_v51, %v1180_v7  ;;  %v1143_v45 = vpop.permute.xlu1 %1142  ;;  %1610 = vrot.lane.b32.xlu0 %v3827_v22, %s3058_s18  ;;  %v1099_v4 = vpop.permute.xlu0 %1098  ;;  %v1074_v10 = vmin.f32 %v3423_v56, %v5849_v5  ;;  %v1075_v9 = vmin.f32 %v3421_v55, %v5851_v41  ;;  %v5695_v24 = vrot.slane %v3827_v22, 1 }
 0x154   : > { %v1170_v38 = vsel %vm691_vm13, %v1143_v45, 1e+30  ;;  %v1124_v61 = vsel %vm642_vm12, 1e+30, %v1099_v4  ;;  %v1235_v11 = vrot.slane %v3827_v22, 7 }
 0x155   : > { %v3835_v18 = vmin.f32 %v1072_v42, %v1192_v2  ;;  %v1182_v33 = vmin.f32 %v1122_v15, %v1170_v38 }
 0x157   : > { %5848 = vst [vmem:[#allocation52_spill] sm:$0xff] %v3835_v18  ;;  %v1194_v17 = vmin.f32 %v3423_v56, %v1182_v33  ;;  %v1145_v58 = vpop.permute.xlu1 %1144  ;;  %1658 = vrot.lane.b32.xlu0 %v3827_v22, %s3059_s16  ;;  %1608 = vrot.lane.b32.xlu1 %v3835_v18, %s3058_s18  ;;  %v5696_v7 = vrot.slane %v3835_v18, 7  ;;  %v1101_v47 = vpop.permute.xlu0 %1100 }
 0x158   : > { %v1171_v6 = vsel %vm691_vm13, %v1145_v58, 1e+30 }
 0x159   : > { %v3848_v34 = vmin.f32 %v1074_v10, %v1194_v17  ;;  %v1183_v19 = vmin.f32 %v1123_v37, %v1171_v6  ;;  %v1125_v10 = vsel %vm642_vm12, 1e+30, %v1101_v47  ;;  %v3873_v17 = vsel %vm484_vm7, %v5696_v7, %v1235_v11 }
 0x15a   : > { %v5853_v6 = vmin.f32 %v3507_v43, %v3503_v16 }
 0x15b   : > { %5850 = vst [vmem:[#allocation53_spill] sm:$0xff] %v3848_v34  ;;  %v1195_v42 = vmin.f32 %v3421_v55, %v1183_v19  ;;  %v1147_v2 = vpop.permute.xlu1 %1146  ;;  %1612 = vrot.lane.b32.xlu1 %v3848_v34, %s3058_s18  ;;  %v1285_v45 = vrot.slane %v3848_v34, 1  ;;  %v1237_v15 = vrot.slane %v3848_v34, 7 }
 0x15c   : > { %v1172_v38 = vsel %vm691_vm13, %v1147_v2, 1e+30  ;;  %v1076_v19 = vmin.f32 %v3444_v31, %v5853_v6  ;;  %v5855_v6 = vmin.f32 %v3472_v35, %v3485_v54 }
 0x15d   : > { %v3864_v33 = vmin.f32 %v1075_v9, %v1195_v42  ;;  %v1184_v4 = vmin.f32 %v1124_v61, %v1172_v38  ;;  %v1286_v5 = vsel %vm533_vm8, %v5695_v24, %v1285_v45  ;;  %v1238_v37 = vsel %vm484_vm7, %v1235_v11, %v1237_v15 }
 0x15e   : > { %v3877_v58 = vsel %vm471_vm9, 1e+30, %v1286_v5  ;;  %v3900_v11 = vsel %vm468_vm11, 1e+30, %v1238_v37  ;;  %v1313_v47 = vsel %vm471_vm9, -1e+30, %v1286_v5 }
 0x15f   : > { %5852 = vst [vmem:[#allocation54_spill] sm:$0xff] %v3864_v33  ;;  %v1196_v61 = vmin.f32 %v3444_v31, %v1184_v4  ;;  %v1149_v41 = vpop.permute.xlu1 %1148  ;;  %1614 = vrot.lane.b32.xlu0 %v3864_v33, %s3058_s18  ;;  %1656 = vrot.lane.b32.xlu1 %v3835_v18, %s3059_s16  ;;  %v1287_v42 = vrot.slane %v3864_v33, 1  ;;  %v1325_v35 = vmax.f32 %v3873_v17, %v1313_v47 }
 0x160   : > { %v1173_v2 = vsel %vm691_vm13, %v1149_v41, 1e+30 }
 0x161   : > { %v3893_v38 = vmin.f32 %v1076_v19, %v1196_v61  ;;  %v1185_v16 = vmin.f32 %v1125_v10, %v1173_v2  ;;  %v3896_v43 = vsel %vm533_vm8, %v1285_v45, %v1287_v42  ;;  %v1077_v19 = vmin.f32 %v3442_v27, %v5855_v6 }
 0x162   : > { %v1239_v45 = vrot.slane %v3864_v33, 7  ;;  %v3943_v9 = vmax.f32 %v3827_v22, %v1325_v35 }
 0x163   : > { %5854 = vst [vmem:[#allocation55_spill] sm:$0xff] %v3893_v38  ;;  %v1197_v10 = vmin.f32 %v3442_v27, %v1185_v16  ;;  %v3911_v61 = vpop.permute.xlu1 %946  ;;  %1616 = vrot.lane.b32.xlu0 %v3893_v38, %s3058_s18  ;;  %1660 = vrot.lane.b32.xlu1 %v3848_v34, %s3059_s16  ;;  %v1289_v5 = vrot.slane %v3893_v38, 1  ;;  %v1241_v41 = vrot.slane %v3893_v38, 7 }
 0x164   : > { %v3937_v47 = vsel %vm484_vm7, %v1237_v15, %v1239_v45  ;;  %5858 = vst [vmem:[#allocation58_spill] sm:$0xff] %v3943_v9  ;;  %v975_v39 = vsel %vm691_vm13, %v3911_v61, -1e+30  ;;  %v5990_v61 = vld [vmem:[#allocation14_spill] sm:$0xff] }
 0x165   : > { %v3920_v2 = vmin.f32 %v1077_v19, %v1197_v10  ;;  %v1290_v54 = vsel %vm533_vm8, %v1287_v42, %v1289_v5  ;;  %v1242_v10 = vsel %vm484_vm7, %v1239_v45, %v1241_v41 }
 0x166   : > { %v3926_v16 = vsel %vm471_vm9, 1e+30, %v1290_v54  ;;  %v1315_v31 = vsel %vm471_vm9, -1e+30, %v1290_v54  ;;  %v1268_v54 = vsel %vm468_vm11, -1e+30, %v1242_v10 }
 0x167   : > { %5856 = vst [vmem:[#allocation56_spill] sm:$0xff] %v3920_v2  ;;  %v3928_v6 = vpop.permute.xlu1 %900  ;;  %1618 = vrot.lane.b32.xlu0 %v3920_v2, %s3058_s18  ;;  %1662 = vrot.lane.b32.xlu1 %v3864_v33, %s3059_s16  ;;  %v1243_v4 = vrot.slane %v3920_v2, 7  ;;  %v1291_v19 = vrot.slane %v3920_v2, 1 }
 0x168   : > { %5857 = vst [vmem:[#allocation57_spill] sm:$0xff] %v3928_v6 }
 0x169   : > { %v3946_v24 = vsel %vm484_vm7, %v1241_v41, %v1243_v4  ;;  %v1305_v7 = vsel %vm533_vm8, %v1291_v19, -1e+30  ;;  %v1559_v51 = vsel %vm533_vm8, %v1291_v19, 1e+30  ;;  %v3957_v42 = vsel %vm533_vm8, %v1289_v5, %v1291_v19  ;;  %v3993_v5 = vpop.permute.xlu0 %898 }
 0x16a   : > { %v1317_v27 = vsel %vm471_vm9, -1e+30, %v1305_v7  ;;  %v3954_v15 = vsel %vm471_vm9, 1e+30, %v1559_v51  ;;  %v3970_v51 = vsel %vm468_vm11, 1e+30, %v1242_v10 }
 0x16b   : > { %v3959_v45 = vpop.permute.xlu1 %948  ;;  %1368 = vrot.lane.b32.xlu0 %v3943_v9, %s3058_s18  ;;  %1664 = vrot.lane.b32.xlu1 %v3893_v38, %s3059_s16  ;;  %v1329_v4 = vmax.f32 %v3946_v24, %v1317_v27  ;;  %v1266_v27 = vsel %vm468_vm11, -1e+30, %v1238_v37  ;;  %v1327_v37 = vmax.f32 %v3937_v47, %v1315_v31  ;;  %v1328_v31 = vmax.f32 %v1268_v54, %v3957_v42 }
 0x16c   : > { %v1326_v19 = vmax.f32 %v1266_v27, %v3896_v43 }
 0x16d   : > { %v3975_v41 = vmax.f32 %v3920_v2, %v1329_v4  ;;  %v4002_v27 = vpop.permute.xlu0 %906 }
 0x16e   : > { %v3991_v4 = vmax.f32 %v3848_v34, %v1326_v19  ;;  %v4009_v19 = vmax.f32 %v3864_v33, %v1327_v37  ;;  %v4022_v37 = vmax.f32 %v3893_v38, %v1328_v31 }
 0x16f   : > { %5859 = vst [vmem:[#allocation59_spill] sm:$0xff] %v3975_v41  ;;  %v3977_v35 = vpop.permute.xlu1 %902  ;;  %1376 = vrot.lane.b32.xlu0 %v3975_v41, %s3058_s18  ;;  %1666 = vrot.lane.b32.xlu1 %v3920_v2, %s3059_s16 }
 0x170   : > { %5860 = vst [vmem:[#allocation60_spill] sm:$0xff] %v3977_v35  ;;  %5861 = vst [vmem:[#allocation61_spill] sm:$0xff] %v3991_v4 }
 0x171   : > { %5863 = vst [vmem:[#allocation63_spill] sm:$0xff] %v4009_v19  ;;  %5865 = vst [vmem:[#allocation65_spill] sm:$0xff] %v4022_v37 }
 0x173   : > { %v3986_v7 = vpop.permute.xlu1 %950  ;;  %1416 = vrot.lane.b32.xlu1 %v3943_v9, %s3059_s16 }
 0x177   : > { %v3997_v55 = vpop.permute.xlu1 %904  ;;  %1370 = vrot.lane.b32.xlu1 %v3991_v4, %s3058_s18 }
 0x178   : > { %5862 = vst [vmem:[#allocation62_spill] sm:$0xff] %v3997_v55 }
 0x17b   : > { %v4004_v56 = vpop.permute.xlu1 %952  ;;  %1418 = vrot.lane.b32.xlu1 %v3991_v4, %s3059_s16 }
 0x17d   : > { %v1079_v52 = vpop.permute.xlu0 %1078 }
 0x17e   : > { %v1114_v10 = vsel %vm642_vm12, 1e+30, %v1079_v52 }
 0x17f   : > { %v4011_v9 = vpop.permute.xlu1 %954  ;;  %1372 = vrot.lane.b32.xlu1 %v4009_v19, %s3058_s18 }
 0x180   : > { %5864 = vst [vmem:[#allocation64_spill] sm:$0xff] %v4011_v9 }
 0x181   : > { %v1083_v48 = vpop.permute.xlu0 %1082 }
 0x183   : > { %v1081_v50 = vpop.permute.xlu1 %1080  ;;  %1420 = vrot.lane.b32.xlu1 %v4009_v19, %s3059_s16  ;;  %v5866_v19 = vmin.f32 %v3654_v32, %v3669_v46 }
 0x184   : > { %v1115_v4 = vsel %vm642_vm12, 1e+30, %v1081_v50 }
 0x185   : > { %v1129_v60 = vpop.permute.xlu0 %1128  ;;  %v1067_v50 = vmin.f32 %v3615_v44, %v5866_v19 }
 0x186   : > { %v1163_v8 = vsel %vm691_vm13, %v1129_v60, 1e+30  ;;  %v5867_v60 = vmin.f32 %v3632_v12, %v3648_v40  ;;  %v5870_v40 = vmin.f32 %v3691_v59, %v3687_v1 }
 0x187   : > { %v1127_v36 = vpop.permute.xlu1 %1126  ;;  %1374 = vrot.lane.b32.xlu1 %v4022_v37, %s3058_s18  ;;  %v1175_v54 = vmin.f32 %v1115_v4, %v1163_v8  ;;  %v1116_v8 = vsel %vm642_vm12, 1e+30, %v1083_v48 }
 0x188   : > { %v1162_v49 = vsel %vm691_vm13, %v1127_v36, 1e+30  ;;  %v1066_v35 = vmin.f32 %v3600_v53, %v5867_v60 }
 0x189   : > { %v1174_v9 = vmin.f32 %v1114_v10, %v1162_v49  ;;  %v1187_v31 = vmin.f32 %v3615_v44, %v1175_v54  ;;  %v1089_v55 = vpop.permute.xlu0 %1088 }
 0x18a   : > { %v1119_v32 = vsel %vm642_vm12, 1e+30, %v1089_v55 }
 0x18b   : > { %v1186_v6 = vmin.f32 %v3600_v53, %v1174_v9  ;;  %v1131_v52 = vpop.permute.xlu1 %1130  ;;  %1422 = vrot.lane.b32.xlu1 %v4022_v37, %s3059_s16  ;;  %v4042_v49 = vmin.f32 %v1067_v50, %v1187_v31  ;;  %v1068_v9 = vmin.f32 %v3624_v13, %v5870_v40  ;;  %v5872_v31 = vmin.f32 %v3714_v23, %v3736_v28 }
 0x18c   : > { %v1164_v36 = vsel %vm691_vm13, %v1131_v52, 1e+30 }
 0x18d   : > { %5868 = vst [vmem:[#allocation66_spill] sm:$0xff] %v4042_v49  ;;  %v4046_v46 = vmin.f32 %v1066_v35, %v1186_v6  ;;  %v1176_v4 = vmin.f32 %v1116_v8, %v1164_v36  ;;  %v1137_v12 = vpop.permute.xlu0 %1136  ;;  %v1271_v19 = vrot.slane %v4042_v49, 1  ;;  %v1071_v60 = vmin.f32 %v3662_v62, %v5872_v31 }
 0x18e   : > { %v1167_v10 = vsel %vm691_vm13, %v1137_v12, 1e+30 }
 0x18f   : > { %5869 = vst [vmem:[#allocation67_spill] sm:$0xff] %v4046_v46  ;;  %v1188_v48 = vmin.f32 %v3624_v13, %v1176_v4  ;;  %v1133_v54 = vpop.permute.xlu1 %1132  ;;  %1596 = vrot.lane.b32.xlu0 %v4046_v46, %s3058_s18  ;;  %1424 = vrot.lane.b32.xlu1 %v3975_v41, %s3059_s16  ;;  %v1222_v55 = vrot.slane %v4046_v46, 7  ;;  %v1270_v6 = vrot.slane %v4046_v46, 1  ;;  %v1179_v1 = vmin.f32 %v1119_v32, %v1167_v10 }
 0x190   : > { %v1165_v35 = vsel %vm691_vm13, %v1133_v54, 1e+30  ;;  %v1281_v54 = vrot.slane %v3835_v18, 1 }
 0x191   : > { %v4061_v59 = vmin.f32 %v1068_v9, %v1188_v48  ;;  %v4065_v50 = vsel %vm533_vm8, %v1270_v6, %v1271_v19  ;;  %v1191_v52 = vmin.f32 %v3662_v62, %v1179_v1  ;;  %v1085_v8 = vpop.permute.xlu0 %1084  ;;  %v1546_v36 = vsel %vm484_vm7, 1e+30, %v1222_v55 }
 0x192   : > { %v1117_v4 = vsel %vm642_vm12, 1e+30, %v1085_v8  ;;  %v4081_v23 = vsel %vm468_vm11, 1e+30, %v1546_v36  ;;  %v5874_v8 = vmin.f32 %v3720_v21, %v3724_v14  ;;  %v5875_v36 = vrot.slane %v3835_v18, 7 }
 0x193   : > { %5871 = vst [vmem:[#allocation68_spill] sm:$0xff] %v4061_v59  ;;  %v1135_v32 = vpop.permute.xlu1 %1134  ;;  %1600 = vrot.lane.b32.xlu0 %v4061_v59, %s3058_s18  ;;  %1598 = vrot.lane.b32.xlu1 %v4042_v49, %s3058_s18  ;;  %v1273_v12 = vrot.slane %v4061_v59, 1  ;;  %v4083_v28 = vmin.f32 %v1071_v60, %v1191_v52  ;;  %v1177_v40 = vmin.f32 %v1117_v4, %v1165_v35  ;;  %v1223_v52 = vrot.slane %v4042_v49, 7 }
 0x194   : > { %v1166_v10 = vsel %vm691_vm13, %v1135_v32, 1e+30  ;;  %v1069_v60 = vmin.f32 %v3671_v3, %v5874_v8  ;;  %v5876_v21 = vmin.f32 %v3732_v63, %v3711_v20  ;;  %v1257_v62 = vsel %vm484_vm7, -1e+30, %v1222_v55 }
 0x195   : > { %5873 = vst [vmem:[#allocation69_spill] sm:$0xff] %v4083_v28  ;;  %v1274_v48 = vsel %vm533_vm8, %v1271_v19, %v1273_v12  ;;  %v1189_v6 = vmin.f32 %v3671_v3, %v1177_v40  ;;  %v1087_v1 = vpop.permute.xlu0 %1086  ;;  %v1231_v31 = vrot.slane %v4083_v28, 7  ;;  %v4126_v9 = vsel %vm484_vm7, %v1222_v55, %v1223_v52 }
 0x196   : > { %v1118_v35 = vsel %vm642_vm12, 1e+30, %v1087_v1  ;;  %v4107_v14 = vsel %vm471_vm9, 1e+30, %v1274_v48  ;;  %v1070_v32 = vmin.f32 %v3684_v29, %v5876_v21 }
 0x197   : > { %1646 = vrot.lane.b32.xlu0 %v4042_v49, %s3059_s16  ;;  %1644 = vrot.lane.b32.xlu1 %v4046_v46, %s3059_s16  ;;  %v1178_v19 = vmin.f32 %v1118_v35, %v1166_v10  ;;  %v1234_v4 = vsel %vm484_vm7, %v1231_v31, %v5875_v36  ;;  %v5877_v10 = vrot.slane %v3827_v22, 1  ;;  %v4120_v8 = vmin.f32 %v1069_v60, %v1189_v6 }
 0x198   : > { %v1264_v40 = vsel %vm468_vm11, -1e+30, %v1234_v4  ;;  %v4135_v63 = vsel %vm468_vm11, 1e+30, %v1234_v4 }
 0x199   : > { %v4118_v1 = vsel %vm533_vm8, %v1281_v54, %v5877_v10  ;;  %5878 = vst [vmem:[#allocation70_spill] sm:$0xff] %v4120_v8  ;;  %v1190_v35 = vmin.f32 %v3684_v29, %v1178_v19  ;;  %v4123_v36 = vpop.permute.xlu0 %884  ;;  %v1225_v19 = vrot.slane %v4061_v59, 7  ;;  %v1307_v10 = vsel %vm471_vm9, -1e+30, %v1274_v48 }
 0x19a   : > { %5879 = vst [vmem:[#allocation71_spill] sm:$0xff] %v4123_v36  ;;  %v1324_v20 = vmax.f32 %v1264_v40, %v4118_v1  ;;  %v1275_v4 = vrot.slane %v4120_v8, 1  ;;  %v1279_v29 = vrot.slane %v4083_v28, 1  ;;  %v1319_v6 = vmax.f32 %v4126_v9, %v1307_v10 }
 0x19b   : > { %1606 = vrot.lane.b32.xlu0 %v4083_v28, %s3058_s18  ;;  %1648 = vrot.lane.b32.xlu1 %v4061_v59, %s3059_s16  ;;  %v4139_v60 = vmin.f32 %v1070_v32, %v1190_v35  ;;  %v1258_v48 = vsel %vm468_vm11, -1e+30, %v1257_v62  ;;  %v1226_v55 = vsel %vm484_vm7, %v1223_v52, %v1225_v19  ;;  %v1227_v21 = vrot.slane %v4120_v8, 7 }
 0x19c   : > { %v4165_v13 = vsel %vm533_vm8, %v1273_v12, %v1275_v4  ;;  %v1282_v53 = vsel %vm533_vm8, %v1279_v29, %v1281_v54  ;;  %v1318_v44 = vmax.f32 %v1258_v48, %v4065_v50  ;;  %v4180_v12 = vsel %vm468_vm11, 1e+30, %v1226_v55 }
 0x19d   : > { %5880 = vst [vmem:[#allocation72_spill] sm:$0xff] %v4139_v60  ;;  %v4144_v40 = vpop.permute.xlu0 %932  ;;  %v1277_v32 = vrot.slane %v4139_v60, 1  ;;  %v1229_v35 = vrot.slane %v4139_v60, 7  ;;  %v4183_v54 = vmax.f32 %v4042_v49, %v1319_v6  ;;  %v4192_v37 = vsel %vm471_vm9, 1e+30, %v1282_v53 }
 0x19e   : > { %5881 = vst [vmem:[#allocation73_spill] sm:$0xff] %v4144_v40  ;;  %v5927_v36 = vmin.f32 %v4126_v9, %v4107_v14 }
 0x19f   : > { %1654 = vrot.lane.b32.xlu0 %v4083_v28, %s3059_s16  ;;  %1650 = vrot.lane.b32.xlu1 %v4120_v8, %s3059_s16  ;;  %v1278_v10 = vsel %vm533_vm8, %v1275_v4, %v1277_v32  ;;  %v1230_v62 = vsel %vm484_vm7, %v1227_v21, %v1229_v35  ;;  %v4175_v52 = vsel %vm484_vm7, %v1229_v35, %v1231_v31  ;;  %v1260_v4 = vsel %vm468_vm11, -1e+30, %v1226_v55 }
 0x1a0   : > { %5883 = vst [vmem:[#allocation75_spill] sm:$0xff] %v4183_v54  ;;  %v4186_v41 = vsel %vm533_vm8, %v1277_v32, %v1279_v29  ;;  %v4197_v35 = vsel %vm484_vm7, %v1225_v19, %v1227_v21  ;;  %v4203_v6 = vsel %vm471_vm9, 1e+30, %v1278_v10  ;;  %v4207_v29 = vsel %vm468_vm11, 1e+30, %v1230_v62 }
 0x1a1   : > { %v4162_v3 = vpop.permute.xlu0 %888  ;;  %v4218_v32 = vmax.f32 %v4046_v46, %v1318_v44  ;;  %v1320_v19 = vmax.f32 %v1260_v4, %v4165_v13  ;;  %v1309_v55 = vsel %vm471_vm9, -1e+30, %v1278_v10  ;;  %v1262_v10 = vsel %vm468_vm11, -1e+30, %v1230_v62 }
 0x1a2   : > { %5882 = vst [vmem:[#allocation74_spill] sm:$0xff] %v4162_v3  ;;  %v4229_v3 = vmax.f32 %v3835_v18, %v1324_v20  ;;  %v4245_v20 = vpop.permute.xlu1 %886  ;;  %v1321_v4 = vmax.f32 %v4197_v35, %v1309_v55  ;;  %v1322_v55 = vmax.f32 %v1262_v10, %v4186_v41  ;;  %v1311_v62 = vsel %vm471_vm9, -1e+30, %v1282_v53 }
 0x1a3   : > { %1602 = vrot.lane.b32.xlu0 %v4120_v8, %s3058_s18  ;;  %1652 = vrot.lane.b32.xlu1 %v4139_v60, %s3059_s16  ;;  %5885 = vst [vmem:[#allocation77_spill] sm:$0xff] %v4218_v32  ;;  %v4239_v44 = vmax.f32 %v4061_v59, %v1320_v19  ;;  %5891 = vst [vmem:[#allocation83_spill] sm:$0xff] %v4245_v20  ;;  %v1323_v10 = vmax.f32 %v4175_v52, %v1311_v62 }
 0x1a4   : > { %5887 = vst [vmem:[#allocation79_spill] sm:$0xff] %v4229_v3  ;;  %v5901_v62 = vmin.f32 %v3873_v17, %v3877_v58  ;;  %v5903_v17 = vmin.f32 %v4135_v63, %v4118_v1 }
 0x1a5   : > { %v4194_v31 = vpop.permute.xlu0 %944  ;;  %5889 = vst [vmem:[#allocation81_spill] sm:$0xff] %v4239_v44 }
 0x1a6   : > { %5884 = vst [vmem:[#allocation76_spill] sm:$0xff] %v4194_v31  ;;  %v4256_v19 = vpop.permute.xlu1 %934  ;;  %v1590_v58 = vmin.f32 %v3835_v18, %v5903_v17 }
 0x1a7   : > { %1604 = vrot.lane.b32.xlu0 %v4139_v60, %s3058_s18  ;;  %1356 = vrot.lane.b32.xlu1 %v4183_v54, %s3058_s18  ;;  %5893 = vst [vmem:[#allocation85_spill] sm:$0xff] %v4256_v19  ;;  %v1585_v19 = vmin.f32 %v4042_v49, %v5927_v36  ;;  %v5931_v36 = vmin.f32 %v4180_v12, %v4165_v13 }
 0x1a9   : > { %v4220_v48 = vpop.permute.xlu0 %890 }
 0x1aa   : > { %5886 = vst [vmem:[#allocation78_spill] sm:$0xff] %v4220_v48 }
 0x1ab   : > { %1354 = vrot.lane.b32.xlu0 %v4218_v32, %s3058_s18  ;;  %1404 = vrot.lane.b32.xlu1 %v4183_v54, %s3059_s16 }
 0x1ad   : > { %v4232_v21 = vpop.permute.xlu0 %938 }
 0x1ae   : > { %5888 = vst [vmem:[#allocation80_spill] sm:$0xff] %v4232_v21 }
 0x1af   : > { %1402 = vrot.lane.b32.xlu0 %v4218_v32, %s3059_s16  ;;  %1366 = vrot.lane.b32.xlu1 %v4229_v3, %s3058_s18 }
 0x1b1   : > { %v4241_v54 = vpop.permute.xlu0 %892 }
 0x1b2   : > { %5890 = vst [vmem:[#allocation82_spill] sm:$0xff] %v4241_v54  ;;  %v4259_v54 = vmax.f32 %v4120_v8, %v1321_v4  ;;  %v4275_v4 = vmax.f32 %v4139_v60, %v1322_v55 }
 0x1b3   : > { %1358 = vrot.lane.b32.xlu0 %v4239_v44, %s3058_s18  ;;  %1406 = vrot.lane.b32.xlu1 %v4239_v44, %s3059_s16  ;;  %v4268_v44 = vpop.permute.xlu1 %896 }
 0x1b4   : > { %5894 = vst [vmem:[#allocation86_spill] sm:$0xff] %v4259_v54  ;;  %5896 = vst [vmem:[#allocation88_spill] sm:$0xff] %v4268_v44 }
 0x1b5   : > { %v4252_v32 = vpop.permute.xlu0 %940  ;;  %5898 = vst [vmem:[#allocation90_spill] sm:$0xff] %v4275_v4 }
 0x1b6   : > { %5892 = vst [vmem:[#allocation84_spill] sm:$0xff] %v4252_v32 }
 0x1b7   : > { %1414 = vrot.lane.b32.xlu0 %v4229_v3, %s3059_s16 }
 0x1b9   : > { %v4263_v48 = vpop.permute.xlu0 %894 }
 0x1ba   : > { %5895 = vst [vmem:[#allocation87_spill] sm:$0xff] %v4263_v48  ;;  %v4281_v48 = vpop.permute.xlu1 %936 }
 0x1bb   : > { %1360 = vrot.lane.b32.xlu0 %v4259_v54, %s3058_s18  ;;  %5899 = vst [vmem:[#allocation91_spill] sm:$0xff] %v4281_v48 }
 0x1bd   : > { %v4272_v3 = vpop.permute.xlu0 %942 }
 0x1be   : > { %5897 = vst [vmem:[#allocation89_spill] sm:$0xff] %v4272_v3  ;;  %v4287_v3 = vmax.f32 %v4083_v28, %v1323_v10 }
 0x1bf   : > { %1408 = vrot.lane.b32.xlu0 %v4259_v54, %s3059_s16 }
 0x1c0   : > { %5900 = vst [vmem:[#allocation92_spill] sm:$0xff] %v4287_v3 }
 0x1c3   : > { %1362 = vrot.lane.b32.xlu0 %v4275_v4, %s3058_s18 }
 0x1c5   : > { %v1611_v32 = vpop.permute.xlu0 %1610 }
 0x1c6   : > { %v1639_v55 = vsel %vm642_vm12, 1e+30, %v1611_v32 }
 0x1c7   : > { %1410 = vrot.lane.b32.xlu0 %v4275_v4, %s3059_s16  ;;  %v1591_v4 = vmin.f32 %v3827_v22, %v5901_v62 }
 0x1c9   : > { %v1659_v54 = vpop.permute.xlu0 %1658  ;;  %v1609_v21 = vpop.permute.xlu1 %1608 }
 0x1ca   : > { %v1687_v31 = vsel %vm691_vm13, %v1659_v54, 1e+30  ;;  %v1638_v54 = vsel %vm642_vm12, 1e+30, %v1609_v21 }
 0x1cb   : > { %v1699_v44 = vmin.f32 %v1639_v55, %v1687_v31  ;;  %1364 = vrot.lane.b32.xlu0 %v4287_v3, %s3058_s18 }
 0x1cd   : > { %v1711_v53 = vmin.f32 %v3827_v22, %v1699_v44  ;;  %v1613_v48 = vpop.permute.xlu1 %1612 }
 0x1cf   : > { %1412 = vrot.lane.b32.xlu0 %v4287_v3, %s3059_s16  ;;  %v4300_v10 = vmin.f32 %v1591_v4, %v1711_v53  ;;  %v1640_v4 = vsel %vm642_vm12, 1e+30, %v1613_v48 }
 0x1d1   : > { %5902 = vst [vmem:[#allocation93_spill] sm:$0xff] %v4300_v10  ;;  %v1657_v32 = vpop.permute.xlu1 %1656  ;;  %v1615_v55 = vpop.permute.xlu0 %1614 }
 0x1d2   : > { %v1686_v31 = vsel %vm691_vm13, %v1657_v32, 1e+30 }
 0x1d3   : > { %v1698_v20 = vmin.f32 %v1638_v54, %v1686_v31  ;;  %2128 = vrot.lane.b32.xlu0 %v4300_v10, %s3058_s18  ;;  %v5905_v31 = vmin.f32 %v3900_v11, %v3896_v43  ;;  %v5726_v11 = vrot.slane %v4300_v10, 1 }
 0x1d5   : > { %v1710_v44 = vmin.f32 %v3835_v18, %v1698_v20  ;;  %v1661_v62 = vpop.permute.xlu1 %1660  ;;  %v1617_v54 = vpop.permute.xlu0 %1616  ;;  %v1592_v1 = vmin.f32 %v3848_v34, %v5905_v31  ;;  %v1641_v20 = vsel %vm642_vm12, 1e+30, %v1615_v55 }
 0x1d6   : > { %v1688_v53 = vsel %vm691_vm13, %v1661_v62, 1e+30  ;;  %v5907_v62 = vmin.f32 %v3937_v47, %v3926_v16  ;;  %v1753_v47 = vrot.slane %v4300_v10, 7 }
 0x1d7   : > { %v4313_v21 = vmin.f32 %v1590_v58, %v1710_v44  ;;  %v1700_v32 = vmin.f32 %v1640_v4, %v1688_v53  ;;  %2176 = vrot.lane.b32.xlu0 %v4300_v10, %s3059_s16 }
 0x1d8   : > { %v1593_v43 = vmin.f32 %v3864_v33, %v5907_v62 }
 0x1d9   : > { %5904 = vst [vmem:[#allocation94_spill] sm:$0xff] %v4313_v21  ;;  %v1712_v63 = vmin.f32 %v3848_v34, %v1700_v32  ;;  %2126 = vrot.lane.b32.xlu1 %v4313_v21, %s3058_s18  ;;  %v1663_v48 = vpop.permute.xlu1 %1662 }
 0x1da   : > { %v1689_v17 = vsel %vm691_vm13, %v1663_v48, 1e+30 }
 0x1db   : > { %v4326_v58 = vmin.f32 %v1592_v1, %v1712_v63  ;;  %v1701_v44 = vmin.f32 %v1641_v20, %v1689_v17  ;;  %v1642_v1 = vsel %vm642_vm12, 1e+30, %v1617_v54  ;;  %v1619_v63 = vpop.permute.xlu0 %1618  ;;  %v5909_v54 = vmin.f32 %v3970_v51, %v3957_v42 }
 0x1dc   : > { %v1643_v42 = vsel %vm642_vm12, 1e+30, %v1619_v63 }
 0x1dd   : > { %5906 = vst [vmem:[#allocation95_spill] sm:$0xff] %v4326_v58  ;;  %v1713_v4 = vmin.f32 %v3864_v33, %v1701_v44  ;;  %2130 = vrot.lane.b32.xlu1 %v4326_v58, %s3058_s18  ;;  %v1665_v53 = vpop.permute.xlu1 %1664  ;;  %v1803_v32 = vrot.slane %v4326_v58, 1  ;;  %v1755_v31 = vrot.slane %v4326_v58, 7 }
 0x1de   : > { %v1690_v16 = vsel %vm691_vm13, %v1665_v53, 1e+30  ;;  %v1594_v53 = vmin.f32 %v3893_v38, %v5909_v54 }
 0x1df   : > { %v4342_v48 = vmin.f32 %v1593_v43, %v1713_v4  ;;  %v1702_v20 = vmin.f32 %v1642_v1, %v1690_v16  ;;  %v1804_v17 = vsel %vm533_vm8, %v5726_v11, %v1803_v32  ;;  %v1756_v44 = vsel %vm484_vm7, %v1753_v47, %v1755_v31 }
 0x1e0   : > { %v4350_v62 = vsel %vm471_vm9, 1e+30, %v1804_v17  ;;  %v5910_v4 = vrot.slane %v4313_v21, 7  ;;  %v1784_v22 = vsel %vm468_vm11, -1e+30, %v1756_v44 }
 0x1e1   : > { %5908 = vst [vmem:[#allocation96_spill] sm:$0xff] %v4342_v48  ;;  %v1714_v55 = vmin.f32 %v3893_v38, %v1702_v20  ;;  %2174 = vrot.lane.b32.xlu1 %v4313_v21, %s3059_s16  ;;  %2132 = vrot.lane.b32.xlu0 %v4342_v48, %s3058_s18  ;;  %v1667_v43 = vpop.permute.xlu1 %1666  ;;  %v1805_v16 = vrot.slane %v4342_v48, 1  ;;  %v4378_v38 = vsel %vm468_vm11, 1e+30, %v1756_v44 }
 0x1e2   : > { %v4364_v1 = vsel %vm484_vm7, %v5910_v4, %v1753_v47  ;;  %v1691_v51 = vsel %vm691_vm13, %v1667_v43, 1e+30  ;;  %v5912_v47 = vmin.f32 %v3946_v24, %v3954_v15  ;;  %v1831_v43 = vsel %vm471_vm9, -1e+30, %v1804_v17 }
 0x1e3   : > { %v4371_v54 = vmin.f32 %v1594_v53, %v1714_v55  ;;  %v1703_v11 = vmin.f32 %v1643_v42, %v1691_v51  ;;  %v4374_v18 = vsel %vm533_vm8, %v1803_v32, %v1805_v16  ;;  %v1757_v24 = vrot.slane %v4342_v48, 7 }
 0x1e4   : > { %v1595_v63 = vmin.f32 %v3920_v2, %v5912_v47  ;;  %v1843_v42 = vmax.f32 %v4364_v1, %v1831_v43 }
 0x1e5   : > { %5911 = vst [vmem:[#allocation97_spill] sm:$0xff] %v4371_v54  ;;  %v1715_v53 = vmin.f32 %v3920_v2, %v1703_v11  ;;  %2178 = vrot.lane.b32.xlu1 %v4326_v58, %s3059_s16  ;;  %2134 = vrot.lane.b32.xlu0 %v4371_v54, %s3058_s18  ;;  %v4393_v32 = vpop.permute.xlu1 %1416  ;;  %v1807_v15 = vrot.slane %v4371_v54, 1  ;;  %v1759_v4 = vrot.slane %v4371_v54, 7 }
 0x1e6   : > { %5913 = vst [vmem:[#allocation98_spill] sm:$0xff] %v4393_v32  ;;  %v4425_v20 = vmax.f32 %v4300_v10, %v1843_v42 }
 0x1e7   : > { %v4398_v17 = vmin.f32 %v1595_v63, %v1715_v53  ;;  %v1808_v11 = vsel %vm533_vm8, %v1805_v16, %v1807_v15  ;;  %v4403_v51 = vsel %vm484_vm7, %v1757_v24, %v1759_v4  ;;  %v4416_v63 = vsel %vm484_vm7, %v1755_v31, %v1757_v24 }
 0x1e8   : > { %v4407_v47 = vsel %vm471_vm9, 1e+30, %v1808_v11  ;;  %5916 = vst [vmem:[#allocation101_spill] sm:$0xff] %v4425_v20  ;;  %v4434_v31 = vsel %vm468_vm11, 1e+30, %v4403_v51 }
 0x1e9   : > { %5914 = vst [vmem:[#allocation99_spill] sm:$0xff] %v4398_v17  ;;  %2180 = vrot.lane.b32.xlu1 %v4342_v48, %s3059_s16  ;;  %2136 = vrot.lane.b32.xlu0 %v4398_v17, %s3058_s18  ;;  %v4413_v55 = vpop.permute.xlu1 %1370  ;;  %v4419_v16 = vrot.slane %v4398_v17, 1  ;;  %v1761_v43 = vrot.slane %v4398_v17, 7  ;;  %v1833_v24 = vsel %vm471_vm9, -1e+30, %v1808_v11 }
 0x1ea   : > { %5915 = vst [vmem:[#allocation100_spill] sm:$0xff] %v4413_v55 }
 0x1eb   : > { %v4429_v2 = vsel %vm533_vm8, %v1807_v15, %v4419_v16  ;;  %v4445_v53 = vsel %vm484_vm7, %v1759_v4, %v1761_v43  ;;  %v2077_v15 = vsel %vm533_vm8, %v4419_v16, 1e+30  ;;  %v1844_v4 = vmax.f32 %v1784_v22, %v4374_v18 }
 0x1ec   : > { %v4451_v33 = vsel %vm471_vm9, 1e+30, %v2077_v15  ;;  %v4466_v15 = vpop.permute.xlu0 %1368  ;;  %v1845_v22 = vmax.f32 %v4416_v63, %v1833_v24 }
 0x1ed   : > { %2182 = vrot.lane.b32.xlu1 %v4371_v54, %s3059_s16  ;;  %1886 = vrot.lane.b32.xlu0 %v4425_v20, %s3058_s18  ;;  %v4442_v42 = vpop.permute.xlu1 %1418  ;;  %5920 = vst [vmem:[#allocation105_spill] sm:$0xff] %v4466_v15  ;;  %v4469_v3 = vmax.f32 %v4326_v58, %v1844_v4 }
 0x1ee   : > { %5917 = vst [vmem:[#allocation102_spill] sm:$0xff] %v4442_v42  ;;  %v4485_v4 = vmax.f32 %v4342_v48, %v1845_v22 }
 0x1ef   : > { %5921 = vst [vmem:[#allocation106_spill] sm:$0xff] %v4469_v3 }
 0x1f0   : > { %v4478_v44 = vpop.permute.xlu0 %1376  ;;  %5925 = vst [vmem:[#allocation110_spill] sm:$0xff] %v4485_v4 }
 0x1f1   : > { %2184 = vrot.lane.b32.xlu1 %v4398_v17, %s3059_s16  ;;  %v4457_v34 = vpop.permute.xlu1 %1372  ;;  %5923 = vst [vmem:[#allocation108_spill] sm:$0xff] %v4478_v44 }
 0x1f2   : > { %5918 = vst [vmem:[#allocation103_spill] sm:$0xff] %v4457_v34 }
 0x1f5   : > { %1934 = vrot.lane.b32.xlu1 %v4425_v20, %s3059_s16  ;;  %v4464_v43 = vpop.permute.xlu1 %1420 }
 0x1f6   : > { %5919 = vst [vmem:[#allocation104_spill] sm:$0xff] %v4464_v43 }
 0x1f9   : > { %1888 = vrot.lane.b32.xlu1 %v4469_v3, %s3058_s18  ;;  %v4475_v34 = vpop.permute.xlu1 %1374 }
 0x1fa   : > { %5922 = vst [vmem:[#allocation107_spill] sm:$0xff] %v4475_v34 }
 0x1fd   : > { %1936 = vrot.lane.b32.xlu1 %v4469_v3, %s3059_s16  ;;  %v4482_v20 = vpop.permute.xlu1 %1422 }
 0x1fe   : > { %5924 = vst [vmem:[#allocation109_spill] sm:$0xff] %v4482_v20 }
 0x201   : > { %v1597_v55 = vpop.permute.xlu0 %1596  ;;  %1890 = vrot.lane.b32.xlu1 %v4485_v4, %s3058_s18  ;;  %v4489_v11 = vpop.permute.xlu1 %1424 }
 0x202   : > { %5926 = vst [vmem:[#allocation111_spill] sm:$0xff] %v4489_v11  ;;  %v1632_v24 = vsel %vm642_vm12, 1e+30, %v1597_v55  ;;  %v5928_v55 = vmin.f32 %v4081_v23, %v4065_v50  ;;  %v1586_v50 = vmin.f32 %v4061_v59, %v5931_v36 }
 0x204   : > { %v1584_v40 = vmin.f32 %v4046_v46, %v5928_v55  ;;  %v5933_v55 = vmin.f32 %v4175_v52, %v4192_v37 }
 0x205   : > { %v1601_v15 = vpop.permute.xlu0 %1600  ;;  %v1599_v34 = vpop.permute.xlu1 %1598 }
 0x206   : > { %v1633_v42 = vsel %vm642_vm12, 1e+30, %v1599_v34 }
 0x209   : > { %v1647_v43 = vpop.permute.xlu0 %1646  ;;  %v1645_v44 = vpop.permute.xlu1 %1644 }
 0x20a   : > { %v1681_v3 = vsel %vm691_vm13, %v1647_v43, 1e+30  ;;  %v1680_v20 = vsel %vm691_vm13, %v1645_v44, 1e+30  ;;  %v1634_v44 = vsel %vm642_vm12, 1e+30, %v1601_v15 }
 0x20b   : > { %v1693_v22 = vmin.f32 %v1633_v42, %v1681_v3  ;;  %v1692_v32 = vmin.f32 %v1632_v24, %v1680_v20 }
 0x20d   : > { %v1705_v11 = vmin.f32 %v4042_v49, %v1693_v22  ;;  %v1704_v34 = vmin.f32 %v4046_v46, %v1692_v32  ;;  %v1607_v30 = vpop.permute.xlu0 %1606  ;;  %v1649_v43 = vpop.permute.xlu1 %1648 }
 0x20e   : > { %v1682_v3 = vsel %vm691_vm13, %v1649_v43, 1e+30  ;;  %v1637_v13 = vsel %vm642_vm12, 1e+30, %v1607_v30 }
 0x20f   : > { %v4507_v20 = vmin.f32 %v1585_v19, %v1705_v11  ;;  %v4509_v9 = vmin.f32 %v1584_v40, %v1704_v34  ;;  %v1694_v14 = vmin.f32 %v1634_v44, %v1682_v3  ;;  %v1589_v34 = vmin.f32 %v4083_v28, %v5933_v55 }
 0x211   : > { %5929 = vst [vmem:[#allocation112_spill] sm:$0xff] %v4507_v20  ;;  %5930 = vst [vmem:[#allocation113_spill] sm:$0xff] %v4509_v9  ;;  %v1706_v23 = vmin.f32 %v4061_v59, %v1694_v14  ;;  %v1655_v42 = vpop.permute.xlu0 %1654  ;;  %2116 = vrot.lane.b32.xlu1 %v4507_v20, %s3058_s18  ;;  %2114 = vrot.lane.b32.xlu0 %v4509_v9, %s3058_s18  ;;  %v1651_v32 = vpop.permute.xlu1 %1650  ;;  %v4521_v19 = vrot.slane %v4509_v9, 7  ;;  %v1788_v40 = vrot.slane %v4509_v9, 1  ;;  %v1789_v15 = vrot.slane %v4507_v20, 1 }
 0x212   : > { %v1685_v12 = vsel %vm691_vm13, %v1655_v42, 1e+30  ;;  %v1683_v36 = vsel %vm691_vm13, %v1651_v32, 1e+30  ;;  %v1741_v42 = vrot.slane %v4507_v20, 7  ;;  %v5935_v32 = vmin.f32 %v4197_v35, %v4203_v6 }
 0x213   : > { %v4527_v11 = vmin.f32 %v1586_v50, %v1706_v23  ;;  %v1697_v24 = vmin.f32 %v1637_v13, %v1685_v12  ;;  %v2064_v22 = vsel %vm484_vm7, 1e+30, %v4521_v19  ;;  %v4541_v3 = vsel %vm533_vm8, %v1788_v40, %v1789_v15 }
 0x214   : > { %v4548_v52 = vsel %vm468_vm11, 1e+30, %v2064_v22  ;;  %v1799_v40 = vrot.slane %v4313_v21, 1 }
 0x215   : > { %5932 = vst [vmem:[#allocation114_spill] sm:$0xff] %v4527_v11  ;;  %v1709_v43 = vmin.f32 %v4083_v28, %v1697_v24  ;;  %v1603_v44 = vpop.permute.xlu0 %1602  ;;  %2162 = vrot.lane.b32.xlu1 %v4509_v9, %s3059_s16  ;;  %2118 = vrot.lane.b32.xlu0 %v4527_v11, %s3058_s18  ;;  %v1653_v30 = vpop.permute.xlu1 %1652  ;;  %v1791_v14 = vrot.slane %v4527_v11, 1  ;;  %v1587_v24 = vmin.f32 %v4120_v8, %v5935_v32  ;;  %v5937_v32 = vrot.slane %v4313_v21, 7 }
 0x216   : > { %v1635_v37 = vsel %vm642_vm12, 1e+30, %v1603_v44  ;;  %v1684_v35 = vsel %vm691_vm13, %v1653_v30, 1e+30  ;;  %v1743_v44 = vrot.slane %v4527_v11, 7  ;;  %v5938_v30 = vrot.slane %v4300_v10, 1 }
 0x217   : > { %v4550_v50 = vmin.f32 %v1589_v34, %v1709_v43  ;;  %v1695_v23 = vmin.f32 %v1635_v37, %v1683_v36  ;;  %v4554_v13 = vsel %vm533_vm8, %v1789_v15, %v1791_v14 }
 0x218   : > { %v4572_v43 = vsel %vm471_vm9, 1e+30, %v4554_v13 }
 0x219   : > { %5934 = vst [vmem:[#allocation115_spill] sm:$0xff] %v4550_v50  ;;  %v1707_v22 = vmin.f32 %v4120_v8, %v1695_v23  ;;  %v1605_v55 = vpop.permute.xlu0 %1604  ;;  %2166 = vrot.lane.b32.xlu1 %v4527_v11, %s3059_s16  ;;  %2164 = vrot.lane.b32.xlu0 %v4507_v20, %s3059_s16  ;;  %v1357_v15 = vpop.permute.xlu1 %1356  ;;  %v1749_v34 = vrot.slane %v4550_v50, 7  ;;  %v4581_v23 = vsel %vm484_vm7, %v4521_v19, %v1741_v42 }
 0x21a   : > { %v1636_v6 = vsel %vm642_vm12, 1e+30, %v1605_v55  ;;  %v4593_v55 = vsel %vm533_vm8, %v1799_v40, %v5938_v30 }
 0x21b   : > { %v4577_v36 = vmin.f32 %v1587_v24, %v1707_v22  ;;  %v1696_v37 = vmin.f32 %v1636_v6, %v1684_v35  ;;  %v1752_v12 = vsel %vm484_vm7, %v1749_v34, %v5937_v32  ;;  %v5939_v35 = vmin.f32 %v4207_v29, %v4186_v41 }
 0x21c   : > { %v4588_v28 = vsel %vm468_vm11, -1e+30, %v1752_v12  ;;  %v4597_v24 = vsel %vm468_vm11, 1e+30, %v1752_v12  ;;  %v4616_v41 = vsel %vm642_vm12, -1e+30, %v1357_v15 }
 0x21d   : > { %5936 = vst [vmem:[#allocation116_spill] sm:$0xff] %v4577_v36  ;;  %v1588_v6 = vmin.f32 %v4139_v60, %v5939_v35  ;;  %v1708_v32 = vmin.f32 %v4139_v60, %v1696_v37  ;;  %v4606_v8 = vpop.permute.xlu0 %1354  ;;  %2124 = vrot.lane.b32.xlu0 %v4550_v50, %s3058_s18  ;;  %2168 = vrot.lane.b32.xlu1 %v4577_v36, %s3059_s16  ;;  %v1405_v12 = vpop.permute.xlu1 %1404  ;;  %v1793_v30 = vrot.slane %v4577_v36, 1  ;;  %5941 = vst [vmem:[#allocation118_spill] sm:$0xff] %v4616_v41 }
 0x21e   : > { %5940 = vst [vmem:[#allocation117_spill] sm:$0xff] %v4606_v8  ;;  %v4619_v29 = vsel %vm691_vm13, %v1405_v12, -1e+30  ;;  %v1744_v37 = vsel %vm484_vm7, %v1741_v42, %v1743_v44  ;;  %v1823_v42 = vsel %vm533_vm8, %v4419_v16, -1e+30 }
 0x21f   : > { %5942 = vst [vmem:[#allocation119_spill] sm:$0xff] %v4619_v29  ;;  %v4624_v60 = vmin.f32 %v1588_v6, %v1708_v32  ;;  %v4629_v49 = vsel %vm533_vm8, %v1791_v14, %v1793_v30  ;;  %v1797_v6 = vrot.slane %v4550_v50, 1  ;;  %v4643_v32 = vsel %vm468_vm11, 1e+30, %v1744_v37 }
 0x220   : > { %v1786_v14 = vsel %vm468_vm11, -1e+30, %v4403_v51  ;;  %v1835_v16 = vsel %vm471_vm9, -1e+30, %v1823_v42  ;;  %v1775_v51 = vsel %vm484_vm7, -1e+30, %v4521_v19 }
 0x221   : > { %5943 = vst [vmem:[#allocation120_spill] sm:$0xff] %v4624_v60  ;;  %v4631_v22 = vpop.permute.xlu0 %1402  ;;  %2172 = vrot.lane.b32.xlu0 %v4550_v50, %s3059_s16  ;;  %2170 = vrot.lane.b32.xlu1 %v4624_v60, %s3059_s16  ;;  %v1795_v15 = vrot.slane %v4624_v60, 1  ;;  %v1747_v12 = vrot.slane %v4624_v60, 7  ;;  %v1846_v35 = vmax.f32 %v1786_v14, %v4429_v2  ;;  %v1745_v29 = vrot.slane %v4577_v36, 7 }
 0x222   : > { %5944 = vst [vmem:[#allocation121_spill] sm:$0xff] %v4631_v22  ;;  %v4665_v14 = vsel %vm533_vm8, %v1797_v6, %v1799_v40  ;;  %v1847_v8 = vmax.f32 %v4445_v53, %v1835_v16  ;;  %v1776_v19 = vsel %vm468_vm11, -1e+30, %v1775_v51  ;;  %v1778_v51 = vsel %vm468_vm11, -1e+30, %v1744_v37 }
 0x223   : > { %v1796_v59 = vsel %vm533_vm8, %v1793_v30, %v1795_v15  ;;  %v4668_v42 = vsel %vm484_vm7, %v1747_v12, %v1749_v34  ;;  %v4671_v41 = vmax.f32 %v4371_v54, %v1846_v35  ;;  %v4680_v30 = vsel %vm471_vm9, 1e+30, %v4665_v14 }
 0x224   : > { %v4684_v40 = vsel %vm471_vm9, 1e+30, %v1796_v59  ;;  %v4693_v35 = vsel %vm484_vm7, %v1743_v44, %v1745_v29  ;;  %v1836_v22 = vmax.f32 %v1776_v19, %v4541_v3  ;;  %v1825_v44 = vsel %vm471_vm9, -1e+30, %v4554_v13 }
 0x225   : > { %v4654_v46 = vpop.permute.xlu0 %1358  ;;  %2120 = vrot.lane.b32.xlu0 %v4577_v36, %s3058_s18  ;;  %1938 = vrot.lane.b32.xlu1 %v4485_v4, %s3059_s16  ;;  %5946 = vst [vmem:[#allocation123_spill] sm:$0xff] %v4671_v41  ;;  %v1748_v4 = vsel %vm484_vm7, %v1745_v29, %v1747_v12  ;;  %v4696_v12 = vsel %vm533_vm8, %v1795_v15, %v1797_v6  ;;  %v1827_v37 = vsel %vm471_vm9, -1e+30, %v1796_v59 }
 0x226   : > { %5945 = vst [vmem:[#allocation122_spill] sm:$0xff] %v4654_v46  ;;  %v4707_v46 = vmax.f32 %v4398_v17, %v1847_v8  ;;  %v4720_v6 = vmax.f32 %v4509_v9, %v1836_v22  ;;  %v1837_v8 = vmax.f32 %v4581_v23, %v1825_v44  ;;  %v1838_v16 = vmax.f32 %v1778_v51, %v4629_v49 }
 0x227   : > { %v5956_v22 = vmax.f32 %v4588_v28, %v4593_v55 }
 0x228   : > { %5948 = vst [vmem:[#allocation125_spill] sm:$0xff] %v4707_v46  ;;  %5949 = vst [vmem:[#allocation126_spill] sm:$0xff] %v4720_v6  ;;  %v4738_v44 = vmax.f32 %v4507_v20, %v1837_v8 }
 0x229   : > { %v4686_v34 = vpop.permute.xlu0 %1414  ;;  %1892 = vrot.lane.b32.xlu1 %v4671_v41, %s3058_s18  ;;  %2122 = vrot.lane.b32.xlu0 %v4624_v60, %s3058_s18  ;;  %v4766_v59 = vmax.f32 %v4313_v21, %v5956_v22 }
 0x22a   : > { %5947 = vst [vmem:[#allocation124_spill] sm:$0xff] %v4686_v34  ;;  %v4704_v34 = vsel %vm468_vm11, 1e+30, %v1748_v4  ;;  %5952 = vst [vmem:[#allocation129_spill] sm:$0xff] %v4738_v44 }
 0x22b   : > { %5957 = vst [vmem:[#allocation133_spill] sm:$0xff] %v4766_v59 }
 0x22d   : > { %v1361_v15 = vpop.permute.xlu0 %1360  ;;  %1940 = vrot.lane.b32.xlu1 %v4671_v41, %s3059_s16  ;;  %1894 = vrot.lane.b32.xlu0 %v4707_v46, %s3058_s18 }
 0x22e   : > { %v4728_v13 = vsel %vm642_vm12, -1e+30, %v1361_v15  ;;  %v4746_v15 = vmax.f32 %v4527_v11, %v1838_v16  ;;  %v4778_v16 = vpop.permute.xlu1 %1366 }
 0x22f   : > { %5950 = vst [vmem:[#allocation127_spill] sm:$0xff] %v4728_v13 }
 0x230   : > { %5953 = vst [vmem:[#allocation130_spill] sm:$0xff] %v4746_v15 }
 0x231   : > { %v1409_v19 = vpop.permute.xlu0 %1408  ;;  %1942 = vrot.lane.b32.xlu1 %v4707_v46, %s3059_s16  ;;  %1872 = vrot.lane.b32.xlu0 %v4720_v6, %s3058_s18 }
 0x232   : > { %v4731_v29 = vsel %vm691_vm13, %v1409_v19, -1e+30  ;;  %v4795_v41 = vpop.permute.xlu1 %1406 }
 0x233   : > { %5951 = vst [vmem:[#allocation128_spill] sm:$0xff] %v4731_v29 }
 0x235   : > { %v1363_v46 = vpop.permute.xlu0 %1362  ;;  %1874 = vrot.lane.b32.xlu1 %v4738_v44, %s3058_s18  ;;  %1920 = vrot.lane.b32.xlu0 %v4720_v6, %s3059_s16 }
 0x236   : > { %v4755_v51 = vsel %vm642_vm12, -1e+30, %v1363_v46 }
 0x237   : > { %5954 = vst [vmem:[#allocation131_spill] sm:$0xff] %v4755_v51 }
 0x239   : > { %v1411_v19 = vpop.permute.xlu0 %1410  ;;  %1922 = vrot.lane.b32.xlu1 %v4738_v44, %s3059_s16  ;;  %1876 = vrot.lane.b32.xlu0 %v4746_v15, %s3058_s18  ;;  %v1839_v44 = vmax.f32 %v4693_v35, %v1827_v37 }
 0x23a   : > { %v4758_v8 = vsel %vm691_vm13, %v1411_v19, -1e+30  ;;  %v1780_v19 = vsel %vm468_vm11, -1e+30, %v1748_v4 }
 0x23b   : > { %5955 = vst [vmem:[#allocation132_spill] sm:$0xff] %v4758_v8  ;;  %v4774_v46 = vmax.f32 %v4577_v36, %v1839_v44  ;;  %v1840_v4 = vmax.f32 %v1780_v19, %v4696_v12 }
 0x23d   : > { %v1365_v6 = vpop.permute.xlu0 %1364  ;;  %1884 = vrot.lane.b32.xlu1 %v4766_v59, %s3058_s18  ;;  %1932 = vrot.lane.b32.xlu0 %v4766_v59, %s3059_s16  ;;  %5958 = vst [vmem:[#allocation134_spill] sm:$0xff] %v4774_v46 }
 0x23e   : > { %v4785_v22 = vsel %vm642_vm12, -1e+30, %v1365_v6  ;;  %v1829_v6 = vsel %vm471_vm9, -1e+30, %v4665_v14 }
 0x23f   : > { %5959 = vst [vmem:[#allocation135_spill] sm:$0xff] %v4785_v22  ;;  %v1841_v44 = vmax.f32 %v4668_v42, %v1829_v6 }
 0x241   : > { %v1413_v28 = vpop.permute.xlu0 %1412  ;;  %1924 = vrot.lane.b32.xlu1 %v4746_v15, %s3059_s16  ;;  %1878 = vrot.lane.b32.xlu0 %v4774_v46, %s3058_s18  ;;  %v4798_v15 = vmax.f32 %v4624_v60, %v1840_v4  ;;  %v4810_v4 = vmax.f32 %v4550_v50, %v1841_v44 }
 0x242   : > { %v4788_v37 = vsel %vm691_vm13, %v1413_v28, -1e+30 }
 0x243   : > { %5960 = vst [vmem:[#allocation136_spill] sm:$0xff] %v4788_v37  ;;  %5961 = vst [vmem:[#allocation137_spill] sm:$0xff] %v4798_v15 }
 0x244   : > { %5962 = vst [vmem:[#allocation138_spill] sm:$0xff] %v4810_v4 }
 0x245   : > { %1926 = vrot.lane.b32.xlu0 %v4774_v46, %s3059_s16  ;;  %v2129_v59 = vpop.permute.xlu0 %2128 }
 0x246   : > { %v2157_v22 = vsel %vm642_vm12, 1e+30, %v2129_v59  ;;  %v5963_v59 = vmin.f32 %v4364_v1, %v4350_v62  ;;  %v5965_v62 = vmin.f32 %v4378_v38, %v4374_v18 }
 0x248   : > { %v2110_v1 = vmin.f32 %v4326_v58, %v5965_v62 }
 0x249   : > { %1880 = vrot.lane.b32.xlu0 %v4798_v15, %s3058_s18  ;;  %v2177_v19 = vpop.permute.xlu0 %2176 }
 0x24a   : > { %v2205_v46 = vsel %vm691_vm13, %v2177_v19, 1e+30 }
 0x24b   : > { %v2127_v28 = vpop.permute.xlu1 %2126  ;;  %v2217_v8 = vmin.f32 %v2157_v22, %v2205_v46  ;;  %v2109_v46 = vmin.f32 %v4300_v10, %v5963_v59 }
 0x24c   : > { %v2156_v6 = vsel %vm642_vm12, 1e+30, %v2127_v28  ;;  %v5964_v28 = vmin.f32 %v4597_v24, %v4593_v55 }
 0x24d   : > { %1928 = vrot.lane.b32.xlu0 %v4798_v15, %s3059_s16  ;;  %v2229_v19 = vmin.f32 %v4300_v10, %v2217_v8  ;;  %v6060_v10 = vld [vmem:[#allocation119_spill] sm:$0xff] }
 0x24f   : > { %v2131_v37 = vpop.permute.xlu1 %2130  ;;  %v4831_v8 = vmin.f32 %v2109_v46, %v2229_v19 }
 0x250   : > { %v2158_v22 = vsel %vm642_vm12, 1e+30, %v2131_v37 }
 0x251   : > { %1882 = vrot.lane.b32.xlu0 %v4810_v4, %s3058_s18  ;;  %v5761_v38 = vrot.slane %v4831_v8, 1 }
 0x253   : > { %v2133_v14 = vpop.permute.xlu0 %2132  ;;  %v2175_v51 = vpop.permute.xlu1 %2174 }
 0x254   : > { %v2204_v29 = vsel %vm691_vm13, %v2175_v51, 1e+30  ;;  %v2159_v55 = vsel %vm642_vm12, 1e+30, %v2133_v14 }
 0x255   : > { %v2216_v13 = vmin.f32 %v2156_v6, %v2204_v29  ;;  %1930 = vrot.lane.b32.xlu0 %v4810_v4, %s3059_s16  ;;  %v2108_v29 = vmin.f32 %v4313_v21, %v5964_v28 }
 0x257   : > { %v2228_v44 = vmin.f32 %v4313_v21, %v2216_v13  ;;  %v2179_v15 = vpop.permute.xlu1 %2178  ;;  %v2135_v6 = vpop.permute.xlu0 %2134 }
 0x258   : > { %v2206_v51 = vsel %vm691_vm13, %v2179_v15, 1e+30  ;;  %v2160_v62 = vsel %vm642_vm12, 1e+30, %v2135_v6 }
 0x259   : > { %v2218_v4 = vmin.f32 %v2158_v22, %v2206_v51  ;;  %v4833_v13 = vmin.f32 %v2108_v29, %v2228_v44  ;;  %v2271_v22 = vrot.slane %v4831_v8, 7  ;;  %v5966_v44 = vmin.f32 %v4416_v63, %v4407_v47 }
 0x25b   : > { %v2230_v37 = vmin.f32 %v4326_v58, %v2218_v4  ;;  %v2181_v59 = vpop.permute.xlu1 %2180  ;;  %v5763_v19 = vrot.slane %v4833_v13, 7  ;;  %v2111_v18 = vmin.f32 %v4342_v48, %v5966_v44  ;;  %v2137_v29 = vpop.permute.xlu0 %2136 }
 0x25c   : > { %v2207_v24 = vsel %vm691_vm13, %v2181_v59, 1e+30 }
 0x25d   : > { %v2242_v28 = vmin.f32 %v2110_v1, %v2230_v37  ;;  %v2219_v15 = vmin.f32 %v2159_v55, %v2207_v24  ;;  %v5967_v55 = vmin.f32 %v4434_v31, %v4429_v2 }
 0x25f   : > { %v2273_v46 = vrot.slane %v2242_v28, 7  ;;  %v2321_v4 = vrot.slane %v2242_v28, 1  ;;  %v2231_v14 = vmin.f32 %v4342_v48, %v2219_v15  ;;  %v2183_v51 = vpop.permute.xlu1 %2182  ;;  %v2112_v24 = vmin.f32 %v4371_v54, %v5967_v55  ;;  %v1887_v31 = vpop.permute.xlu0 %1886 }
 0x260   : > { %v2208_v1 = vsel %vm691_vm13, %v2183_v51, 1e+30  ;;  %v2272_v15 = vsel %vm484_vm7, %v5763_v19, %v2271_v22 }
 0x261   : > { %v2243_v37 = vmin.f32 %v2111_v18, %v2231_v14  ;;  %v2220_v59 = vmin.f32 %v2160_v62, %v2208_v1  ;;  %v2322_v47 = vsel %vm533_vm8, %v5761_v38, %v2321_v4  ;;  %v2274_v63 = vsel %vm484_vm7, %v2271_v22, %v2273_v46 }
 0x262   : > { %v2349_v6 = vsel %vm471_vm9, -1e+30, %v2322_v47  ;;  %v2161_v1 = vsel %vm642_vm12, 1e+30, %v2137_v29  ;;  %v2302_v2 = vsel %vm468_vm11, -1e+30, %v2274_v63  ;;  %v5969_v29 = vmin.f32 %v4445_v53, %v4451_v33 }
 0x263   : > { %v2275_v44 = vrot.slane %v2243_v37, 7  ;;  %v2323_v18 = vrot.slane %v2243_v37, 1  ;;  %v2232_v14 = vmin.f32 %v4371_v54, %v2220_v59  ;;  %v2185_v51 = vpop.permute.xlu1 %2184  ;;  %v2361_v62 = vmax.f32 %v2272_v15, %v2349_v6 }
 0x264   : > { %v2209_v38 = vsel %vm691_vm13, %v2185_v51, 1e+30  ;;  %v2113_v6 = vmin.f32 %v4398_v17, %v5969_v29 }
 0x265   : > { %v2244_v55 = vmin.f32 %v2112_v24, %v2232_v14  ;;  %v2221_v21 = vmin.f32 %v2161_v1, %v2209_v38  ;;  %v4871_v22 = vmax.f32 %v4831_v8, %v2361_v62  ;;  %v2324_v47 = vsel %vm533_vm8, %v2321_v4, %v2323_v18 }
 0x266   : > { %v2362_v19 = vmax.f32 %v2302_v2, %v2324_v47  ;;  %v2276_v59 = vsel %vm484_vm7, %v2273_v46, %v2275_v44  ;;  %v4885_v4 = vsel %vm642_vm12, -1e+30, %v1887_v31 }
 0x267   : > { %5968 = vst [vmem:[#allocation139_spill] sm:$0xff] %v4871_v22  ;;  %v2277_v54 = vrot.slane %v2244_v55, 7  ;;  %v2325_v15 = vrot.slane %v2244_v55, 1  ;;  %v2233_v63 = vmin.f32 %v4398_v17, %v2221_v21  ;;  %2452 = vrot.lane.b32.xlu1 %v4871_v22, %s3059_s16  ;;  %2404 = vrot.lane.b32.xlu0 %v4871_v22, %s3058_s18  ;;  %v1935_v38 = vpop.permute.xlu1 %1934 }
 0x268   : > { %v4888_v46 = vsel %vm691_vm13, %v1935_v38, -1e+30  ;;  %v4890_v24 = vmax.f32 %v2242_v28, %v2362_v19 }
 0x269   : > { %v2245_v33 = vmin.f32 %v2113_v6, %v2233_v63  ;;  %v2326_v21 = vsel %vm533_vm8, %v2323_v18, %v2325_v15  ;;  %v2278_v14 = vsel %vm484_vm7, %v2275_v44, %v2277_v54 }
 0x26a   : > { %5970 = vst [vmem:[#allocation140_spill] sm:$0xff] %v4890_v24  ;;  %v2351_v51 = vsel %vm471_vm9, -1e+30, %v2326_v21  ;;  %v2304_v19 = vsel %vm468_vm11, -1e+30, %v2278_v14 }
 0x26b   : > { %v2279_v62 = vrot.slane %v2245_v33, 7  ;;  %v2327_v1 = vrot.slane %v2245_v33, 1  ;;  %2406 = vrot.lane.b32.xlu1 %v4890_v24, %s3058_s18  ;;  %v1889_v2 = vpop.permute.xlu1 %1888  ;;  %v2363_v31 = vmax.f32 %v2276_v59, %v2351_v51 }
 0x26d   : > { %v4900_v28 = vmax.f32 %v2243_v37, %v2363_v31  ;;  %v2328_v47 = vsel %vm533_vm8, %v2325_v15, %v2327_v1  ;;  %v2280_v18 = vsel %vm484_vm7, %v2277_v54, %v2279_v62  ;;  %v2341_v29 = vsel %vm533_vm8, %v2327_v1, -1e+30 }
 0x26e   : > { %v2364_v44 = vmax.f32 %v2304_v19, %v2328_v47  ;;  %v2353_v63 = vsel %vm471_vm9, -1e+30, %v2341_v29  ;;  %v4912_v37 = vsel %vm642_vm12, -1e+30, %v1889_v2  ;;  %v5974_v47 = vmin.f32 %v4548_v52, %v4541_v3 }
 0x26f   : > { %5971 = vst [vmem:[#allocation141_spill] sm:$0xff] %v4900_v28  ;;  %2454 = vrot.lane.b32.xlu1 %v4890_v24, %s3059_s16  ;;  %v1937_v6 = vpop.permute.xlu1 %1936  ;;  %v2365_v15 = vmax.f32 %v2280_v18, %v2353_v63 }
 0x270   : > { %v4915_v59 = vsel %vm691_vm13, %v1937_v6, -1e+30  ;;  %v4917_v38 = vmax.f32 %v2244_v55, %v2364_v44  ;;  %v2102_v18 = vmin.f32 %v4509_v9, %v5974_v47 }
 0x271   : > { %v4921_v21 = vmax.f32 %v2245_v33, %v2365_v15 }
 0x272   : > { %5972 = vst [vmem:[#allocation142_spill] sm:$0xff] %v4917_v38 }
 0x273   : > { %5973 = vst [vmem:[#allocation143_spill] sm:$0xff] %v4921_v21  ;;  %2408 = vrot.lane.b32.xlu1 %v4900_v28, %s3058_s18  ;;  %v1891_v14 = vpop.permute.xlu1 %1890 }
 0x277   : > { %2456 = vrot.lane.b32.xlu1 %v4900_v28, %s3059_s16  ;;  %v6039_v28 = vld [vmem:[#allocation122_spill] sm:$0xff] }
 0x27b   : > { %2410 = vrot.lane.b32.xlu1 %v4917_v38, %s3058_s18 }
 0x283   : > { %v2115_v51 = vpop.permute.xlu0 %2114  ;;  %v2117_v62 = vpop.permute.xlu1 %2116 }
 0x284   : > { %v2150_v2 = vsel %vm642_vm12, 1e+30, %v2115_v51  ;;  %v2151_v19 = vsel %vm642_vm12, 1e+30, %v2117_v62  ;;  %v5975_v62 = vmin.f32 %v4581_v23, %v4572_v43 }
 0x286   : > { %v2103_v3 = vmin.f32 %v4507_v20, %v5975_v62 }
 0x287   : > { %v2119_v55 = vpop.permute.xlu0 %2118  ;;  %v2163_v1 = vpop.permute.xlu1 %2162 }
 0x288   : > { %v2198_v31 = vsel %vm691_vm13, %v2163_v1, 1e+30  ;;  %v2152_v63 = vsel %vm642_vm12, 1e+30, %v2119_v55 }
 0x289   : > { %v2210_v33 = vmin.f32 %v2150_v2, %v2198_v31 }
 0x28b   : > { %v2222_v44 = vmin.f32 %v4509_v9, %v2210_v33  ;;  %v2165_v29 = vpop.permute.xlu0 %2164  ;;  %v2167_v6 = vpop.permute.xlu1 %2166  ;;  %v5976_v33 = vmin.f32 %v4643_v32, %v4629_v49  ;;  %v6036_v9 = vld [vmem:[#allocation82_spill] sm:$0xff] }
 0x28c   : > { %v2199_v15 = vsel %vm691_vm13, %v2165_v29, 1e+30  ;;  %v2200_v51 = vsel %vm691_vm13, %v2167_v6, 1e+30 }
 0x28d   : > { %v2234_v54 = vmin.f32 %v2102_v18, %v2222_v44  ;;  %v2211_v1 = vmin.f32 %v2151_v19, %v2199_v15  ;;  %v2212_v2 = vmin.f32 %v2152_v63, %v2200_v51  ;;  %v2104_v55 = vmin.f32 %v4527_v11, %v5976_v33 }
 0x28f   : > { %v2258_v52 = vrot.slane %v2234_v54, 7  ;;  %v2223_v31 = vmin.f32 %v4507_v20, %v2211_v1  ;;  %v2224_v47 = vmin.f32 %v4527_v11, %v2212_v2  ;;  %v2125_v29 = vpop.permute.xlu0 %2124  ;;  %v2169_v6 = vpop.permute.xlu1 %2168  ;;  %v2306_v43 = vrot.slane %v2234_v54, 1 }
 0x290   : > { %v2155_v32 = vsel %vm642_vm12, 1e+30, %v2125_v29  ;;  %v4966_v29 = vsel %vm642_vm12, -1e+30, %v1891_v14 }
 0x291   : > { %v2235_v18 = vmin.f32 %v2103_v3, %v2223_v31  ;;  %v4950_v19 = vmin.f32 %v2104_v55, %v2224_v47  ;;  %v2293_v44 = vsel %vm484_vm7, -1e+30, %v2258_v52 }
 0x292   : > { %v2294_v62 = vsel %vm468_vm11, -1e+30, %v2293_v44 }
 0x293   : > { %v2259_v23 = vrot.slane %v2235_v18, 7  ;;  %v2307_v63 = vrot.slane %v2235_v18, 1  ;;  %v2261_v15 = vrot.slane %v4950_v19, 7  ;;  %v2309_v51 = vrot.slane %v4950_v19, 1  ;;  %v2173_v1 = vpop.permute.xlu0 %2172  ;;  %v2171_v49 = vpop.permute.xlu1 %2170 }
 0x294   : > { %v2203_v2 = vsel %vm691_vm13, %v2173_v1, 1e+30  ;;  %v5977_v1 = vmin.f32 %v4668_v42, %v4680_v30 }
 0x295   : > { %v2215_v3 = vmin.f32 %v2155_v32, %v2203_v2  ;;  %v2308_v31 = vsel %vm533_vm8, %v2306_v43, %v2307_v63  ;;  %v2260_v33 = vsel %vm484_vm7, %v2258_v52, %v2259_v23  ;;  %v2310_v55 = vsel %vm533_vm8, %v2307_v63, %v2309_v51 }
 0x296   : > { %v2354_v47 = vmax.f32 %v2294_v62, %v2308_v31  ;;  %v2343_v53 = vsel %vm471_vm9, -1e+30, %v2310_v55  ;;  %v2262_v17 = vsel %vm484_vm7, %v2259_v23, %v2261_v15  ;;  %v2107_v44 = vmin.f32 %v4550_v50, %v5977_v1 }
 0x297   : > { %v2227_v43 = vmin.f32 %v4550_v50, %v2215_v3  ;;  %v2121_v32 = vpop.permute.xlu0 %2120  ;;  %v1939_v52 = vpop.permute.xlu1 %1938  ;;  %v2355_v2 = vmax.f32 %v2260_v33, %v2343_v53  ;;  %v2201_v63 = vsel %vm691_vm13, %v2169_v6, 1e+30  ;;  %v2317_v53 = vrot.slane %v4833_v13, 1  ;;  %v6017_v50 = vld [vmem:[#allocation24_spill] sm:$0xff] }
 0x298   : > { %v2153_v62 = vsel %vm642_vm12, 1e+30, %v2121_v32  ;;  %v4976_v31 = vsel %vm691_vm13, %v1939_v52, -1e+30  ;;  %v4978_v23 = vmax.f32 %v2234_v54, %v2354_v47  ;;  %v5980_v3 = vmin.f32 %v4693_v35, %v4684_v40 }
 0x299   : > { %v2239_v14 = vmin.f32 %v2107_v44, %v2227_v43  ;;  %v2213_v55 = vmin.f32 %v2153_v62, %v2201_v63  ;;  %v4982_v30 = vmax.f32 %v2235_v18, %v2355_v2  ;;  %v2202_v18 = vsel %vm691_vm13, %v2171_v49, 1e+30 }
 0x29a   : > { %5978 = vst [vmem:[#allocation144_spill] sm:$0xff] %v4978_v23  ;;  %2390 = vrot.lane.b32.xlu0 %v4978_v23, %s3058_s18  ;;  %v2105_v33 = vmin.f32 %v4577_v36, %v5980_v3  ;;  %v5981_v32 = vrot.slane %v4833_v13, 7  ;;  %v5982_v40 = vmin.f32 %v4704_v34, %v4696_v12 }
 0x29b   : > { %5979 = vst [vmem:[#allocation145_spill] sm:$0xff] %v4982_v30  ;;  %v2267_v6 = vrot.slane %v2239_v14, 7  ;;  %v2225_v54 = vmin.f32 %v4577_v36, %v2213_v55  ;;  %v2123_v47 = vpop.permute.xlu0 %2122  ;;  %2392 = vrot.lane.b32.xlu1 %v4982_v30, %s3058_s18  ;;  %v5983_v55 = vrot.slane %v4831_v8, 1  ;;  %v2315_v34 = vrot.slane %v2239_v14, 1  ;;  %v6027_v36 = vld [vmem:[#allocation102_spill] sm:$0xff] }
 0x29c   : > { %v2154_v1 = vsel %vm642_vm12, 1e+30, %v2123_v47  ;;  %v2106_v35 = vmin.f32 %v4624_v60, %v5982_v40 }
 0x29d   : > { %v2237_v44 = vmin.f32 %v2105_v33, %v2225_v54  ;;  %v2214_v43 = vmin.f32 %v2154_v1, %v2202_v18  ;;  %v2270_v52 = vsel %vm484_vm7, %v2267_v6, %v5981_v32  ;;  %v2320_v3 = vsel %vm533_vm8, %v2317_v53, %v5983_v55 }
 0x29e   : > { %2438 = vrot.lane.b32.xlu0 %v4978_v23, %s3059_s16  ;;  %v2300_v2 = vsel %vm468_vm11, -1e+30, %v2270_v52  ;;  %v2296_v54 = vsel %vm468_vm11, -1e+30, %v2262_v17  ;;  %v2318_v40 = vsel %vm533_vm8, %v2315_v34, %v2317_v53  ;;  %v6038_v23 = vld [vmem:[#allocation121_spill] sm:$0xff] }
 0x29f   : > { %v2263_v49 = vrot.slane %v2237_v44, 7  ;;  %v2311_v63 = vrot.slane %v2237_v44, 1  ;;  %v2226_v62 = vmin.f32 %v4624_v60, %v2214_v43  ;;  %2440 = vrot.lane.b32.xlu1 %v4982_v30, %s3059_s16  ;;  %v2360_v12 = vmax.f32 %v2300_v2, %v2320_v3  ;;  %v5060_v25 = vpop.permute.xlu0 %1894 }
 0x2a0   : > { %v2347_v53 = vsel %vm471_vm9, -1e+30, %v2318_v40  ;;  %5989 = vst [vmem:[#allocation151_spill] sm:$0xff] %v5060_v25  ;;  %v976_v3 = vsel %vm691_vm13, %v3959_v45, -1e+30 }
 0x2a1   : > { %v2238_v33 = vmin.f32 %v2106_v35, %v2226_v62  ;;  %v2312_v47 = vsel %vm533_vm8, %v2309_v51, %v2311_v63  ;;  %v5017_v18 = vmax.f32 %v4833_v13, %v2360_v12  ;;  %v2264_v43 = vsel %vm484_vm7, %v2261_v15, %v2263_v49 }
 0x2a2   : > { %v2356_v1 = vmax.f32 %v2296_v54, %v2312_v47  ;;  %v978_v12 = vsel %vm691_vm13, %v4004_v56, -1e+30  ;;  %v256_v54 = vsub.f32 %v5990_v61, %v3282_v0  ;;  %v5991_v47 = vld [vmem:[#allocation57_spill] sm:$0xff] }
 0x2a3   : > { %5984 = vst [vmem:[#allocation146_spill] sm:$0xff] %v5017_v18  ;;  %v2265_v32 = vrot.slane %v2238_v33, 7  ;;  %v2313_v52 = vrot.slane %v2238_v33, 1  ;;  %2402 = vrot.lane.b32.xlu1 %v5017_v18, %s3058_s18  ;;  %v5995_v0 = vld [vmem:[#allocation73_spill] sm:$0xff] }
 0x2a4   : > { %v5023_v8 = vmax.f32 %v4950_v19, %v2356_v1  ;;  %v5992_v1 = vld [vmem:[#allocation60_spill] sm:$0xff] }
 0x2a5   : > { %v2314_v17 = vsel %vm533_vm8, %v2311_v63, %v2313_v52  ;;  %v2266_v15 = vsel %vm484_vm7, %v2263_v49, %v2265_v32  ;;  %v2316_v51 = vsel %vm533_vm8, %v2313_v52, %v2315_v34  ;;  %v2268_v35 = vsel %vm484_vm7, %v2265_v32, %v2267_v6  ;;  %v5996_v52 = vld [vmem:[#allocation85_spill] sm:$0xff] }
 0x2a6   : > { %5985 = vst [vmem:[#allocation147_spill] sm:$0xff] %v5023_v8  ;;  %2394 = vrot.lane.b32.xlu0 %v5023_v8, %s3058_s18  ;;  %v2345_v13 = vsel %vm471_vm9, -1e+30, %v2314_v17  ;;  %v2298_v19 = vsel %vm468_vm11, -1e+30, %v2266_v15  ;;  %v2359_v62 = vmax.f32 %v2268_v35, %v2347_v53  ;;  %v5094_v17 = vpop.permute.xlu1 %1892  ;;  %v5100_v53 = vpop.permute.xlu0 %1872  ;;  %vm2692_vm7 = vcmask 57344  }
 0x2a7   : > { %v2357_v2 = vmax.f32 %v2264_v43, %v2345_v13  ;;  %2442 = vrot.lane.b32.xlu1 %v5023_v8, %s3059_s16  ;;  %v2358_v63 = vmax.f32 %v2298_v19, %v2316_v51  ;;  %v977_v34 = vsel %vm691_vm13, %v3986_v7, -1e+30  ;;  %v929_v45 = vsel %vm642_vm12, -1e+30, %v5992_v1  ;;  %v5993_v43 = vld [vmem:[#allocation62_spill] sm:$0xff]  ;;  %v5997_v51 = vld [vmem:[#allocation71_spill] sm:$0xff] }
 0x2a8   : > { %v5046_v6 = vmax.f32 %v2239_v14, %v2359_v62  ;;  %v927_v14 = vsel %vm642_vm12, -1e+30, %v3993_v5  ;;  %v930_v7 = vsel %vm642_vm12, -1e+30, %v5993_v43  ;;  %v968_v32 = vsel %vm691_vm13, %v5995_v0, -1e+30 }
 0x2a9   : > { %v5040_v55 = vmax.f32 %v2237_v44, %v2357_v2  ;;  %v5044_v49 = vmax.f32 %v2238_v33, %v2358_v63  ;;  %v931_v44 = vsel %vm642_vm12, -1e+30, %v4002_v27  ;;  %v255_v33 = vsub.f32 %v3261_v26, %v3269_v57  ;;  %v5994_v26 = vld [vmem:[#allocation64_spill] sm:$0xff]  ;;  %v5998_v2 = vld [vmem:[#allocation83_spill] sm:$0xff] }
 0x2aa   : > { %2450 = vrot.lane.b32.xlu0 %v5017_v18, %s3059_s16  ;;  %5988 = vst [vmem:[#allocation150_spill] sm:$0xff] %v5046_v6  ;;  %v987_v5 = vmax.f32 %v927_v14, %v975_v39  ;;  %v928_v27 = vsel %vm642_vm12, -1e+30, %v5991_v47  ;;  %v979_v57 = vsel %vm691_vm13, %v5994_v26, -1e+30  ;;  %v989_v13 = vmax.f32 %v929_v45, %v977_v34  ;;  %v2951_v63 = vld [vmem:[%s3217_s26] sm:$0xff] }
 0x2ab   : > { %5986 = vst [vmem:[#allocation148_spill] sm:$0xff] %v5040_v55  ;;  %5987 = vst [vmem:[#allocation149_spill] sm:$0xff] %v5044_v49  ;;  %2458 = vrot.lane.b32.xlu1 %v4917_v38, %s3059_s16  ;;  %v988_v56 = vmax.f32 %v928_v27, %v976_v3  ;;  %v969_v40 = vsel %vm691_vm13, %v5996_v52, -1e+30  ;;  %v990_v15 = vmax.f32 %v930_v7, %v978_v12  ;;  %v920_v35 = vsel %vm642_vm12, -1e+30, %v5997_v51 }
 0x2ac   : > { %v921_v19 = vsel %vm642_vm12, -1e+30, %v5998_v2  ;;  %vm257_vm14 = vcmp.eq.s32.totalorder %v2951_v63, 0  ;;  %v2952_v62 = vld [vmem:[%s3217_s26 + $0x8] sm:$0xff]  ;;  %v282_v39 = vsub.f32 0.0, %v255_v33  ;;  %v283_v14 = vsub.f32 0.0, %v256_v54 }
 0x2ad   : > { %vm258_vm15 = vcmp.eq.s32.totalorder %v2952_v62, 0  ;;  %v991_v3 = vmax.f32 %v931_v44, %v979_v57  ;;  %v980_v61 = vmax.f32 %v920_v35, %v968_v32  ;;  %v981_v47 = vmax.f32 %v921_v19, %v969_v40  ;;  %v5999_v34 = vld [vmem:[#allocation33_spill] sm:$0xff]  ;;  %v6000_v27 = vld [vmem:[#allocation35_spill] sm:$0xff]  ;;  %v6001_v45 = vld [vmem:[#allocation88_spill] sm:$0xff] }
 0x2ae   : > { %2396 = vrot.lane.b32.xlu0 %v5040_v55, %s3058_s18  ;;  %v999_v12 = vmax.f32 %v5999_v34, %v987_v5  ;;  %v1000_v1 = vmax.f32 %v6000_v27, %v988_v56  ;;  %v926_v43 = vsel %vm642_vm12, -1e+30, %v6001_v45  ;;  %v6002_v7 = vld [vmem:[#allocation76_spill] sm:$0xff]  ;;  %v6003_v0 = vld [vmem:[#allocation91_spill] sm:$0xff]  ;;  %v6004_v54 = vmov 0.0   ;;  %v6006_v5 = vld [vmem:[#allocation37_spill] sm:$0xff]  ;;  %v5122_v56 = vpop.permute.xlu1 %1940 }
 0x2af   : > { %2460 = vrot.lane.b32.xlu1 %v4921_v21, %s3059_s16  ;;  %v974_v26 = vsel %vm691_vm13, %v6002_v7, -1e+30  ;;  %v970_v33 = vsel %vm691_vm13, %v6003_v0, -1e+30  ;;  %v5115_v44 = vsel %vm257_vm14, 1.0, %v6004_v54  ;;  %v5118_v57 = vsel %vm258_vm15, 1.0, %v6004_v54  ;;  %v5131_v0 = vpop.permute.xlu0 %1920 }
 0x2b0   : > { %v6005_v32 = vld [vmem:[#allocation36_spill] sm:$0xff]  ;;  %v1002_v40 = vmax.f32 %v6006_v5, %v990_v15  ;;  %v284_v51 = vmul.f32 %v5115_v44, %v282_v39  ;;  %v285_v35 = vmul.f32 %v5118_v57, %v283_v14  ;;  %v6007_v2 = vld [vmem:[#allocation34_spill] sm:$0xff]  ;;  %v6008_v63 = vld [vmem:[#allocation45_spill] sm:$0xff] }
 0x2b1   : > { %v1001_v52 = vmax.f32 %v6005_v32, %v989_v13  ;;  %v1003_v19 = vmax.f32 %v6007_v2, %v991_v3  ;;  %v992_v62 = vmax.f32 %v6008_v63, %v980_v61  ;;  %v6009_v34 = vld [vmem:[#allocation44_spill] sm:$0xff]  ;;  %v6010_v45 = vld [vmem:[#allocation74_spill] sm:$0xff]  ;;  %v986_v13 = vmax.f32 %v926_v43, %v974_v26  ;;  %v6011_v15 = vld [vmem:[#allocation11_spill] sm:$0xff] }
 0x2b2   : > { %2444 = vrot.lane.b32.xlu0 %v5040_v55, %s3059_s16  ;;  %v993_v27 = vmax.f32 %v6009_v34, %v981_v47  ;;  %v922_v7 = vsel %vm642_vm12, -1e+30, %v6010_v45  ;;  %v1011_v32 = vsub.f32 %v6011_v15, %v999_v12  ;;  %v6012_v5 = vld [vmem:[#allocation8_spill] sm:$0xff]  ;;  %v6013_v39 = vld [vmem:[#allocation9_spill] sm:$0xff]  ;;  %v286_v61 = vsel %vm263_vm0, %v284_v51, 0.0  ;;  %v6018_v26 = vld [vmem:[#allocation46_spill] sm:$0xff] }
 0x2b3   : > { %v982_v54 = vmax.f32 %v922_v7, %v970_v33  ;;  %v1012_v42 = vsub.f32 %v6012_v5, %v1000_v1  ;;  %v1013_v14 = vsub.f32 %v6013_v39, %v1001_v52  ;;  %v287_v47 = vsel %vm263_vm0, %v285_v35, 0.0  ;;  %v6015_v2 = vld [vmem:[#allocation13_spill] sm:$0xff]  ;;  %v6019_v12 = vld [vmem:[#allocation47_spill] sm:$0xff]  ;;  %v5144_v1 = vpop.permute.xlu1 %1942  ;;  %v5152_v35 = vpop.permute.xlu0 %1876 }
 0x2b4   : > { %v1015_v63 = vsub.f32 %v6015_v2, %v1003_v19  ;;  %v6016_v34 = vld [vmem:[#allocation21_spill] sm:$0xff]  ;;  %v1005_v43 = vsub.f32 %v6017_v50, %v993_v27  ;;  %v998_v33 = vmax.f32 %v6018_v26, %v986_v13  ;;  %6020 = vst [vmem:[#allocation14_spill] sm:$0xff] %v5144_v1  ;;  %6022 = vst [vmem:[#allocation57_spill] sm:$0xff] %v5152_v35  ;;  %v361_v27 = vsel %vm263_vm0, %v6012_v5, 0.0  ;;  %v6023_v26 = vld [vmem:[#allocation78_spill] sm:$0xff] }
 0x2b5   : > { %v1004_v45 = vsub.f32 %v6016_v34, %v992_v62  ;;  %v994_v7 = vmax.f32 %v6019_v12, %v982_v54  ;;  %v5148_v52 = vmax.f32 %v1012_v42, 0.0  ;;  %v288_v19 = vadd.f32 %v287_v47, %v286_v61  ;;  %v6024_v61 = vld [vmem:[#allocation10_spill] sm:$0xff]  ;;  %v6029_v55 = vld [vmem:[#allocation109_spill] sm:$0xff] }
 0x2b6   : > { %2398 = vrot.lane.b32.xlu0 %v5044_v49, %s3058_s18  ;;  %v5154_v60 = vmax.f32 %v1013_v14, 0.0  ;;  %v362_v13 = vsel %vm263_vm0, %v6013_v39, 0.0  ;;  %v5162_v54 = vmax.f32 %v1015_v63, 0.0  ;;  %v923_v12 = vsel %vm642_vm12, -1e+30, %v6023_v26  ;;  %v6025_v47 = vld [vmem:[#allocation22_spill] sm:$0xff] }
 0x2b7   : > { %v5164_v42 = vmax.f32 %v1004_v45, 0.0  ;;  %v1010_v14 = vsub.f32 %v6024_v61, %v998_v33  ;;  %v1446_v50 = vsel %vm691_vm13, %v6027_v36, -1e+30  ;;  %v6028_v63 = vld [vmem:[#allocation104_spill] sm:$0xff]  ;;  %v363_v38 = vadd.f32 %v362_v13, %v361_v27  ;;  %v6031_v18 = vld [vmem:[#allocation105_spill] sm:$0xff]  ;;  %v6035_v13 = vld [vmem:[#allocation107_spill] sm:$0xff] }
 0x2b8   : > { %v1447_v45 = vsel %vm691_vm13, %v6028_v63, -1e+30  ;;  %v6030_v26 = vld [vmem:[#allocation84_spill] sm:$0xff]  ;;  %v412_v36 = vsel %vm263_vm0, %v6015_v2, 0.0  ;;  %v6063_v1 = vld [vmem:[#allocation77_spill] sm:$0xff] }
 0x2b9   : > { %v972_v33 = vsel %vm691_vm13, %v6030_v26, -1e+30  ;;  %v6033_v63 = vld [vmem:[#allocation100_spill] sm:$0xff]  ;;  %v1400_v26 = vsel %vm642_vm12, -1e+30, %v6035_v13  ;;  %v5200_v48 = vmax.f32 %v1010_v14, 0.0 }
 0x2ba   : > { %2446 = vrot.lane.b32.xlu0 %v5044_v49, %s3059_s16  ;;  %v6026_v49 = vld [vmem:[#allocation98_spill] sm:$0xff]  ;;  %v1438_v13 = vsel %vm691_vm13, %v6038_v23, -1e+30  ;;  %v6040_v14 = vld [vmem:[#allocation48_spill] sm:$0xff]  ;;  %v6045_v23 = vld [vmem:[#allocation63_spill] sm:$0xff] }
 0x2bb   : > { %v1445_v34 = vsel %vm691_vm13, %v6026_v49, -1e+30 }
 0x2be   : > { %2400 = vrot.lane.b32.xlu0 %v5046_v6, %s3058_s18 }
 0x2c2   : > { %2448 = vrot.lane.b32.xlu0 %v5046_v6, %s3059_s16  ;;  %v5146_v6 = vmax.f32 %v1011_v32, 0.0  ;;  %v5166_v32 = vmax.f32 %v1005_v43, 0.0  ;;  %v1448_v43 = vsel %vm691_vm13, %v6029_v55, -1e+30  ;;  %v1398_v55 = vsel %vm642_vm12, -1e+30, %v6033_v63 }
 0x2c3   : > { %v1458_v11 = vmax.f32 %v1398_v55, %v1446_v50  ;;  %v1460_v20 = vmax.f32 %v1400_v26, %v1448_v43  ;;  %v1440_v50 = vsel %vm691_vm13, %v4795_v41, -1e+30  ;;  %v6041_v43 = vld [vmem:[#allocation108_spill] sm:$0xff]  ;;  %v6042_v55 = vld [vmem:[#allocation58_spill] sm:$0xff] }
 0x2c6   : > { %2412 = vrot.lane.b32.xlu0 %v4921_v21, %s3058_s18  ;;  %v6014_v21 = vld [vmem:[#allocation12_spill] sm:$0xff] }
 0x2c7   : > { %v1014_v3 = vsub.f32 %v6014_v21, %v1002_v40  ;;  %v6021_v40 = vld [vmem:[#allocation80_spill] sm:$0xff]  ;;  %v411_v49 = vsel %vm263_vm0, %v6014_v21, 0.0 }
 0x2c8   : > { %v971_v51 = vsel %vm691_vm13, %v6021_v40, -1e+30 }
 0x2c9   : > { %v5156_v62 = vmax.f32 %v1014_v3, 0.0  ;;  %v1006_v3 = vsub.f32 %v6025_v47, %v994_v7  ;;  %v983_v40 = vmax.f32 %v923_v12, %v971_v51  ;;  %v1397_v7 = vsel %vm642_vm12, -1e+30, %v6031_v18  ;;  %v5184_v51 = vpop.permute.xlu1 %1874  ;;  %v5196_v47 = vpop.permute.xlu0 %1932 }
 0x2ca   : > { %6032 = vst [vmem:[#allocation60_spill] sm:$0xff] %v5184_v51  ;;  %v1457_v12 = vmax.f32 %v1397_v7, %v1445_v34  ;;  %v924_v34 = vsel %vm642_vm12, -1e+30, %v6036_v9  ;;  %v6037_v7 = vld [vmem:[#allocation111_spill] sm:$0xff]  ;;  %v1401_v9 = vsel %vm642_vm12, -1e+30, %v6041_v43 }
 0x2cb   : > { %v5198_v18 = vmax.f32 %v1006_v3, 0.0  ;;  %v1449_v63 = vsel %vm691_vm13, %v6037_v7, -1e+30  ;;  %v984_v30 = vmax.f32 %v924_v34, %v972_v33  ;;  %v1392_v3 = vsel %vm642_vm12, -1e+30, %v6039_v28  ;;  %v6046_v34 = vld [vmem:[#allocation65_spill] sm:$0xff] }
 0x2cc   : > { %v1472_v28 = vmax.f32 %v6046_v34, %v1460_v20  ;;  %v6047_v7 = vld [vmem:[#allocation117_spill] sm:$0xff]  ;;  %v1396_v43 = vsel %vm642_vm12, -1e+30, %v4778_v16  ;;  %v264_v16 = vsel %vm263_vm0, %v5115_v44, 0.0 }
 0x2cd   : > { %v1390_v41 = vsel %vm642_vm12, -1e+30, %v6047_v7  ;;  %v5225_v58 = vpop.permute.xlu1 %1922  ;;  %v6052_v7 = vld [vmem:[#allocation87_spill] sm:$0xff] }
 0x2ce   : > { %v925_v24 = vsel %vm642_vm12, -1e+30, %v6052_v7  ;;  %v6059_v7 = vld [vmem:[#allocation118_spill] sm:$0xff] }
 0x2cf   : > { %v6061_v22 = vmax.f32 %v6059_v7, %v6060_v10  ;;  %v311_v10 = vsel %vm263_vm0, %v6024_v61, 0.0  ;;  %v6071_v7 = vld [vmem:[#allocation40_spill] sm:$0xff] }
 0x2d3   : > { %289 = vadd.xlane.f32.xlu1 %v288_v19  ;;  %v6034_v19 = vld [vmem:[#allocation103_spill] sm:$0xff] }
 0x2d4   : > { %v1399_v27 = vsel %vm642_vm12, -1e+30, %v6034_v19  ;;  %v413_v19 = vadd.f32 %v412_v36, %v411_v49  ;;  %v6044_v49 = vld [vmem:[#allocation61_spill] sm:$0xff] }
 0x2d5   : > { %v1459_v8 = vmax.f32 %v1399_v27, %v1447_v45  ;;  %v5213_v45 = vmax.f32 %v6040_v14, %v983_v40  ;;  %v1469_v27 = vmax.f32 %v6042_v55, %v1457_v12  ;;  %v1470_v36 = vmax.f32 %v6044_v49, %v1458_v11  ;;  %v5229_v55 = vpop.permute.xlu0 %1878  ;;  %v6050_v49 = vld [vmem:[#allocation15_spill] sm:$0xff] }
 0x2d6   : > { %v1461_v40 = vmax.f32 %v1401_v9, %v1449_v63  ;;  %v1450_v14 = vmax.f32 %v1390_v41, %v1438_v13  ;;  %v1452_v12 = vmax.f32 %v1392_v3, %v1440_v50  ;;  %6048 = vst [vmem:[#allocation62_spill] sm:$0xff] %v5229_v55  ;;  %v328_v20 = vsub.f32 0.0, %v6050_v49  ;;  %v6053_v63 = vld [vmem:[#allocation89_spill] sm:$0xff]  ;;  %v6054_v3 = vld [vmem:[#allocation28_spill] sm:$0xff]  ;;  %v6055_v50 = vld [vmem:[#allocation30_spill] sm:$0xff] }
 0x2d7   : > { %364 = vadd.xlane.f32.xlu1 %v363_v38  ;;  %v6043_v38 = vld [vmem:[#allocation124_spill] sm:$0xff]  ;;  %v1471_v26 = vmax.f32 %v6045_v23, %v1459_v8  ;;  %v6051_v23 = vld [vmem:[#allocation18_spill] sm:$0xff]  ;;  %v973_v13 = vsel %vm691_vm13, %v6053_v63, -1e+30  ;;  %v1482_v9 = vsub.f32 %v6055_v50, %v1470_v36  ;;  %v6058_v49 = vld [vmem:[#allocation59_spill] sm:$0xff] }
 0x2d8   : > { %v1444_v33 = vsel %vm691_vm13, %v6043_v38, -1e+30  ;;  %v6049_v38 = vld [vmem:[#allocation49_spill] sm:$0xff]  ;;  %v329_v34 = vsub.f32 0.0, %v6051_v23  ;;  %v1473_v23 = vmax.f32 %v6058_v49, %v1461_v40  ;;  %v6062_v63 = vld [vmem:[#allocation75_spill] sm:$0xff]  ;;  %v1462_v44 = vmax.f32 %v6063_v1, %v1450_v14  ;;  %v6066_v1 = vld [vmem:[#allocation16_spill] sm:$0xff] }
 0x2d9   : > { %v5232_v11 = vmax.f32 %v6049_v38, %v984_v30  ;;  %v1456_v8 = vmax.f32 %v1396_v43, %v1444_v33  ;;  %v1481_v30 = vsub.f32 %v6054_v3, %v1469_v27  ;;  %v6056_v33 = vld [vmem:[#allocation29_spill] sm:$0xff]  ;;  %v6057_v43 = vld [vmem:[#allocation32_spill] sm:$0xff]  ;;  %v1463_v25 = vmax.f32 %v6062_v63, %v6061_v22  ;;  %v5256_v27 = vpop.permute.xlu1 %1884  ;;  %v5260_v3 = vpop.permute.xlu0 %1926 }
 0x2da   : > { %v1483_v41 = vsub.f32 %v6056_v33, %v1471_v26  ;;  %v1484_v38 = vsub.f32 %v6057_v43, %v1472_v28  ;;  %v6064_v55 = vld [vmem:[#allocation81_spill] sm:$0xff]  ;;  %v330_v26 = vmul.f32 %v6024_v61, %v328_v20  ;;  %v331_v28 = vmul.f32 %v6011_v15, %v329_v34  ;;  %v6067_v14 = vld [vmem:[#allocation20_spill] sm:$0xff]  ;;  %v6069_v33 = vld [vmem:[#allocation39_spill] sm:$0xff] }
 0x2db   : > { %414 = vadd.xlane.f32.xlu1 %v413_v19  ;;  %v265_v19 = vsel %vm263_vm0, %v5118_v57, 0.0  ;;  %v1464_v35 = vmax.f32 %v6064_v55, %v1452_v12  ;;  %v6065_v57 = vld [vmem:[#allocation79_spill] sm:$0xff]  ;;  %v312_v22 = vsel %vm263_vm0, %v6011_v15, 0.0  ;;  %v378_v40 = vsub.f32 0.0, %v6066_v1  ;;  %v6070_v43 = vld [vmem:[#allocation38_spill] sm:$0xff] }
 0x2dc   : > { %v1468_v51 = vmax.f32 %v6065_v57, %v1456_v8  ;;  %v266_v36 = vadd.f32 %v265_v19, %v264_v16  ;;  %v379_v12 = vsub.f32 0.0, %v6067_v14  ;;  %v1493_v55 = vmax.f32 %v1481_v30, 0.0  ;;  %v6068_v19 = vld [vmem:[#allocation31_spill] sm:$0xff] }
 0x2dd   : > { %v1494_v8 = vmax.f32 %v1482_v9, 0.0  ;;  %v1495_v50 = vmax.f32 %v1483_v41, 0.0  ;;  %v1496_v16 = vmax.f32 %v1484_v38, 0.0  ;;  %v1485_v20 = vsub.f32 %v6068_v19, %v1473_v23  ;;  %v6072_v57 = vld [vmem:[#allocation27_spill] sm:$0xff]  ;;  %v6073_v41 = vld [vmem:[#allocation17_spill] sm:$0xff] }
 0x2de   : > { %v1475_v34 = vsub.f32 %v6069_v33, %v1463_v25  ;;  %v1474_v49 = vsub.f32 %v6070_v43, %v1462_v44  ;;  %v1476_v63 = vsub.f32 %v6071_v7, %v1464_v35  ;;  %v1480_v61 = vsub.f32 %v6072_v57, %v1468_v51  ;;  %v6074_v23 = vld [vmem:[#allocation19_spill] sm:$0xff]  ;;  %v5285_v33 = vpop.permute.xlu1 %1924  ;;  %v5289_v7 = vpop.permute.xlu0 %1880 }
 0x2df   : > { %v313_v15 = vadd.f32 %v312_v22, %v311_v10  ;;  %v332_v1 = vsel %vm263_vm0, %v330_v26, 0.0  ;;  %v333_v14 = vsel %vm263_vm0, %v331_v28, 0.0  ;;  %v380_v30 = vmul.f32 %v6012_v5, %v378_v40  ;;  %v6075_v51 = vld [vmem:[#allocation127_spill] sm:$0xff]  ;;  %v6078_v22 = vld [vmem:[#allocation86_spill] sm:$0xff]  ;;  %6079 = vst [vmem:[#allocation64_spill] sm:$0xff] %v5289_v7 }
 0x2e0   : > { %v381_v9 = vmul.f32 %v6013_v39, %v379_v12  ;;  %v428_v38 = vsub.f32 0.0, %v6073_v41  ;;  %v429_v25 = vsub.f32 0.0, %v6074_v23  ;;  %v985_v19 = vmax.f32 %v925_v24, %v973_v13  ;;  %v6082_v5 = vld [vmem:[#allocation50_spill] sm:$0xff] }
 0x2e1   : > { %v1505_v44 = vmul.f32 %v1493_v55, %v5146_v6  ;;  %v1506_v35 = vmul.f32 %v1494_v8, %v5148_v52  ;;  %v1507_v28 = vmul.f32 %v1495_v50, %v5154_v60  ;;  %v1508_v40 = vmul.f32 %v1496_v16, %v5156_v62 }
 0x2e2   : > { %v1497_v12 = vmax.f32 %v1485_v20, 0.0  ;;  %v1487_v43 = vmax.f32 %v1475_v34, 0.0  ;;  %v1486_v24 = vmax.f32 %v1474_v49, 0.0  ;;  %v1488_v13 = vmax.f32 %v1476_v63, 0.0  ;;  %v6081_v20 = vld [vmem:[#allocation23_spill] sm:$0xff]  ;;  %v6083_v63 = vld [vmem:[#allocation42_spill] sm:$0xff] }
 0x2e3   : > { %v1492_v57 = vmax.f32 %v1480_v61, 0.0  ;;  %v334_v41 = vadd.f32 %v333_v14, %v332_v1  ;;  %v382_v23 = vsel %vm263_vm0, %v380_v30, 0.0  ;;  %v1008_v34 = vsub.f32 %v6081_v20, %v5232_v11 }
 0x2e4   : > { %v997_v49 = vmax.f32 %v6082_v5, %v985_v19  ;;  %v1517_v1 = vsub.f32 %v1493_v55, %v1505_v44  ;;  %v1518_v14 = vsub.f32 %v1494_v8, %v1506_v35  ;;  %v1519_v30 = vsub.f32 %v1495_v50, %v1507_v28  ;;  %v5308_v19 = vpop.permute.xlu0 %1928  ;;  %v6086_v8 = vld [vmem:[#allocation25_spill] sm:$0xff]  ;;  %v6087_v44 = vld [vmem:[#allocation131_spill] sm:$0xff]  ;;  %v6088_v35 = vld [vmem:[#allocation132_spill] sm:$0xff] }
 0x2e5   : > { %267 = vadd.xlane.f32.xlu0 %v266_v36  ;;  %v6076_v36 = vld [vmem:[#allocation128_spill] sm:$0xff]  ;;  %v1500_v11 = vmul.f32 %v1488_v13, %v5198_v18  ;;  %v1504_v5 = vmul.f32 %v1492_v57, %v5200_v48  ;;  %6085 = vst [vmem:[#allocation85_spill] sm:$0xff] %v5308_v19  ;;  %v6089_v28 = vmax.f32 %v6087_v44, %v6088_v35  ;;  %v5327_v44 = vmax.f32 %v1008_v34, 0.0  ;;  %v6098_v34 = vld [vmem:[#allocation101_spill] sm:$0xff] }
 0x2e6   : > { %v6077_v10 = vmax.f32 %v6075_v51, %v6076_v36  ;;  %v383_v51 = vsel %vm263_vm0, %v381_v9, 0.0  ;;  %v430_v36 = vmul.f32 %v6014_v21, %v428_v38  ;;  %v1520_v9 = vsub.f32 %v1496_v16, %v1508_v40  ;;  %v6090_v40 = vld [vmem:[#allocation90_spill] sm:$0xff]  ;;  %v6094_v21 = vld [vmem:[#allocation92_spill] sm:$0xff] }
 0x2e7   : > { %v1509_v38 = vmul.f32 %v1497_v12, %v5162_v54  ;;  %v1009_v50 = vsub.f32 %v6086_v8, %v997_v49  ;;  %v1529_v7 = vmax.f32 %v1517_v1, 0.0  ;;  %v1531_v19 = vmax.f32 %v1519_v30, 0.0 }
 0x2e8   : > { %v1465_v26 = vmax.f32 %v6078_v22, %v6077_v10  ;;  %v431_v10 = vmul.f32 %v6015_v2, %v429_v25  ;;  %v6080_v22 = vld [vmem:[#allocation26_spill] sm:$0xff]  ;;  %v1499_v25 = vmul.f32 %v1487_v43, %v5166_v32  ;;  %v1498_v2 = vmul.f32 %v1486_v24, %v5164_v42 }
 0x2e9   : > { %314 = vadd.xlane.f32.xlu0 %v313_v15  ;;  %v1007_v39 = vsub.f32 %v6080_v22, %v5213_v45  ;;  %v5301_v15 = vpop.permute.xlu1 %2452  ;;  %v384_v45 = vadd.f32 %v383_v51, %v382_v23  ;;  %v6091_v23 = vld [vmem:[#allocation135_spill] sm:$0xff]  ;;  %v6092_v51 = vld [vmem:[#allocation136_spill] sm:$0xff] }
 0x2ea   : > { %v1477_v61 = vsub.f32 %v6083_v63, %v1465_v26  ;;  %6084 = vst [vmem:[#allocation73_spill] sm:$0xff] %v5301_v15  ;;  %v432_v26 = vsel %vm263_vm0, %v430_v36, 0.0  ;;  %v433_v55 = vsel %vm263_vm0, %v431_v10, 0.0  ;;  %v6093_v63 = vmax.f32 %v6091_v23, %v6092_v51  ;;  %v6105_v51 = vld [vmem:[#allocation54_spill] sm:$0xff] }
 0x2eb   : > { %v5323_v22 = vmax.f32 %v1007_v39, 0.0  ;;  %v1530_v36 = vmax.f32 %v1518_v14, 0.0  ;;  %v1532_v10 = vmax.f32 %v1520_v9, 0.0  ;;  %v1521_v15 = vsub.f32 %v1497_v12, %v1509_v38  ;;  %v6095_v39 = vld [vmem:[#allocation43_spill] sm:$0xff]  ;;  %v6096_v14 = vld [vmem:[#allocation41_spill] sm:$0xff] }
 0x2ec   : > { %v5313_v16 = vmax.f32 %v1477_v61, 0.0  ;;  %v1467_v20 = vmax.f32 %v6094_v21, %v6093_v63  ;;  %v1511_v49 = vsub.f32 %v1487_v43, %v1499_v25  ;;  %v434_v8 = vadd.f32 %v433_v55, %v432_v26 }
 0x2ed   : > { %335 = vadd.xlane.f32.xlu0 %v334_v41  ;;  %v1466_v41 = vmax.f32 %v6090_v40, %v6089_v28  ;;  %v5325_v61 = vpop.permute.xlu1 %2406  ;;  %v1510_v35 = vsub.f32 %v1486_v24, %v1498_v2  ;;  %v1512_v28 = vsub.f32 %v1488_v13, %v1500_v11  ;;  %v1516_v40 = vsub.f32 %v1492_v57, %v1504_v5  ;;  %v5348_v13 = vpop.permute.xlu0 %1882 }
 0x2ee   : > { %v5329_v23 = vmax.f32 %v1009_v50, 0.0  ;;  %v1501_v21 = vmul.f32 %v5313_v16, %v5323_v22  ;;  %v1479_v30 = vsub.f32 %v6096_v14, %v1467_v20  ;;  %v5336_v12 = vadd.f32 %v1529_v7, %v5146_v6  ;;  %v6100_v6 = vld [vmem:[#allocation106_spill] sm:$0xff] }
 0x2ef   : > { %v1478_v1 = vsub.f32 %v6095_v39, %v1466_v41  ;;  %v6097_v43 = vmax.f32 %v4885_v4, %v4888_v46  ;;  %v5343_v2 = vadd.f32 %v1530_v36, %v5148_v52  ;;  %v5346_v24 = vadd.f32 %v1531_v19, %v5154_v60  ;;  %v6106_v36 = vld [vmem:[#allocation60_spill] sm:$0xff] }
 0x2f0   : > { %v1533_v57 = vmax.f32 %v1521_v15, 0.0  ;;  %v1523_v38 = vmax.f32 %v1511_v49, 0.0  ;;  %v6099_v20 = vmax.f32 %v4912_v37, %v4915_v59  ;;  %v5355_v25 = vadd.f32 %v1532_v10, %v5156_v62  ;;  %v6103_v62 = vld [vmem:[#allocation51_spill] sm:$0xff] }
 0x2f1   : > { %385 = vadd.xlane.f32.xlu0 %v384_v45  ;;  %v1987_v9 = vmax.f32 %v6098_v34, %v6097_v43  ;;  %v1522_v4 = vmax.f32 %v1510_v35, 0.0  ;;  %v1524_v46 = vmax.f32 %v1512_v28, 0.0  ;;  %v1528_v52 = vmax.f32 %v1516_v40, 0.0  ;;  %v6102_v45 = vld [vmem:[#allocation110_spill] sm:$0xff]  ;;  %v5364_v59 = vpop.permute.xlu1 %2454  ;;  %v5385_v10 = vpop.permute.xlu0 %1930  ;;  %v6107_v35 = vld [vmem:[#allocation57_spill] sm:$0xff] }
 0x2f2   : > { %v1988_v7 = vmax.f32 %v6100_v6, %v6099_v20  ;;  %v6101_v60 = vmax.f32 %v4966_v29, %v4976_v31  ;;  %v1513_v15 = vsub.f32 %v5313_v16, %v1501_v21  ;;  %v1490_v5 = vmax.f32 %v1478_v1, 0.0  ;;  %v6104_v31 = vld [vmem:[#allocation53_spill] sm:$0xff]  ;;  %v6108_v20 = vld [vmem:[#allocation123_spill] sm:$0xff] }
 0x2f3   : > { %v1491_v19 = vmax.f32 %v1479_v30, 0.0  ;;  %v1966_v37 = vsel %vm691_vm13, %v5122_v56, -1e+30  ;;  %v1999_v26 = vsub.f32 %v6103_v62, %v1987_v9  ;;  %v1918_v55 = vsel %vm642_vm12, -1e+30, %v5094_v17  ;;  %v6112_v62 = vld [vmem:[#allocation130_spill] sm:$0xff] }
 0x2f4   : > { %v1989_v11 = vmax.f32 %v6102_v45, %v6101_v60  ;;  %v1957_v29 = vsel %vm691_vm13, %v5225_v58, -1e+30  ;;  %v2000_v50 = vsub.f32 %v6104_v31, %v1988_v7  ;;  %v1962_v16 = vsel %vm691_vm13, %v5196_v47, -1e+30  ;;  %v6109_v60 = vld [vmem:[#allocation126_spill] sm:$0xff] }
 0x2f5   : > { %435 = vadd.xlane.f32.xlu0 %v434_v8  ;;  %v1956_v8 = vsel %vm691_vm13, %v5131_v0, -1e+30  ;;  %v1914_v56 = vsel %vm642_vm12, -1e+30, %v5256_v27  ;;  %v1958_v41 = vsel %vm691_vm13, %v5285_v33, -1e+30  ;;  %v1978_v17 = vmax.f32 %v1918_v55, %v1966_v37  ;;  %v5400_v43 = vpop.permute.xlu1 %2408 }
 0x2f6   : > { %v2001_v63 = vsub.f32 %v6105_v51, %v1989_v11  ;;  %v1908_v0 = vsel %vm642_vm12, -1e+30, %v5100_v53  ;;  %v1909_v58 = vsel %vm642_vm12, -1e+30, %v6106_v36  ;;  %v1502_v49 = vmul.f32 %v1490_v5, %v5327_v44  ;;  %v6110_v11 = vld [vmem:[#allocation129_spill] sm:$0xff]  ;;  %v6118_v51 = vld [vmem:[#allocation66_spill] sm:$0xff] }
 0x2f7   : > { %v1968_v47 = vmax.f32 %v1908_v0, %v1956_v8  ;;  %v1910_v27 = vsel %vm642_vm12, -1e+30, %v6107_v35  ;;  %v1969_v28 = vmax.f32 %v1909_v58, %v1957_v29  ;;  %v1503_v33 = vmul.f32 %v1491_v19, %v5329_v23  ;;  %v6113_v55 = vld [vmem:[#allocation73_spill] sm:$0xff]  ;;  %v6115_v29 = vld [vmem:[#allocation62_spill] sm:$0xff]  ;;  %v6119_v58 = vld [vmem:[#allocation52_spill] sm:$0xff] }
 0x2f8   : > { %v5392_v40 = vadd.f32 %v1533_v57, %v5162_v54  ;;  %v1974_v21 = vmax.f32 %v1914_v56, %v1962_v16  ;;  %v1970_v39 = vmax.f32 %v1910_v27, %v1958_v41  ;;  %v2011_v53 = vmax.f32 %v1999_v26, 0.0  ;;  %v2405_v54 = vpop.permute.xlu0 %2404  ;;  %v6117_v56 = vld [vmem:[#allocation67_spill] sm:$0xff] }
 0x2f9   : > { %v2012_v1 = vmax.f32 %v2000_v50, 0.0  ;;  %v5395_v14 = vadd.f32 %v1522_v4, %v5164_v42  ;;  %v5398_v30 = vadd.f32 %v1523_v38, %v5166_v32  ;;  %v1525_v34 = vmax.f32 %v1513_v15, 0.0  ;;  %v6111_v38 = vld [vmem:[#allocation133_spill] sm:$0xff]  ;;  %v2457_v0 = vpop.permute.xlu1 %2456 }
 0x2fa   : > { %v2013_v9 = vmax.f32 %v2001_v63, 0.0  ;;  %v1990_v6 = vmax.f32 %v6108_v20, %v1978_v17  ;;  %v5404_v7 = vadd.f32 %v1524_v46, %v5198_v18  ;;  %v1514_v57 = vsub.f32 %v1490_v5, %v1502_v49 }
 0x2fb   : > { %v1980_v45 = vmax.f32 %v6109_v60, %v1968_v47  ;;  %v1981_v37 = vmax.f32 %v6110_v11, %v1969_v28  ;;  %v5409_v42 = vadd.f32 %v1528_v52, %v5200_v48  ;;  %v1515_v32 = vsub.f32 %v1491_v19, %v1503_v33  ;;  %v6114_v52 = vld [vmem:[#allocation55_spill] sm:$0xff]  ;;  %v6120_v47 = vld [vmem:[#allocation68_spill] sm:$0xff] }
 0x2fc   : > { %v1986_v4 = vmax.f32 %v6111_v38, %v1974_v21  ;;  %v1982_v15 = vmax.f32 %v6112_v62, %v1970_v39  ;;  %v1959_v26 = vsel %vm691_vm13, %v5260_v3, -1e+30  ;;  %v2023_v18 = vmul.f32 %v2011_v53, %v5336_v12  ;;  %v6116_v3 = vld [vmem:[#allocation14_spill] sm:$0xff] }
 0x2fd   : > { %v2024_v46 = vmul.f32 %v2012_v1, %v5343_v2  ;;  %v2433_v5 = vsel %vm642_vm12, -1e+30, %v2405_v54  ;;  %v2481_v8 = vsel %vm691_vm13, %v6113_v55, -1e+30  ;;  %v2025_v48 = vmul.f32 %v2013_v9, %v5346_v24  ;;  %v6126_v55 = vld [vmem:[#allocation125_spill] sm:$0xff] }
 0x2fe   : > { %v2002_v19 = vsub.f32 %v6114_v52, %v1990_v6  ;;  %v1911_v31 = vsel %vm642_vm12, -1e+30, %v6115_v29  ;;  %v5425_v50 = vadd.f32 %v1525_v34, %v5323_v22  ;;  %v1967_v16 = vsel %vm691_vm13, %v6116_v3, -1e+30  ;;  %v6121_v22 = vld [vmem:[#allocation151_spill] sm:$0xff] }
 0x2ff   : > { %v1992_v41 = vsub.f32 %v6117_v56, %v1980_v45  ;;  %v1993_v63 = vsub.f32 %v6118_v51, %v1981_v37  ;;  %v1971_v17 = vmax.f32 %v1911_v31, %v1959_v26  ;;  %v1526_v36 = vmax.f32 %v1514_v57, 0.0  ;;  %v6122_v45 = vld [vmem:[#allocation134_spill] sm:$0xff]  ;;  %v6123_v37 = vld [vmem:[#allocation85_spill] sm:$0xff]  ;;  %v6125_v26 = vld [vmem:[#allocation64_spill] sm:$0xff] }
 0x300   : > { %v1998_v49 = vsub.f32 %v6119_v58, %v1986_v4  ;;  %v1994_v35 = vsub.f32 %v6120_v47, %v1982_v15  ;;  %v2493_v27 = vmax.f32 %v2433_v5, %v2481_v8  ;;  %v1527_v28 = vmax.f32 %v1515_v32, 0.0  ;;  %v6127_v31 = vld [vmem:[#allocation70_spill] sm:$0xff] }
 0x301   : > { %v2035_v33 = vsub.f32 %v2011_v53, %v2023_v18  ;;  %v2036_v21 = vsub.f32 %v2012_v1, %v2024_v46  ;;  %v1919_v39 = vsel %vm642_vm12, -1e+30, %v6121_v22  ;;  %v2037_v34 = vsub.f32 %v2013_v9, %v2025_v48  ;;  %v6124_v1 = vld [vmem:[#allocation139_spill] sm:$0xff]  ;;  %v5447_v46 = vpop.permute.xlu1 %2410 }
 0x302   : > { %v5435_v20 = vmax.f32 %v2002_v19, 0.0  ;;  %v1979_v6 = vmax.f32 %v1919_v39, %v1967_v16  ;;  %v2482_v54 = vsel %vm691_vm13, %v5364_v59, -1e+30  ;;  %v2004_v60 = vmax.f32 %v1992_v41, 0.0  ;;  %v6128_v41 = vld [vmem:[#allocation93_spill] sm:$0xff] }
 0x303   : > { %v2005_v57 = vmax.f32 %v1993_v63, 0.0  ;;  %v1983_v11 = vmax.f32 %v6122_v45, %v1971_v17  ;;  %v1960_v38 = vsel %vm691_vm13, %v6123_v37, -1e+30  ;;  %v2010_v32 = vmax.f32 %v1998_v49, 0.0  ;;  %v6129_v49 = vld [vmem:[#allocation140_spill] sm:$0xff] }
 0x304   : > { %v2006_v53 = vmax.f32 %v1994_v35, 0.0  ;;  %v2505_v4 = vmax.f32 %v6124_v1, %v2493_v27  ;;  %v2434_v9 = vsel %vm642_vm12, -1e+30, %v5325_v61  ;;  %v2047_v62 = vmax.f32 %v2035_v33, 0.0  ;;  %v6130_v27 = vld [vmem:[#allocation56_spill] sm:$0xff] }
 0x305   : > { %v2048_v15 = vmax.f32 %v2036_v21, 0.0  ;;  %v1912_v18 = vsel %vm642_vm12, -1e+30, %v6125_v26  ;;  %v2494_v59 = vmax.f32 %v2434_v9, %v2482_v54  ;;  %v2049_v5 = vmax.f32 %v2037_v34, 0.0  ;;  %v6131_v21 = vld [vmem:[#allocation137_spill] sm:$0xff]  ;;  %v6133_v9 = vld [vmem:[#allocation72_spill] sm:$0xff] }
 0x306   : > { %v1991_v8 = vmax.f32 %v6126_v55, %v1979_v6  ;;  %v5451_v48 = vadd.f32 %v1526_v36, %v5327_v44  ;;  %v1972_v52 = vmax.f32 %v1912_v18, %v1960_v38  ;;  %v2026_v19 = vmul.f32 %v5435_v20, %v5355_v25  ;;  %v6132_v38 = vld [vmem:[#allocation95_spill] sm:$0xff]  ;;  %v6135_v55 = vld [vmem:[#allocation144_spill] sm:$0xff] }
 0x307   : > { %v2016_v61 = vmul.f32 %v2004_v60, %v5395_v14  ;;  %v2017_v29 = vmul.f32 %v2005_v57, %v5398_v30  ;;  %v1995_v3 = vsub.f32 %v6127_v31, %v1983_v11  ;;  %v2022_v16 = vmul.f32 %v2010_v32, %v5409_v42 }
 0x308   : > { %v2018_v56 = vmul.f32 %v2006_v53, %v5404_v7  ;;  %v2517_v51 = vsub.f32 %v6128_v41, %v2505_v4  ;;  %v2483_v63 = vsel %vm691_vm13, %v2457_v0, -1e+30  ;;  %v5463_v17 = vadd.f32 %v1527_v28, %v5329_v23 }
 0x309   : > { %v5466_v36 = vadd.f32 %v2047_v62, %v5336_v12  ;;  %v5469_v58 = vadd.f32 %v2048_v15, %v5343_v2  ;;  %v2506_v47 = vmax.f32 %v6129_v49, %v2494_v59  ;;  %v2003_v33 = vsub.f32 %v6130_v27, %v1991_v8  ;;  %v6138_v49 = vld [vmem:[#allocation96_spill] sm:$0xff] }
 0x30a   : > { %v1984_v22 = vmax.f32 %v6131_v21, %v1972_v52  ;;  %v2435_v0 = vsel %vm642_vm12, -1e+30, %v5400_v43  ;;  %v5477_v39 = vadd.f32 %v2049_v5, %v5346_v24  ;;  %v2038_v23 = vsub.f32 %v5435_v20, %v2026_v19 }
 0x30b   : > { %v2028_v12 = vsub.f32 %v2004_v60, %v2016_v61  ;;  %v2007_v28 = vmax.f32 %v1995_v3, 0.0  ;;  %v2495_v34 = vmax.f32 %v2435_v0, %v2483_v63  ;;  %v2029_v2 = vsub.f32 %v2005_v57, %v2017_v29  ;;  %v6136_v29 = vld [vmem:[#allocation145_spill] sm:$0xff] }
 0x30c   : > { %v2391_v44 = vpop.permute.xlu0 %2390  ;;  %v2034_v6 = vsub.f32 %v2010_v32, %v2022_v16  ;;  %v2030_v54 = vsub.f32 %v2006_v53, %v2018_v56  ;;  %v2529_v45 = vmax.f32 %v2517_v51, 0.0  ;;  %v1961_v37 = vsel %vm691_vm13, %v5385_v10, -1e+30  ;;  %v6134_v10 = vld [vmem:[#allocation141_spill] sm:$0xff] }
 0x30d   : > { %v2393_v35 = vpop.permute.xlu1 %2392  ;;  %v2518_v1 = vsub.f32 %v6132_v38, %v2506_v47  ;;  %v2426_v43 = vsel %vm642_vm12, -1e+30, %v2391_v44  ;;  %v1996_v20 = vsub.f32 %v6133_v9, %v1984_v22  ;;  %v2019_v32 = vmul.f32 %v2007_v28, %v5425_v50 }
 0x30e   : > { %v2427_v60 = vsel %vm642_vm12, -1e+30, %v2393_v35  ;;  %v1913_v53 = vsel %vm642_vm12, -1e+30, %v5348_v13  ;;  %v2507_v15 = vmax.f32 %v6134_v10, %v2495_v34  ;;  %v2040_v18 = vmax.f32 %v2028_v12, 0.0  ;;  %v6137_v13 = vld [vmem:[#allocation113_spill] sm:$0xff] }
 0x30f   : > { %v1973_v59 = vmax.f32 %v1913_v53, %v1961_v37  ;;  %v2541_v5 = vmul.f32 %v2529_v45, %v5466_v36  ;;  %v5494_v52 = vmax.f32 %v2003_v33, 0.0  ;;  %v2041_v19 = vmax.f32 %v2029_v2, 0.0  ;;  %v6139_v35 = vld [vmem:[#allocation112_spill] sm:$0xff]  ;;  %v6140_v33 = vld [vmem:[#allocation138_spill] sm:$0xff] }
 0x310   : > { %v2439_v11 = vpop.permute.xlu0 %2438  ;;  %v2530_v61 = vmax.f32 %v2518_v1, 0.0  ;;  %v2046_v3 = vmax.f32 %v2034_v6, 0.0  ;;  %v2042_v16 = vmax.f32 %v2030_v54, 0.0  ;;  %v5497_v56 = vmax.f32 %v1996_v20, 0.0 }
 0x311   : > { %v2474_v24 = vsel %vm691_vm13, %v2439_v11, -1e+30  ;;  %v2441_v4 = vpop.permute.xlu1 %2440  ;;  %v5500_v63 = vmax.f32 %v2038_v23, 0.0  ;;  %v2031_v44 = vsub.f32 %v2007_v28, %v2019_v32  ;;  %v2519_v47 = vsub.f32 %v6138_v49, %v2507_v15  ;;  %v6142_v15 = vld [vmem:[#allocation147_spill] sm:$0xff] }
 0x312   : > { %v2486_v62 = vmax.f32 %v2426_v43, %v2474_v24  ;;  %v2475_v57 = vsel %vm691_vm13, %v2441_v4, -1e+30  ;;  %v1985_v21 = vmax.f32 %v6140_v33, %v1973_v59  ;;  %v2553_v22 = vsub.f32 %v2529_v45, %v2541_v5  ;;  %v6141_v24 = vld [vmem:[#allocation69_spill] sm:$0xff]  ;;  %v6146_v33 = vld [vmem:[#allocation94_spill] sm:$0xff] }
 0x313   : > { %v2487_v26 = vmax.f32 %v2427_v60, %v2475_v57  ;;  %v2052_v0 = vadd.f32 %v2040_v18, %v5395_v14  ;;  %v2542_v2 = vmul.f32 %v2530_v61, %v5469_v58  ;;  %v2053_v6 = vadd.f32 %v2041_v19, %v5398_v30 }
 0x314   : > { %v2498_v8 = vmax.f32 %v6135_v55, %v2486_v62  ;;  %v5511_v28 = vmul.f32 %v5497_v56, %v5451_v48  ;;  %v5514_v37 = vadd.f32 %v2042_v16, %v5404_v7  ;;  %v5517_v14 = vadd.f32 %v2046_v3, %v5409_v42  ;;  %v6144_v3 = vld [vmem:[#allocation146_spill] sm:$0xff] }
 0x315   : > { %v2499_v31 = vmax.f32 %v6136_v29, %v2487_v26  ;;  %v2403_v51 = vpop.permute.xlu1 %2402  ;;  %v5519_v38 = vmax.f32 %v2031_v44, 0.0  ;;  %v2531_v1 = vmax.f32 %v2519_v47, 0.0  ;;  %v1997_v4 = vsub.f32 %v6141_v24, %v1985_v21  ;;  %v6143_v29 = vld [vmem:[#allocation114_spill] sm:$0xff] }
 0x316   : > { %v2510_v41 = vsub.f32 %v6137_v13, %v2498_v8  ;;  %v2565_v9 = vmax.f32 %v2553_v22, 0.0  ;;  %v2554_v57 = vsub.f32 %v2530_v61, %v2542_v2  ;;  %v2432_v7 = vsel %vm642_vm12, -1e+30, %v2403_v51  ;;  %v6145_v47 = vld [vmem:[#allocation10_spill] sm:$0xff] }
 0x317   : > { %v2511_v27 = vsub.f32 %v6139_v35, %v2499_v31  ;;  %v2032_v42 = vsub.f32 %v5497_v56, %v5511_v28  ;;  %v2543_v5 = vmul.f32 %v2531_v1, %v5477_v39  ;;  %v2436_v55 = vsel %vm642_vm12, -1e+30, %v5447_v46  ;;  %v6148_v2 = vld [vmem:[#allocation142_spill] sm:$0xff] }
 0x318   : > { %v2522_v12 = vmax.f32 %v2510_v41, 0.0  ;;  %v2395_v34 = vpop.permute.xlu0 %2394  ;;  %v5534_v41 = vmax.f32 %v1997_v4, 0.0  ;;  %v2577_v51 = vadd.f32 %v2565_v9, %v5466_v36  ;;  %v2566_v44 = vmax.f32 %v2554_v57, 0.0 }
 0x319   : > { %v2523_v54 = vmax.f32 %v2511_v27, 0.0  ;;  %v2428_v23 = vsel %vm642_vm12, -1e+30, %v2395_v34  ;;  %v2443_v45 = vpop.permute.xlu1 %2442  ;;  %v2555_v22 = vsub.f32 %v2531_v1, %v2543_v5  ;;  %v2044_v5 = vmax.f32 %v2032_v42, 0.0 }
 0x31a   : > { %v2534_v11 = vmul.f32 %v2522_v12, %v2052_v0  ;;  %v2476_v30 = vsel %vm691_vm13, %v2443_v45, -1e+30  ;;  %v6149_v45 = vld [vmem:[#allocation97_spill] sm:$0xff] }
 0x31b   : > { %v2535_v43 = vmul.f32 %v2523_v54, %v2053_v6  ;;  %v2488_v60 = vmax.f32 %v2428_v23, %v2476_v30  ;;  %v2567_v57 = vmax.f32 %v2555_v22, 0.0 }
 0x31c   : > { %v2546_v20 = vsub.f32 %v2522_v12, %v2534_v11  ;;  %v2451_v62 = vpop.permute.xlu0 %2450 }
 0x31d   : > { %v2547_v32 = vsub.f32 %v2523_v54, %v2535_v43  ;;  %v2480_v53 = vsel %vm691_vm13, %v2451_v62, -1e+30  ;;  %v2500_v26 = vmax.f32 %v6142_v15, %v2488_v60  ;;  %v2459_v59 = vpop.permute.xlu1 %2458  ;;  %v2578_v62 = vadd.f32 %v2566_v44, %v5469_v58  ;;  %v6154_v44 = vld [vmem:[#allocation8_spill] sm:$0xff] }
 0x31e   : > { %v2558_v10 = vmax.f32 %v2546_v20, 0.0  ;;  %v2492_v18 = vmax.f32 %v2432_v7, %v2480_v53  ;;  %v2484_v19 = vsel %vm691_vm13, %v2459_v59, -1e+30  ;;  %v5555_v53 = vmul.f32 %v5494_v52, %v5392_v40 }
 0x31f   : > { %v2559_v8 = vmax.f32 %v2547_v32, 0.0  ;;  %v2512_v31 = vsub.f32 %v6143_v29, %v2500_v26  ;;  %v2496_v13 = vmax.f32 %v2436_v55, %v2484_v19  ;;  %v2062_v32 = vadd.f32 %v5500_v63, %v5355_v25  ;;  %v6150_v26 = vld [vmem:[#allocation148_spill] sm:$0xff] }
 0x320   : > { %v2570_v61 = vadd.f32 %v2558_v10, %v2052_v0  ;;  %v2504_v16 = vmax.f32 %v6144_v3, %v2492_v18  ;;  %v2397_v56 = vpop.permute.xlu0 %2396  ;;  %v6147_v0 = vld [vmem:[#allocation11_spill] sm:$0xff]  ;;  %v2021_v55 = vmul.f32 %v5534_v41, %v5463_v17  ;;  %v2055_v58 = vadd.f32 %v5519_v38, %v5425_v50  ;;  %v6151_v19 = vld [vmem:[#allocation24_spill] sm:$0xff] }
 0x321   : > { %v2571_v49 = vadd.f32 %v2559_v8, %v2053_v6  ;;  %v2524_v27 = vmax.f32 %v2512_v31, 0.0  ;;  %v2508_v54 = vmax.f32 %v6148_v2, %v2496_v13  ;;  %v2429_v30 = vsel %vm642_vm12, -1e+30, %v2397_v56  ;;  %v6152_v29 = vld [vmem:[#allocation116_spill] sm:$0xff] }
 0x322   : > { %v2582_v35 = vmul.f32 %v6145_v47, %v2570_v61  ;;  %v2608_v46 = vsel %vm263_vm0, %v2570_v61, 0.0  ;;  %v2516_v21 = vsub.f32 %v6146_v33, %v2504_v16  ;;  %v2629_v25 = vmul.f32 %v6151_v19, %v2577_v51  ;;  %v6153_v16 = vld [vmem:[#allocation22_spill] sm:$0xff] }
 0x323   : > { %v2583_v12 = vmul.f32 %v6147_v0, %v2571_v49  ;;  %v2609_v34 = vsel %vm263_vm0, %v2571_v49, 0.0  ;;  %v2536_v23 = vmul.f32 %v2524_v27, %v5514_v37  ;;  %v2520_v43 = vsub.f32 %v6149_v45, %v2508_v54 }
 0x324   : > { %v2528_v28 = vmax.f32 %v2516_v21, 0.0  ;;  %v2445_v36 = vpop.permute.xlu0 %2444  ;;  %v2610_v11 = vadd.f32 %v2609_v34, %v2608_v46  ;;  %v2588_v6 = vsel %vm263_vm0, %v2582_v35, 0.0  ;;  %v2655_v3 = vsel %vm263_vm0, %v2577_v51, 0.0  ;;  %v6155_v51 = vld [vmem:[#allocation21_spill] sm:$0xff] }
 0x325   : > { %v2477_v24 = vsel %vm691_vm13, %v2445_v36, -1e+30  ;;  %v2589_v1 = vsel %vm263_vm0, %v2583_v12, 0.0  ;;  %v2548_v4 = vsub.f32 %v2524_v27, %v2536_v23  ;;  %v2532_v7 = vmax.f32 %v2520_v43, 0.0  ;;  %v6156_v23 = vld [vmem:[#allocation149_spill] sm:$0xff] }
 0x326   : > { %v2540_v9 = vmul.f32 %v2528_v28, %v5517_v14  ;;  %v2489_v20 = vmax.f32 %v2429_v30, %v2477_v24  ;;  %v2590_v60 = vadd.f32 %v2589_v1, %v2588_v6  ;;  %v2630_v13 = vmul.f32 %v6153_v16, %v2578_v62  ;;  %v6157_v30 = vld [vmem:[#allocation26_spill] sm:$0xff] }
 0x327   : > { %v2560_v10 = vmax.f32 %v2548_v4, 0.0  ;;  %v2544_v8 = vmul.f32 %v2532_v7, %v2062_v32  ;;  %v2579_v42 = vadd.f32 %v2567_v57, %v5477_v39  ;;  %v2657_v2 = vsel %vm263_vm0, %v2578_v62, 0.0 }
 0x328   : > { %v2552_v15 = vsub.f32 %v2528_v28, %v2540_v9  ;;  %v2501_v18 = vmax.f32 %v6150_v26, %v2489_v20  ;;  %v2399_v59 = vpop.permute.xlu0 %2398  ;;  %v2635_v1 = vsel %vm263_vm0, %v2629_v25, 0.0  ;;  %v6158_v9 = vld [vmem:[#allocation120_spill] sm:$0xff] }
 0x329   : > { %v2572_v63 = vadd.f32 %v2560_v10, %v5514_v37  ;;  %v2556_v56 = vsub.f32 %v2532_v7, %v2544_v8  ;;  %v2430_v37 = vsel %vm642_vm12, -1e+30, %v2399_v59  ;;  %v2631_v24 = vmul.f32 %v6157_v30, %v2579_v42 }
 0x32a   : > { %v2564_v61 = vmax.f32 %v2552_v15, 0.0  ;;  %v2513_v31 = vsub.f32 %v6152_v29, %v2501_v18  ;;  %v2659_v57 = vsel %vm263_vm0, %v2579_v42, 0.0  ;;  %v2637_v10 = vsel %vm263_vm0, %v2630_v13, 0.0  ;;  %v6159_v18 = vld [vmem:[#allocation23_spill] sm:$0xff] }
 0x32b   : > { %v2584_v49 = vmul.f32 %v6154_v44, %v2572_v63  ;;  %v2611_v38 = vsel %vm263_vm0, %v2572_v63, 0.0  ;;  %v2568_v46 = vmax.f32 %v2556_v56, 0.0  ;;  %v2639_v63 = vsel %vm263_vm0, %v2631_v24, 0.0  ;;  %v6161_v44 = vld [vmem:[#allocation150_spill] sm:$0xff] }
 0x32c   : > { %v2576_v47 = vadd.f32 %v2564_v61, %v5517_v14  ;;  %v2525_v35 = vmax.f32 %v2513_v31, 0.0  ;;  %v2447_v50 = vpop.permute.xlu0 %2446  ;;  %v2612_v33 = vadd.f32 %v2611_v38, %v2610_v11  ;;  %v2056_v11 = vadd.f32 %v2044_v5, %v5451_v48  ;;  %v2461_v61 = vpop.permute.xlu1 %2460  ;;  %v6160_v31 = vld [vmem:[#allocation9_spill] sm:$0xff] }
 0x32d   : > { %v2478_v27 = vsel %vm691_vm13, %v2447_v50, -1e+30  ;;  %v2591_v12 = vsel %vm263_vm0, %v2584_v49, 0.0  ;;  %v2580_v34 = vadd.f32 %v2568_v46, %v2062_v32  ;;  %v2033_v32 = vsub.f32 %v5534_v41, %v2021_v55 }
 0x32e   : > { %v2628_v21 = vmul.f32 %v6155_v51, %v2576_v47  ;;  %v2654_v22 = vsel %vm263_vm0, %v2576_v47, 0.0  ;;  %v2537_v39 = vmul.f32 %v2525_v35, %v2055_v58  ;;  %v2490_v0 = vmax.f32 %v2430_v37, %v2478_v27 }
 0x32f   : > { %v2656_v14 = vadd.f32 %v2655_v3, %v2654_v22  ;;  %v2592_v6 = vadd.f32 %v2591_v12, %v2590_v60  ;;  %v2661_v60 = vsel %vm263_vm0, %v2580_v34, 0.0  ;;  %v2632_v59 = vmul.f32 %v6159_v18, %v2580_v34 }
 0x330   : > { %v2549_v54 = vsub.f32 %v2525_v35, %v2537_v39  ;;  %v2502_v28 = vmax.f32 %v6156_v23, %v2490_v0  ;;  %v2401_v36 = vpop.permute.xlu0 %2400  ;;  %v2634_v45 = vsel %vm263_vm0, %v2628_v21, 0.0  ;;  %v2045_v16 = vmax.f32 %v2033_v32, 0.0  ;;  %v6162_v21 = vld [vmem:[#allocation115_spill] sm:$0xff] }
 0x331   : > { %v2658_v43 = vadd.f32 %v2657_v2, %v2656_v14  ;;  %v2636_v62 = vadd.f32 %v2635_v1, %v2634_v45  ;;  %v2431_v8 = vsel %vm642_vm12, -1e+30, %v2401_v36  ;;  %v2641_v50 = vsel %vm263_vm0, %v2632_v59, 0.0  ;;  %v6163_v0 = vld [vmem:[#allocation143_spill] sm:$0xff] }
 0x332   : > { %v2561_v4 = vmax.f32 %v2549_v54, 0.0  ;;  %v2514_v20 = vsub.f32 %v6158_v9, %v2502_v28  ;;  %v2485_v38 = vsel %vm691_vm13, %v2461_v61, -1e+30  ;;  %v2057_v22 = vadd.f32 %v2045_v16, %v5463_v17  ;;  %v6164_v2 = vld [vmem:[#allocation99_spill] sm:$0xff]  ;;  %v6165_v28 = vld [vmem:[#allocation12_spill] sm:$0xff] }
 0x333   : > { %v2660_v7 = vadd.f32 %v2659_v57, %v2658_v43  ;;  %v2638_v5 = vadd.f32 %v2637_v10, %v2636_v62  ;;  %v6166_v62 = vld [vmem:[#allocation13_spill] sm:$0xff] }
 0x334   : > { %v2573_v15 = vadd.f32 %v2561_v4, %v2055_v58  ;;  %v2526_v48 = vmax.f32 %v2514_v20, 0.0  ;;  %v2449_v26 = vpop.permute.xlu0 %2448  ;;  %v2039_v58 = vsub.f32 %v5494_v52, %v5555_v53 }
 0x335   : > { %v2479_v19 = vsel %vm691_vm13, %v2449_v26, -1e+30  ;;  %v2662_v25 = vadd.f32 %v2661_v60, %v2660_v7  ;;  %v2640_v42 = vadd.f32 %v2639_v63, %v2638_v5 }
 0x336   : > { %v2538_v41 = vmul.f32 %v2526_v48, %v2056_v11  ;;  %v2491_v55 = vmax.f32 %v2431_v8, %v2479_v19  ;;  %v2613_v29 = vsel %vm263_vm0, %v2573_v15, 0.0  ;;  %v2585_v3 = vmul.f32 %v6160_v31, %v2573_v15 }
 0x337   : > { %v2614_v13 = vadd.f32 %v2613_v29, %v2612_v33  ;;  %v2642_v27 = vadd.f32 %v2641_v50, %v2640_v42  ;;  %v2051_v33 = vmax.f32 %v2039_v58, 0.0 }
 0x338   : > { %v2550_v56 = vsub.f32 %v2526_v48, %v2538_v41  ;;  %v2503_v49 = vmax.f32 %v6161_v44, %v2491_v55  ;;  %v2413_v47 = vpop.permute.xlu0 %2412  ;;  %v2593_v35 = vsel %vm263_vm0, %v2585_v3, 0.0  ;;  %v6167_v48 = vld [vmem:[#allocation25_spill] sm:$0xff] }
 0x339   : > { %v2437_v46 = vsel %vm642_vm12, -1e+30, %v2413_v47  ;;  %v2594_v37 = vadd.f32 %v2593_v35, %v2592_v6  ;;  %v2063_v43 = vadd.f32 %v2051_v33, %v5392_v40 }
 0x33a   : > { %v2562_v51 = vmax.f32 %v2550_v56, 0.0  ;;  %v2515_v52 = vsub.f32 %v6162_v21, %v2503_v49  ;;  %v2497_v53 = vmax.f32 %v2437_v46, %v2485_v38 }
 0x33c   : > { %v2527_v39 = vmax.f32 %v2515_v52, 0.0  ;;  %v2509_v12 = vmax.f32 %v6163_v0, %v2497_v53  ;;  %v2574_v34 = vadd.f32 %v2562_v51, %v2056_v11 }
 0x33e   : > { %v2539_v14 = vmul.f32 %v2527_v39, %v2057_v22  ;;  %v2521_v54 = vsub.f32 %v6164_v2, %v2509_v12  ;;  %v2615_v23 = vsel %vm263_vm0, %v2574_v34, 0.0  ;;  %v2586_v36 = vmul.f32 %v6165_v28, %v2574_v34 }
 0x33f   : > { %v2616_v6 = vadd.f32 %v2615_v23, %v2614_v13 }
 0x340   : > { %v2551_v45 = vsub.f32 %v2527_v39, %v2539_v14  ;;  %v2533_v30 = vmax.f32 %v2521_v54, 0.0  ;;  %v2595_v24 = vsel %vm263_vm0, %v2586_v36, 0.0 }
 0x341   : > { %v2596_v1 = vadd.f32 %v2595_v24, %v2594_v37 }
 0x342   : > { %v2563_v17 = vmax.f32 %v2551_v45, 0.0  ;;  %v2545_v4 = vmul.f32 %v2533_v30, %v2063_v43 }
 0x344   : > { %v2557_v9 = vsub.f32 %v2533_v30, %v2545_v4  ;;  %v2575_v20 = vadd.f32 %v2563_v17, %v2057_v22 }
 0x346   : > { %v2569_v11 = vmax.f32 %v2557_v9, 0.0  ;;  %v2617_v57 = vsel %vm263_vm0, %v2575_v20, 0.0  ;;  %v2587_v32 = vmul.f32 %v6166_v62, %v2575_v20 }
 0x347   : > { %v2618_v7 = vadd.f32 %v2617_v57, %v2616_v6 }
 0x348   : > { %v2597_v60 = vsel %vm263_vm0, %v2587_v32, 0.0  ;;  %v2581_v10 = vadd.f32 %v2569_v11, %v2063_v43 }
 0x349   : > { %2619 = vadd.xlane.f32.xlu0 %v2618_v7  ;;  %v2598_v15 = vadd.f32 %v2597_v60, %v2596_v1 }
 0x34a   : > { %v2663_v40 = vsel %vm263_vm0, %v2581_v10, 0.0  ;;  %v2633_v26 = vmul.f32 %v6167_v48, %v2581_v10 }
 0x34b   : > { %2599 = vadd.xlane.f32.xlu1 %v2598_v15  ;;  %v2664_v18 = vadd.f32 %v2663_v40, %v2662_v25 }
 0x34c   : > { %v2643_v59 = vsel %vm263_vm0, %v2633_v26, 0.0 }
 0x34d   : > { %2665 = vadd.xlane.f32.xlu0 %v2664_v18  ;;  %v2644_v5 = vadd.f32 %v2643_v59, %v2642_v27 }
 0x34f   : > { %2645 = vadd.xlane.f32.xlu1 %v2644_v5 }
 0x360   : > { %v290_v8 = vpop.xlane.xlu1 %289 }
 0x361   : > { %v291_v19 = vrot.slane %v290_v8, 4 }
 0x363   : > { %v292_v61 = vadd.f32 %v291_v19, %v290_v8 }
 0x364   : > { %v365_v63 = vpop.xlane.xlu1 %364 }
 0x365   : > { %v293_v41 = vrot.slane %v292_v61, 2  ;;  %v366_v55 = vrot.slane %v365_v63, 4 }
 0x367   : > { %v367_v58 = vadd.f32 %v366_v55, %v365_v63  ;;  %v294_v13 = vadd.f32 %v293_v41, %v292_v61 }
 0x368   : > { %v415_v29 = vpop.xlane.xlu1 %414 }
 0x369   : > { %v416_v16 = vrot.slane %v415_v29, 4  ;;  %v368_v49 = vrot.slane %v367_v58, 2  ;;  %v295_v35 = vrot.slane %v294_v13, 1 }
 0x36b   : > { %v417_v47 = vadd.f32 %v416_v16, %v415_v29  ;;  %v296_v52 = vadd.f32 %v295_v35, %v294_v13  ;;  %v369_v53 = vadd.f32 %v368_v49, %v367_v58 }
 0x36d   : > { %v418_v21 = vrot.slane %v417_v47, 2  ;;  %v370_v2 = vrot.slane %v369_v53, 1 }
 0x36f   : > { %v419_v54 = vadd.f32 %v418_v21, %v417_v47  ;;  %v371_v24 = vadd.f32 %v370_v2, %v369_v53 }
 0x371   : > { %v420_v1 = vrot.slane %v419_v54, 1 }
 0x372   : > { %v268_v31 = vpop.xlane.xlu0 %267 }
 0x373   : > { %v269_v3 = vrot.slane %v268_v31, 4  ;;  %v421_v57 = vadd.f32 %v420_v1, %v419_v54 }
 0x375   : > { %v270_v42 = vadd.f32 %v269_v3, %v268_v31 }
 0x376   : > { %v315_v56 = vpop.xlane.xlu0 %314 }
 0x377   : > { %v271_v25 = vrot.slane %v270_v42, 2  ;;  %v316_v44 = vrot.slane %v315_v56, 4 }
 0x379   : > { %v317_v50 = vadd.f32 %v316_v44, %v315_v56  ;;  %v272_v38 = vadd.f32 %v271_v25, %v270_v42 }
 0x37a   : > { %v336_v46 = vpop.xlane.xlu0 %335 }
 0x37b   : > { %v318_v37 = vrot.slane %v317_v50, 2  ;;  %v337_v27 = vrot.slane %v336_v46, 4  ;;  %v273_v51 = vrot.slane %v272_v38, 1 }
 0x37d   : > { %v338_v33 = vadd.f32 %v337_v27, %v336_v46  ;;  %v274_v22 = vadd.f32 %v273_v51, %v272_v38  ;;  %v319_v39 = vadd.f32 %v318_v37, %v317_v50 }
 0x37e   : > { %v386_v0 = vpop.xlane.xlu0 %385 }
 0x37f   : > { %v339_v12 = vrot.slane %v338_v33, 2  ;;  %v387_v34 = vrot.slane %v386_v0, 4  ;;  %2808 = vpush %v274_v22  ;;  %v320_v14 = vrot.slane %v319_v39, 1 }
 0x380   : > { %2810 = vpush %v296_v52 }
 0x381   : > { %v388_v23 = vadd.f32 %v387_v34, %v386_v0  ;;  %v321_v28 = vadd.f32 %v320_v14, %v319_v39  ;;  %v340_v36 = vadd.f32 %v339_v12, %v338_v33 }
 0x382   : > { %v436_v6 = vpop.xlane.xlu0 %435 }
 0x383   : > { %v389_v45 = vrot.slane %v388_v23, 2  ;;  %2812 = vpush %v321_v28  ;;  %v341_v43 = vrot.slane %v340_v36, 1  ;;  %v437_v30 = vrot.slane %v436_v6, 4 }
 0x385   : > { %v342_v17 = vadd.f32 %v341_v43, %v340_v36  ;;  %v390_v4 = vadd.f32 %v389_v45, %v388_v23  ;;  %v438_v9 = vadd.f32 %v437_v30, %v436_v6 }
 0x387   : > { %2814 = vpush %v342_v17  ;;  %v391_v20 = vrot.slane %v390_v4, 1  ;;  %v439_v11 = vrot.slane %v438_v9, 2 }
 0x388   : > { %2816 = vpush %v371_v24 }
 0x389   : > { %v392_v62 = vadd.f32 %v391_v20, %v390_v4  ;;  %v440_v32 = vadd.f32 %v439_v11, %v438_v9  ;;  %v6168_v11 = vlaneseq }
 0x38b   : > { %2818 = vpush %v392_v62  ;;  %v441_v7 = vrot.slane %v440_v32, 1 }
 0x38c   : > { %2820 = vpush %v421_v57  ;;  %v2675_v57 = vand.u32 127, %v6168_v11 }
 0x38d   : > { %v442_v60 = vadd.f32 %v441_v7, %v440_v32 }
 0x38e   : > { %vm2676_vm1 = vcmp.eq.s32.totalorder %v2675_v57, 0  ;;  %vm2678_vm2 = vcmp.eq.s32.totalorder %v2675_v57, 1  ;;  %vm2680_vm3 = vcmp.eq.s32.totalorder %v2675_v57, 2  ;;  %vm2683_vm4 = vcmp.eq.s32.totalorder %v2675_v57, 3 }
 0x38f   : > { %2822 = vpush %v442_v60  ;;  %vm2686_vm5 = vcmp.eq.s32.totalorder %v2675_v57, 4  ;;  %vm2689_vm6 = vcmp.eq.s32.totalorder %v2675_v57, 5 }
 0x3b0   : > { %s5614_s20 = spop %2808 }
 0x3b1   : > { %s5616_s23 = spop %2810  ;;  %v276_v38 = vstv %s5614_s20 }
 0x3b2   : > { %v278_v37 = vmul.f32 0.00390625, %v276_v38  ;;  %v298_v14 = vstv %s5616_s23 }
 0x3b4   : > { %s5618_s30 = spop %2812  ;;  %v279_v21 = vadd.f32 0.6, %v278_v37 }
 0x3b5   : > { %v323_v46 = vstv %s5618_s30 }
 0x3b6   : > { %v324_v27 = vmul.f32 0.00390625, %v323_v46  ;;  %2943 = vrcp.f32 %v279_v21 }
 0x3b8   : > { %s2815_s4 = spop %2814  ;;  %v325_v52 = vadd.f32 0.6, %v324_v27 }
 0x3b9   : > { %s5622_s24 = spop %2816  ;;  %v344_v2 = vstv %s2815_s4 }
 0x3ba   : > { %v373_v51 = vstv %s5622_s24  ;;  %2945 = vrcp.f32 %v325_v52 }
 0x3bb   : > { %v374_v53 = vmul.f32 0.00390625, %v373_v51 }
 0x3bc   : > { %s2819_s12 = spop %2818 }
 0x3bd   : > { %s5625_s28 = spop %2820  ;;  %v375_v22 = vadd.f32 0.6, %v374_v53  ;;  %v394_v36 = vstv %s2819_s12 }
 0x3be   : > { %v423_v33 = vstv %s5625_s28 }
 0x3bf   : > { %v424_v39 = vmul.f32 0.00390625, %v423_v33  ;;  %2947 = vrcp.f32 %v375_v22 }
 0x3c0   : > { %v2944_v12 = vpop.eup %2943  ;;  %s2823_s5 = spop %2822 }
 0x3c1   : > { %v425_v0 = vadd.f32 0.6, %v424_v39  ;;  %v299_v54 = vmul.f32 %v2944_v12, %v298_v14  ;;  %v301_v6 = vmul.f32 %v2944_v12, %v276_v38  ;;  %v444_v1 = vstv %s2823_s5 }
 0x3c3   : > { %2949 = vrcp.f32 %v425_v0 }
 0x3c4   : > { %v2946_v34 = vpop.eup %2945 }
 0x3c5   : > { %v345_v23 = vmul.f32 %v2946_v34, %v344_v2  ;;  %v347_v45 = vmul.f32 %v2946_v34, %v323_v46 }
 0x3c7   : > { %v346_v43 = vadd.f32 %v345_v23, %v299_v54  ;;  %v348_v17 = vadd.f32 %v347_v45, %v301_v6 }
 0x3c9   : > { %v2948_v28 = vpop.eup %2947 }
 0x3ca   : > { %v395_v30 = vmul.f32 %v2948_v28, %v394_v36  ;;  %v397_v4 = vmul.f32 %v2948_v28, %v373_v51 }
 0x3cc   : > { %v396_v9 = vadd.f32 %v395_v30, %v346_v43  ;;  %v398_v62 = vadd.f32 %v397_v4, %v348_v17 }
 0x3cd   : > { %v2950_v24 = vpop.eup %2949 }
 0x3ce   : > { %v445_v20 = vmul.f32 %v2950_v24, %v444_v1  ;;  %v447_v32 = vmul.f32 %v2950_v24, %v423_v33 }
 0x3d0   : > { %v446_v7 = vadd.f32 %v445_v20, %v396_v9  ;;  %v448_v60 = vadd.f32 %v447_v32, %v398_v62 }
 0x3d6   : > { %v2620_v10 = vpop.xlane.xlu0 %2619 }
 0x3d7   : > { %v2621_v15 = vrot.slane %v2620_v10, 4 }
 0x3d8   : > { %v2600_v40 = vpop.xlane.xlu1 %2599 }
 0x3d9   : > { %v2622_v48 = vadd.f32 %v2621_v15, %v2620_v10  ;;  %v2601_v26 = vrot.slane %v2600_v40, 4  ;;  %v2677_v10 = vsel %vm2676_vm1, %v446_v7, 0.0 }
 0x3da   : > { %v2666_v18 = vpop.xlane.xlu0 %2665  ;;  %v2679_v15 = vsel %vm2678_vm2, %v448_v60, %v2677_v10 }
 0x3db   : > { %v2623_v59 = vrot.slane %v2622_v48, 2  ;;  %v2602_v5 = vadd.f32 %v2601_v26, %v2600_v40  ;;  %v2667_v8 = vrot.slane %v2666_v18, 4 }
 0x3dc   : > { %v2646_v19 = vpop.xlane.xlu1 %2645 }
 0x3dd   : > { %v2603_v63 = vrot.slane %v2602_v5, 2  ;;  %v2668_v61 = vadd.f32 %v2667_v8, %v2666_v18  ;;  %v2647_v41 = vrot.slane %v2646_v19, 4  ;;  %v2624_v55 = vadd.f32 %v2623_v59, %v2622_v48 }
 0x3df   : > { %v2669_v29 = vrot.slane %v2668_v61, 2  ;;  %v2648_v31 = vadd.f32 %v2647_v41, %v2646_v19  ;;  %v2604_v3 = vadd.f32 %v2603_v63, %v2602_v5  ;;  %v2625_v58 = vrot.slane %v2624_v55, 1 }
 0x3e1   : > { %v2670_v16 = vadd.f32 %v2669_v29, %v2668_v61  ;;  %v2649_v13 = vrot.slane %v2648_v31, 2  ;;  %v2605_v42 = vrot.slane %v2604_v3, 1  ;;  %v2626_v44 = vadd.f32 %v2625_v58, %v2624_v55 }
 0x3e3   : > { %v2650_v56 = vadd.f32 %v2649_v13, %v2648_v31  ;;  %v2606_v25 = vadd.f32 %v2605_v42, %v2604_v3  ;;  %v2671_v49 = vrot.slane %v2670_v16, 1 }
 0x3e5   : > { %2824 = vpush %v2606_v25  ;;  %v2651_v47 = vrot.slane %v2650_v56, 1  ;;  %v2672_v50 = vadd.f32 %v2671_v49, %v2670_v16 }
 0x3e6   : > { %2826 = vpush %v2626_v44 }
 0x3e7   : > { %v2652_v35 = vadd.f32 %v2651_v47, %v2650_v56 }
 0x3e9   : > { %2828 = vpush %v2652_v35 }
 0x3ea   : > { %2830 = vpush %v2672_v50 }
 0x416   : > { %s2825_s6 = spop %2824 }
 0x417   : > { %v2681_v40 = vstv %s2825_s6  ;;  %s2827_s7 = spop %2826 }
 0x418   : > { %v2682_v48 = vsel %vm2680_vm3, %v2681_v40, %v2679_v15  ;;  %v2684_v26 = vstv %s2827_s7 }
 0x419   : > { %v2685_v18 = vsel %vm2683_vm4, %v2684_v26, %v2682_v48 }
 0x41a   : > { %s2829_s8 = spop %2828 }
 0x41b   : > { %v2687_v59 = vstv %s2829_s8  ;;  %s2831_s22 = spop %2830 }
 0x41c   : > { %v2688_v5 = vsel %vm2686_vm5, %v2687_v59, %v2685_v18  ;;  %v2690_v8 = vstv %s2831_s22 }
 0x41d   : > { %v2691_v19 = vsel %vm2689_vm6, %v2690_v8, %v2688_v5 }
 0x41e   : > { %2693 = vst.msk [vmem:[%s199_s21] sm:$0x1] %vm2692_vm7, %v2691_v19 }
 0x41f PF: > { %p15_p11 = scmp.ge.s32.totalorder %s3097_s14, 4   ;;  %s6169_s9 = smov %s3043_s10 }
 0x420   : > { %s6170_s10 = smov %s3047_s11  ;;  %s6171_s11 = smov %s3107_s17 }
 0x421   : > { %s6172_s12 = smov %s3097_s14  ;;  %17 = sbr.rel (!%p15_p11) target bundleno = 5 (0x5), region = 84 }
 0x428   :  { %2711 = vsyncpa [#allocation3], 1 }
 0x429   :  { %2713 = vsyncpa [#allocation3 + $0x1], 1 }
 0x42a   :  { %2714 = vsyncpa [#allocation5], 1 }
 0x42b   :  { %2716 = vsyncpa [#allocation5 + $0x1], 1 }

</bundles_post_ra>
